<compile_context>
chip_gen: v7x
topology: tpu7x:2x2x1
jax: 0.10.0
libtpu: 0.0.40
codegen_flags: <defaults>
</compile_context>

<pallas_src>
import jax
import jax.numpy as jnp
from jax import lax
from jax.experimental import pallas as pl
from jax.experimental.pallas import tpu as pltpu


def _phase_taps(K, s, p):
    """Polyphase tap table.

    For output index oh = q*s + r (phase r), the transposed conv is
        y[oh] += x[q + d] * w[k]
    for every k in [0, K) with (r + p - k) % s == 0, where d = (r + p - k) // s.
    Out-of-range x indices contribute zero (handled by a zero halo in VMEM).
    """
    taps = []
    for r in range(s):
        lst = []
        for k in range(K):
            if (r + p - k) % s == 0:
                lst.append(((r + p - k) // s, k))
        taps.append(lst)
    return taps


def _halo(taps, Q, n):
    """(low, high) zero halo so every read q + d (q in [0, Q)) lands in [0, n + halo)."""
    ds = [d for lst in taps for (d, _) in lst]
    if not ds:
        return 0, 0
    lo = max(0, -min(ds))
    hi = max(0, (Q - 1) + max(ds) - (n - 1))
    return lo, hi


def _round_up(v, m):
    return (v + m - 1) // m * m


def _choose_c_blk(C, per_chan_bytes, budget):
    """Return (padded C, channel block). Block is all of C (C<=128) or a multiple of 128."""
    LANE = 128
    if C <= LANE:
        return C, C
    Cp = _round_up(C, LANE)
    n = Cp // LANE
    best = 1
    for k in range(1, n + 1):
        if n % k == 0 and k * LANE * per_chan_bytes <= budget:
            best = k
    return Cp, best * LANE


def _make_kernel(*, H, W, Hq, Wq, K, s, c_blk, taps,
                 pad_t, pad_b, pad_l, pad_r, neg_slope):
    Hs = pad_t + H + pad_b
    Ws = pad_l + W + pad_r
    f32 = jnp.float32

    def kernel(w_ref, b_ref, x_ref, o_ref, xp_ref):
        # ---- zero-halo'd input tile in VMEM (channels on lanes) -------------------
        # Only the halo strips actually read are zeroed; they must be (re)zeroed on
        # EVERY grid step (scratch persists across steps; cores take arbitrary subsets).
        if pad_t:
            xp_ref[:pad_t, :, :] = jnp.zeros((pad_t, Ws, c_blk), f32)
        if pad_b:
            xp_ref[pad_t + H:Hs, :, :] = jnp.zeros((pad_b, Ws, c_blk), f32)
        if pad_l:
            xp_ref[:, :pad_l, :] = jnp.zeros((Hs, pad_l, c_blk), f32)
        if pad_r:
            xp_ref[:, pad_l + W:Ws, :] = jnp.zeros((Hs, pad_r, c_blk), f32)
        # TODO(synk): on v6e a bf16 scratch/operand path (f32 accumulate) would halve
        # VMEM/vreg footprint when the model dtype is bf16 (not applicable on v5e).
        xp_ref[pad_t:pad_t + H, pad_l:pad_l + W, :] = x_ref[0].astype(f32)

        # Bias broadcast hoisted once (JAX does not CSE broadcast_in_dim).
        bias_b = jnp.broadcast_to(
            b_ref[...].astype(f32).reshape(1, 1, c_blk), (Hq, Wq, c_blk))

        for r in range(s):                         # output row phase
            accs = [bias_b] * s                    # accumulators start at the bias
            for dh, kh in taps[r]:
                for t in range(s):                 # output column phase
                    for dw, kw in taps[t]:
                        wv = w_ref[kh * K + kw, :].astype(f32).reshape(1, 1, c_blk)
                        win = xp_ref[pad_t + dh:pad_t + dh + Hq,
                                     pad_l + dw:pad_l + dw + Wq, :]
                        accs[t] = accs[t] + win * wv        # one FMA across all channels
            for t in range(s):
                y = accs[t]
                y = jnp.where(y >= 0, y, neg_slope * y)     # LeakyReLU
                o_ref[0, r, t] = y.astype(o_ref.dtype)      # dense (Hq, Wq, c_blk) store

    return kernel


def depthwise_upconv(x, weight, bias, *, stride, padding, output_padding,
                     negative_slope=0.01):
    """LeakyReLU(ConvTranspose2d(x; groups=C) + bias).

    x: (N, C, H, W); weight: (C, 1, K, K) (PyTorch ConvTranspose2d layout); bias: (C,).
    Returns NCHW output matching the PyTorch module.
    """
    N, C, H, W = x.shape
    K = weight.shape[-1]
    s, p, op = stride, padding, output_padding
    Ho = (H - 1) * s - 2 * p + K + op
    Wo = (W - 1) * s - 2 * p + K + op
    Hq = -(-Ho // s)                   # ceil(Ho / s): rows per output phase
    Wq = -(-Wo // s)

    taps = _phase_taps(K, s, p)        # square kernel, same padding on both axes
    pad_t, pad_b = _halo(taps, Hq, H)
    pad_l, pad_r = _halo(taps, Wq, W)
    Hs = pad_t + H + pad_b
    Ws = pad_l + W + pad_r

    # VMEM budget from the actual chip (64 MiB/TC on v7x, 128 MiB on v5e/v6e).
    try:
        cap = int(getattr(pltpu.get_tpu_info(), "vmem_capacity_bytes",
                          64 * 1024 * 1024))
    except Exception:
        cap = 64 * 1024 * 1024
    vmem_limit = max(32 * 1024 * 1024, min(96 * 1024 * 1024, (cap * 3) // 4))

    itemsize = jnp.dtype(x.dtype).itemsize
    per_chan = (2 * H * W * itemsize               # double-buffered input block
                + 2 * s * s * Hq * Wq * itemsize   # double-buffered output block
                + Hs * Ws * 4)                     # f32 halo scratch
    Cp, c_blk = _choose_c_blk(C, per_chan, vmem_limit // 2)
    # TODO(synk): for very large H*W additionally tile rows (overlapping halo blocks) so
    # the per-step footprint stays bounded independently of the spatial size.

    # ---- layout plumbing: NCHW module interface -> channels-on-lanes kernel -------
    x_cl = jnp.transpose(x, (0, 2, 3, 1))                                    # (N, H, W, C)
    w_tap = jnp.transpose(weight.astype(jnp.float32).reshape(C, K * K), (1, 0))  # (K*K, C)
    b_row = bias.astype(jnp.float32).reshape(1, C)
    if Cp != C:
        x_cl = jnp.pad(x_cl, ((0, 0), (0, 0), (0, 0), (0, Cp - C)))
        w_tap = jnp.pad(w_tap, ((0, 0), (0, Cp - C)))
        b_row = jnp.pad(b_row, ((0, 0), (0, Cp - C)))

    kernel = _make_kernel(H=H, W=W, Hq=Hq, Wq=Wq, K=K, s=s, c_blk=c_blk, taps=taps,
                          pad_t=pad_t, pad_b=pad_b, pad_l=pad_l, pad_r=pad_r,
                          neg_slope=negative_slope)

    flops = 2 * N * C * Hq * Wq * K * K            # real MACs only (polyphase)
    bytes_accessed = (x_cl.size * itemsize
                      + N * s * s * Hq * Wq * Cp * itemsize
                      + w_tap.size * 4 + b_row.size * 4)

    out6 = pl.pallas_call(
        kernel,
        out_shape=jax.ShapeDtypeStruct((N, s, s, Hq, Wq, Cp), x.dtype),
        grid=(N, Cp // c_blk),
        in_specs=[
            pl.BlockSpec((K * K, c_blk), lambda n, cb: (0, cb)),      # per-tap weight rows
            pl.BlockSpec((1, c_blk), lambda n, cb: (0, cb)),          # bias lane vector
            pl.BlockSpec((1, H, W, c_blk), lambda n, cb: (n, 0, 0, cb)),
        ],
        out_specs=pl.BlockSpec((1, s, s, Hq, Wq, c_blk),
                               lambda n, cb: (n, 0, 0, 0, 0, cb)),
        scratch_shapes=[pltpu.VMEM((Hs, Ws, c_blk), jnp.float32)],
        compiler_params=pltpu.CompilerParams(
            dimension_semantics=("parallel", "parallel"),
            vmem_limit_bytes=vmem_limit),
        cost_estimate=pl.CostEstimate(flops=flops, transcendentals=0,
                                      bytes_accessed=bytes_accessed),
    )(w_tap, b_row, x_cl)

    # Single output pass: phase interleave + channels-last -> NCHW together.
    # out6[n, r, t, q, u, c] -> y[n, c, q*s + r, u*s + t]
    y = jnp.transpose(out6, (0, 5, 3, 1, 4, 2)).reshape(N, Cp, Hq * s, Wq * s)
    return y[:, :C, :Ho, :Wo]


def _reference(x, weight, bias, *, stride, padding, output_padding, negative_slope=0.01):
    """Pure-JAX reference: transposed conv via lhs-dilated conv with flipped kernel."""
    C = x.shape[1]
    K = weight.shape[-1]
    s, p, op = stride, padding, output_padding
    y = lax.conv_general_dilated(
        x, weight[:, :, ::-1, ::-1],
        window_strides=(1, 1),
        padding=[(K - 1 - p, K - 1 - p + op)] * 2,
        lhs_dilation=(s, s),
        dimension_numbers=("NCHW", "OIHW", "NCHW"),
        feature_group_count=C,
    ) + bias[None, :, None, None]
    return jnp.where(y >= 0, y, negative_slope * y)


if __name__ == "__main__":
    # Small shapes consistent with the module: a typical 2x upsampling depthwise upconv.
    N, C, H, W = 2, 4, 16, 16
    K, s, p, op = 4, 2, 1, 0          # kernel_size=4, stride=2, padding=1, output_padding=0

    key = jax.random.PRNGKey(0)
    k1, k2, k3 = jax.random.split(key, 3)
    x = jax.random.normal(k1, (N, C, H, W), dtype=jnp.float32)

    # Deterministic synthetic params (shapes match nn.ConvTranspose2d(C, C, K, groups=C)):
    fan_in = 1 * K * K
    bound = float(1.0 / jnp.sqrt(fan_in))
    weight = jax.random.uniform(k2, (C, 1, K, K), jnp.float32, -bound, bound)
    bias = jax.random.uniform(k3, (C,), jnp.float32, -bound, bound)

    out = depthwise_upconv(x, weight, bias, stride=s, padding=p, output_padding=op)
    out = jax.block_until_ready(out)

    Ho = (H - 1) * s - 2 * p + K + op
    Wo = (W - 1) * s - 2 * p + K + op
    assert out.shape == (N, C, Ho, Wo)

    ref = _reference(x, weight, bias, stride=s, padding=p, output_padding=op)
    assert jnp.allclose(out, ref, atol=1e-4, rtol=1e-4), "mismatch vs reference"

    print("KERNEL_OK")
</pallas_src>

<mosaic_0001>
module attributes {stable_mosaic.version = 11 : i64} {
  func.func @kernel(%arg0: i32, %arg1: i32, %arg2: memref<16x4xf32, #tpu.memory_space<vmem>>, %arg3: memref<1x4xf32, #tpu.memory_space<vmem>>, %arg4: memref<1x16x16x4xf32, #tpu.memory_space<vmem>>, %arg5: memref<1x2x2x16x16x4xf32, #tpu.memory_space<vmem>>, %arg6: memref<18x18x4xf32, #tpu.memory_space<vmem>>) attributes {dimension_semantics = [#tpu.dimension_semantics<parallel>, #tpu.dimension_semantics<parallel>], iteration_bounds = array<i64: 2, 1>, scalar_prefetch = 0 : i64, scratch_operands = 1 : i64, tpu.core_type = #tpu.core_type<tc>, window_params = [{transform_indices = @transform_0, window_bounds = array<i64: 16, 4>}, {transform_indices = @transform_1, window_bounds = array<i64: 1, 4>}, {transform_indices = @transform_2, window_bounds = array<i64: 1, 16, 16, 4>}, {transform_indices = @transform_3, window_bounds = array<i64: 1, 2, 2, 16, 16, 4>}]} {
    %cst = arith.constant 0.000000e+00 : f32
    %0 = vector.broadcast %cst : f32 to vector<1x18x4xf32>
    %c0 = arith.constant 0 : index
    %c0_0 = arith.constant 0 : index
    %c0_1 = arith.constant 0 : index
    %1 = vector.load %arg6[%c0, %c0_0, %c0_1] : memref<18x18x4xf32, #tpu.memory_space<vmem>>, vector<1x18x4xf32>
    tpu.vector_store %arg6[%c0, %c0_0, %c0_1], %0 {strides = array<i32>} : memref<18x18x4xf32, #tpu.memory_space<vmem>>, vector<1x18x4xf32>,
    %cst_2 = arith.constant 0.000000e+00 : f32
    %2 = vector.broadcast %cst_2 : f32 to vector<1x18x4xf32>
    %c17 = arith.constant 17 : index
    %c0_3 = arith.constant 0 : index
    %c0_4 = arith.constant 0 : index
    %3 = vector.load %arg6[%c17, %c0_3, %c0_4] : memref<18x18x4xf32, #tpu.memory_space<vmem>>, vector<1x18x4xf32>
    tpu.vector_store %arg6[%c17, %c0_3, %c0_4], %2 {strides = array<i32>} : memref<18x18x4xf32, #tpu.memory_space<vmem>>, vector<1x18x4xf32>,
    %cst_5 = arith.constant 0.000000e+00 : f32
    %4 = vector.broadcast %cst_5 : f32 to vector<18x1x4xf32>
    %c0_6 = arith.constant 0 : index
    %c0_7 = arith.constant 0 : index
    %c0_8 = arith.constant 0 : index
    %5 = vector.load %arg6[%c0_6, %c0_7, %c0_8] : memref<18x18x4xf32, #tpu.memory_space<vmem>>, vector<18x1x4xf32>
    tpu.vector_store %arg6[%c0_6, %c0_7, %c0_8], %4 {strides = array<i32>} : memref<18x18x4xf32, #tpu.memory_space<vmem>>, vector<18x1x4xf32>,
    %cst_9 = arith.constant 0.000000e+00 : f32
    %6 = vector.broadcast %cst_9 : f32 to vector<18x1x4xf32>
    %c0_10 = arith.constant 0 : index
    %c17_11 = arith.constant 17 : index
    %c0_12 = arith.constant 0 : index
    %7 = vector.load %arg6[%c0_10, %c17_11, %c0_12] : memref<18x18x4xf32, #tpu.memory_space<vmem>>, vector<18x1x4xf32>
    tpu.vector_store %arg6[%c0_10, %c17_11, %c0_12], %6 {strides = array<i32>} : memref<18x18x4xf32, #tpu.memory_space<vmem>>, vector<18x1x4xf32>,
    %c0_13 = arith.constant 0 : index
    %c0_14 = arith.constant 0 : index
    %c0_15 = arith.constant 0 : index
    %c0_16 = arith.constant 0 : index
    %8 = vector.load %arg4[%c0_13, %c0_14, %c0_15, %c0_16] : memref<1x16x16x4xf32, #tpu.memory_space<vmem>>, vector<1x16x16x4xf32>
    %9 = vector.shape_cast %8 : vector<1x16x16x4xf32> to vector<16x16x4xf32>
    %c1 = arith.constant 1 : index
    %c1_17 = arith.constant 1 : index
    %c0_18 = arith.constant 0 : index
    %10 = vector.load %arg6[%c1, %c1_17, %c0_18] : memref<18x18x4xf32, #tpu.memory_space<vmem>>, vector<16x16x4xf32>
    tpu.vector_store %arg6[%c1, %c1_17, %c0_18], %9 {strides = array<i32>} : memref<18x18x4xf32, #tpu.memory_space<vmem>>, vector<16x16x4xf32>,
    %c0_19 = arith.constant 0 : index
    %c0_20 = arith.constant 0 : index
    %11 = vector.load %arg3[%c0_19, %c0_20] : memref<1x4xf32, #tpu.memory_space<vmem>>, vector<1x4xf32>
    %12 = vector.shape_cast %11 : vector<1x4xf32> to vector<1x1x4xf32>
    %13 = vector.shape_cast %12 : vector<1x1x4xf32> to vector<1x1x4xf32>
    %14 = vector.broadcast %13 : vector<1x1x4xf32> to vector<16x16x4xf32>
    %c5 = arith.constant 5 : index
    %c0_21 = arith.constant 0 : index
    %15 = vector.load %arg2[%c5, %c0_21] : memref<16x4xf32, #tpu.memory_space<vmem>>, vector<1x4xf32>
    %16 = vector.shape_cast %15 : vector<1x4xf32> to vector<4xf32>
    %17 = vector.shape_cast %16 : vector<4xf32> to vector<1x1x4xf32>
    %c1_22 = arith.constant 1 : index
    %c1_23 = arith.constant 1 : index
    %c0_24 = arith.constant 0 : index
    %18 = vector.load %arg6[%c1_22, %c1_23, %c0_24] : memref<18x18x4xf32, #tpu.memory_space<vmem>>, vector<16x16x4xf32>
    %19 = vector.broadcast %17 : vector<1x1x4xf32> to vector<16x16x4xf32>
    %20 = arith.mulf %18, %19 : vector<16x16x4xf32>
    %21 = arith.addf %14, %20 : vector<16x16x4xf32>
    %c7 = arith.constant 7 : index
    %c0_25 = arith.constant 0 : index
    %22 = vector.load %arg2[%c7, %c0_25] : memref<16x4xf32, #tpu.memory_space<vmem>>, vector<1x4xf32>
    %23 = vector.shape_cast %22 : vector<1x4xf32> to vector<4xf32>
    %24 = vector.shape_cast %23 : vector<4xf32> to vector<1x1x4xf32>
    %c1_26 = arith.constant 1 : index
    %c0_27 = arith.constant 0 : index
    %c0_28 = arith.constant 0 : index
    %25 = vector.load %arg6[%c1_26, %c0_27, %c0_28] : memref<18x18x4xf32, #tpu.memory_space<vmem>>, vector<16x16x4xf32>
    %26 = vector.broadcast %24 : vector<1x1x4xf32> to vector<16x16x4xf32>
    %27 = arith.mulf %25, %26 : vector<16x16x4xf32>
    %28 = arith.addf %21, %27 : vector<16x16x4xf32>
    %c4 = arith.constant 4 : index
    %c0_29 = arith.constant 0 : index
    %29 = vector.load %arg2[%c4, %c0_29] : memref<16x4xf32, #tpu.memory_space<vmem>>, vector<1x4xf32>
    %30 = vector.shape_cast %29 : vector<1x4xf32> to vector<4xf32>
    %31 = vector.shape_cast %30 : vector<4xf32> to vector<1x1x4xf32>
    %c1_30 = arith.constant 1 : index
    %c2 = arith.constant 2 : index
    %c0_31 = arith.constant 0 : index
    %32 = vector.load %arg6[%c1_30, %c2, %c0_31] : memref<18x18x4xf32, #tpu.memory_space<vmem>>, vector<16x16x4xf32>
    %33 = vector.broadcast %31 : vector<1x1x4xf32> to vector<16x16x4xf32>
    %34 = arith.mulf %32, %33 : vector<16x16x4xf32>
    %35 = arith.addf %14, %34 : vector<16x16x4xf32>
    %c6 = arith.constant 6 : index
    %c0_32 = arith.constant 0 : index
    %36 = vector.load %arg2[%c6, %c0_32] : memref<16x4xf32, #tpu.memory_space<vmem>>, vector<1x4xf32>
    %37 = vector.shape_cast %36 : vector<1x4xf32> to vector<4xf32>
    %38 = vector.shape_cast %37 : vector<4xf32> to vector<1x1x4xf32>
    %c1_33 = arith.constant 1 : index
    %c1_34 = arith.constant 1 : index
    %c0_35 = arith.constant 0 : index
    %39 = vector.load %arg6[%c1_33, %c1_34, %c0_35] : memref<18x18x4xf32, #tpu.memory_space<vmem>>, vector<16x16x4xf32>
    %40 = vector.broadcast %38 : vector<1x1x4xf32> to vector<16x16x4xf32>
    %41 = arith.mulf %39, %40 : vector<16x16x4xf32>
    %42 = arith.addf %35, %41 : vector<16x16x4xf32>
    %c13 = arith.constant 13 : index
    %c0_36 = arith.constant 0 : index
    %43 = vector.load %arg2[%c13, %c0_36] : memref<16x4xf32, #tpu.memory_space<vmem>>, vector<1x4xf32>
    %44 = vector.shape_cast %43 : vector<1x4xf32> to vector<4xf32>
    %45 = vector.shape_cast %44 : vector<4xf32> to vector<1x1x4xf32>
    %c0_37 = arith.constant 0 : index
    %c1_38 = arith.constant 1 : index
    %c0_39 = arith.constant 0 : index
    %46 = vector.load %arg6[%c0_37, %c1_38, %c0_39] : memref<18x18x4xf32, #tpu.memory_space<vmem>>, vector<16x16x4xf32>
    %47 = vector.broadcast %45 : vector<1x1x4xf32> to vector<16x16x4xf32>
    %48 = arith.mulf %46, %47 : vector<16x16x4xf32>
    %49 = arith.addf %28, %48 : vector<16x16x4xf32>
    %c15 = arith.constant 15 : index
    %c0_40 = arith.constant 0 : index
    %50 = vector.load %arg2[%c15, %c0_40] : memref<16x4xf32, #tpu.memory_space<vmem>>, vector<1x4xf32>
    %51 = vector.shape_cast %50 : vector<1x4xf32> to vector<4xf32>
    %52 = vector.shape_cast %51 : vector<4xf32> to vector<1x1x4xf32>
    %c0_41 = arith.constant 0 : index
    %c0_42 = arith.constant 0 : index
    %c0_43 = arith.constant 0 : index
    %53 = vector.load %arg6[%c0_41, %c0_42, %c0_43] : memref<18x18x4xf32, #tpu.memory_space<vmem>>, vector<16x16x4xf32>
    %54 = vector.broadcast %52 : vector<1x1x4xf32> to vector<16x16x4xf32>
    %55 = arith.mulf %53, %54 : vector<16x16x4xf32>
    %56 = arith.addf %49, %55 : vector<16x16x4xf32>
    %c12 = arith.constant 12 : index
    %c0_44 = arith.constant 0 : index
    %57 = vector.load %arg2[%c12, %c0_44] : memref<16x4xf32, #tpu.memory_space<vmem>>, vector<1x4xf32>
    %58 = vector.shape_cast %57 : vector<1x4xf32> to vector<4xf32>
    %59 = vector.shape_cast %58 : vector<4xf32> to vector<1x1x4xf32>
    %c0_45 = arith.constant 0 : index
    %c2_46 = arith.constant 2 : index
    %c0_47 = arith.constant 0 : index
    %60 = vector.load %arg6[%c0_45, %c2_46, %c0_47] : memref<18x18x4xf32, #tpu.memory_space<vmem>>, vector<16x16x4xf32>
    %61 = vector.broadcast %59 : vector<1x1x4xf32> to vector<16x16x4xf32>
    %62 = arith.mulf %60, %61 : vector<16x16x4xf32>
    %63 = arith.addf %42, %62 : vector<16x16x4xf32>
    %c14 = arith.constant 14 : index
    %c0_48 = arith.constant 0 : index
    %64 = vector.load %arg2[%c14, %c0_48] : memref<16x4xf32, #tpu.memory_space<vmem>>, vector<1x4xf32>
    %65 = vector.shape_cast %64 : vector<1x4xf32> to vector<4xf32>
    %66 = vector.shape_cast %65 : vector<4xf32> to vector<1x1x4xf32>
    %c0_49 = arith.constant 0 : index
    %c1_50 = arith.constant 1 : index
    %c0_51 = arith.constant 0 : index
    %67 = vector.load %arg6[%c0_49, %c1_50, %c0_51] : memref<18x18x4xf32, #tpu.memory_space<vmem>>, vector<16x16x4xf32>
    %68 = vector.broadcast %66 : vector<1x1x4xf32> to vector<16x16x4xf32>
    %69 = arith.mulf %67, %68 : vector<16x16x4xf32>
    %70 = arith.addf %63, %69 : vector<16x16x4xf32>
    %cst_52 = arith.constant 0.000000e+00 : f32
    %71 = vector.broadcast %cst_52 : f32 to vector<16x16x4xf32>
    %72 = arith.cmpf oge, %56, %71 : vector<16x16x4xf32>
    %cst_53 = arith.constant 0.00999999977 : f32
    %73 = vector.broadcast %cst_53 : f32 to vector<16x16x4xf32>
    %74 = arith.mulf %73, %56 : vector<16x16x4xf32>
    %75 = arith.select %72, %56, %74 : vector<16x16x4xi1>, vector<16x16x4xf32>
    %c0_54 = arith.constant 0 : index
    %c0_55 = arith.constant 0 : index
    %c0_56 = arith.constant 0 : index
    %c0_57 = arith.constant 0 : index
    %c0_58 = arith.constant 0 : index
    %c0_59 = arith.constant 0 : index
    %76 = vector.load %arg5[%c0_54, %c0_55, %c0_56, %c0_57, %c0_58, %c0_59] : memref<1x2x2x16x16x4xf32, #tpu.memory_space<vmem>>, vector<1x1x1x16x16x4xf32>
    %77 = vector.shape_cast %76 : vector<1x1x1x16x16x4xf32> to vector<16x16x4xf32>
    %78 = vector.shape_cast %75 : vector<16x16x4xf32> to vector<1x1x1x16x16x4xf32>
    tpu.vector_store %arg5[%c0_54, %c0_55, %c0_56, %c0_57, %c0_58, %c0_59], %78 {strides = array<i32>} : memref<1x2x2x16x16x4xf32, #tpu.memory_space<vmem>>, vector<1x1x1x16x16x4xf32>,
    %cst_60 = arith.constant 0.000000e+00 : f32
    %79 = vector.broadcast %cst_60 : f32 to vector<16x16x4xf32>
    %80 = arith.cmpf oge, %70, %79 : vector<16x16x4xf32>
    %cst_61 = arith.constant 0.00999999977 : f32
    %81 = vector.broadcast %cst_61 : f32 to vector<16x16x4xf32>
    %82 = arith.mulf %81, %70 : vector<16x16x4xf32>
    %83 = arith.select %80, %70, %82 : vector<16x16x4xi1>, vector<16x16x4xf32>
    %c0_62 = arith.constant 0 : index
    %c0_63 = arith.constant 0 : index
    %c1_64 = arith.constant 1 : index
    %c0_65 = arith.constant 0 : index
    %c0_66 = arith.constant 0 : index
    %c0_67 = arith.constant 0 : index
    %84 = vector.load %arg5[%c0_62, %c0_63, %c1_64, %c0_65, %c0_66, %c0_67] : memref<1x2x2x16x16x4xf32, #tpu.memory_space<vmem>>, vector<1x1x1x16x16x4xf32>
    %85 = vector.shape_cast %84 : vector<1x1x1x16x16x4xf32> to vector<16x16x4xf32>
    %86 = vector.shape_cast %83 : vector<16x16x4xf32> to vector<1x1x1x16x16x4xf32>
    tpu.vector_store %arg5[%c0_62, %c0_63, %c1_64, %c0_65, %c0_66, %c0_67], %86 {strides = array<i32>} : memref<1x2x2x16x16x4xf32, #tpu.memory_space<vmem>>, vector<1x1x1x16x16x4xf32>,
    %c1_68 = arith.constant 1 : index
    %c0_69 = arith.constant 0 : index
    %87 = vector.load %arg2[%c1_68, %c0_69] : memref<16x4xf32, #tpu.memory_space<vmem>>, vector<1x4xf32>
    %88 = vector.shape_cast %87 : vector<1x4xf32> to vector<4xf32>
    %89 = vector.shape_cast %88 : vector<4xf32> to vector<1x1x4xf32>
    %c2_70 = arith.constant 2 : index
    %c1_71 = arith.constant 1 : index
    %c0_72 = arith.constant 0 : index
    %90 = vector.load %arg6[%c2_70, %c1_71, %c0_72] : memref<18x18x4xf32, #tpu.memory_space<vmem>>, vector<16x16x4xf32>
    %91 = vector.broadcast %89 : vector<1x1x4xf32> to vector<16x16x4xf32>
    %92 = arith.mulf %90, %91 : vector<16x16x4xf32>
    %93 = arith.addf %14, %92 : vector<16x16x4xf32>
    %c3 = arith.constant 3 : index
    %c0_73 = arith.constant 0 : index
    %94 = vector.load %arg2[%c3, %c0_73] : memref<16x4xf32, #tpu.memory_space<vmem>>, vector<1x4xf32>
    %95 = vector.shape_cast %94 : vector<1x4xf32> to vector<4xf32>
    %96 = vector.shape_cast %95 : vector<4xf32> to vector<1x1x4xf32>
    %c2_74 = arith.constant 2 : index
    %c0_75 = arith.constant 0 : index
    %c0_76 = arith.constant 0 : index
    %97 = vector.load %arg6[%c2_74, %c0_75, %c0_76] : memref<18x18x4xf32, #tpu.memory_space<vmem>>, vector<16x16x4xf32>
    %98 = vector.broadcast %96 : vector<1x1x4xf32> to vector<16x16x4xf32>
    %99 = arith.mulf %97, %98 : vector<16x16x4xf32>
    %100 = arith.addf %93, %99 : vector<16x16x4xf32>
    %c0_77 = arith.constant 0 : index
    %c0_78 = arith.constant 0 : index
    %101 = vector.load %arg2[%c0_77, %c0_78] : memref<16x4xf32, #tpu.memory_space<vmem>>, vector<1x4xf32>
    %102 = vector.shape_cast %101 : vector<1x4xf32> to vector<4xf32>
    %103 = vector.shape_cast %102 : vector<4xf32> to vector<1x1x4xf32>
    %c2_79 = arith.constant 2 : index
    %c2_80 = arith.constant 2 : index
    %c0_81 = arith.constant 0 : index
    %104 = vector.load %arg6[%c2_79, %c2_80, %c0_81] : memref<18x18x4xf32, #tpu.memory_space<vmem>>, vector<16x16x4xf32>
    %105 = vector.broadcast %103 : vector<1x1x4xf32> to vector<16x16x4xf32>
    %106 = arith.mulf %104, %105 : vector<16x16x4xf32>
    %107 = arith.addf %14, %106 : vector<16x16x4xf32>
    %c2_82 = arith.constant 2 : index
    %c0_83 = arith.constant 0 : index
    %108 = vector.load %arg2[%c2_82, %c0_83] : memref<16x4xf32, #tpu.memory_space<vmem>>, vector<1x4xf32>
    %109 = vector.shape_cast %108 : vector<1x4xf32> to vector<4xf32>
    %110 = vector.shape_cast %109 : vector<4xf32> to vector<1x1x4xf32>
    %c2_84 = arith.constant 2 : index
    %c1_85 = arith.constant 1 : index
    %c0_86 = arith.constant 0 : index
    %111 = vector.load %arg6[%c2_84, %c1_85, %c0_86] : memref<18x18x4xf32, #tpu.memory_space<vmem>>, vector<16x16x4xf32>
    %112 = vector.broadcast %110 : vector<1x1x4xf32> to vector<16x16x4xf32>
    %113 = arith.mulf %111, %112 : vector<16x16x4xf32>
    %114 = arith.addf %107, %113 : vector<16x16x4xf32>
    %c9 = arith.constant 9 : index
    %c0_87 = arith.constant 0 : index
    %115 = vector.load %arg2[%c9, %c0_87] : memref<16x4xf32, #tpu.memory_space<vmem>>, vector<1x4xf32>
    %116 = vector.shape_cast %115 : vector<1x4xf32> to vector<4xf32>
    %117 = vector.shape_cast %116 : vector<4xf32> to vector<1x1x4xf32>
    %c1_88 = arith.constant 1 : index
    %c1_89 = arith.constant 1 : index
    %c0_90 = arith.constant 0 : index
    %118 = vector.load %arg6[%c1_88, %c1_89, %c0_90] : memref<18x18x4xf32, #tpu.memory_space<vmem>>, vector<16x16x4xf32>
    %119 = vector.broadcast %117 : vector<1x1x4xf32> to vector<16x16x4xf32>
    %120 = arith.mulf %118, %119 : vector<16x16x4xf32>
    %121 = arith.addf %100, %120 : vector<16x16x4xf32>
    %c11 = arith.constant 11 : index
    %c0_91 = arith.constant 0 : index
    %122 = vector.load %arg2[%c11, %c0_91] : memref<16x4xf32, #tpu.memory_space<vmem>>, vector<1x4xf32>
    %123 = vector.shape_cast %122 : vector<1x4xf32> to vector<4xf32>
    %124 = vector.shape_cast %123 : vector<4xf32> to vector<1x1x4xf32>
    %c1_92 = arith.constant 1 : index
    %c0_93 = arith.constant 0 : index
    %c0_94 = arith.constant 0 : index
    %125 = vector.load %arg6[%c1_92, %c0_93, %c0_94] : memref<18x18x4xf32, #tpu.memory_space<vmem>>, vector<16x16x4xf32>
    %126 = vector.broadcast %124 : vector<1x1x4xf32> to vector<16x16x4xf32>
    %127 = arith.mulf %125, %126 : vector<16x16x4xf32>
    %128 = arith.addf %121, %127 : vector<16x16x4xf32>
    %c8 = arith.constant 8 : index
    %c0_95 = arith.constant 0 : index
    %129 = vector.load %arg2[%c8, %c0_95] : memref<16x4xf32, #tpu.memory_space<vmem>>, vector<1x4xf32>
    %130 = vector.shape_cast %129 : vector<1x4xf32> to vector<4xf32>
    %131 = vector.shape_cast %130 : vector<4xf32> to vector<1x1x4xf32>
    %c1_96 = arith.constant 1 : index
    %c2_97 = arith.constant 2 : index
    %c0_98 = arith.constant 0 : index
    %132 = vector.load %arg6[%c1_96, %c2_97, %c0_98] : memref<18x18x4xf32, #tpu.memory_space<vmem>>, vector<16x16x4xf32>
    %133 = vector.broadcast %131 : vector<1x1x4xf32> to vector<16x16x4xf32>
    %134 = arith.mulf %132, %133 : vector<16x16x4xf32>
    %135 = arith.addf %114, %134 : vector<16x16x4xf32>
    %c10 = arith.constant 10 : index
    %c0_99 = arith.constant 0 : index
    %136 = vector.load %arg2[%c10, %c0_99] : memref<16x4xf32, #tpu.memory_space<vmem>>, vector<1x4xf32>
    %137 = vector.shape_cast %136 : vector<1x4xf32> to vector<4xf32>
    %138 = vector.shape_cast %137 : vector<4xf32> to vector<1x1x4xf32>
    %c1_100 = arith.constant 1 : index
    %c1_101 = arith.constant 1 : index
    %c0_102 = arith.constant 0 : index
    %139 = vector.load %arg6[%c1_100, %c1_101, %c0_102] : memref<18x18x4xf32, #tpu.memory_space<vmem>>, vector<16x16x4xf32>
    %140 = vector.broadcast %138 : vector<1x1x4xf32> to vector<16x16x4xf32>
    %141 = arith.mulf %139, %140 : vector<16x16x4xf32>
    %142 = arith.addf %135, %141 : vector<16x16x4xf32>
    %cst_103 = arith.constant 0.000000e+00 : f32
    %143 = vector.broadcast %cst_103 : f32 to vector<16x16x4xf32>
    %144 = arith.cmpf oge, %128, %143 : vector<16x16x4xf32>
    %cst_104 = arith.constant 0.00999999977 : f32
    %145 = vector.broadcast %cst_104 : f32 to vector<16x16x4xf32>
    %146 = arith.mulf %145, %128 : vector<16x16x4xf32>
    %147 = arith.select %144, %128, %146 : vector<16x16x4xi1>, vector<16x16x4xf32>
    %c0_105 = arith.constant 0 : index
    %c1_106 = arith.constant 1 : index
    %c0_107 = arith.constant 0 : index
    %c0_108 = arith.constant 0 : index
    %c0_109 = arith.constant 0 : index
    %c0_110 = arith.constant 0 : index
    %148 = vector.load %arg5[%c0_105, %c1_106, %c0_107, %c0_108, %c0_109, %c0_110] : memref<1x2x2x16x16x4xf32, #tpu.memory_space<vmem>>, vector<1x1x1x16x16x4xf32>
    %149 = vector.shape_cast %148 : vector<1x1x1x16x16x4xf32> to vector<16x16x4xf32>
    %150 = vector.shape_cast %147 : vector<16x16x4xf32> to vector<1x1x1x16x16x4xf32>
    tpu.vector_store %arg5[%c0_105, %c1_106, %c0_107, %c0_108, %c0_109, %c0_110], %150 {strides = array<i32>} : memref<1x2x2x16x16x4xf32, #tpu.memory_space<vmem>>, vector<1x1x1x16x16x4xf32>,
    %cst_111 = arith.constant 0.000000e+00 : f32
    %151 = vector.broadcast %cst_111 : f32 to vector<16x16x4xf32>
    %152 = arith.cmpf oge, %142, %151 : vector<16x16x4xf32>
    %cst_112 = arith.constant 0.00999999977 : f32
    %153 = vector.broadcast %cst_112 : f32 to vector<16x16x4xf32>
    %154 = arith.mulf %153, %142 : vector<16x16x4xf32>
    %155 = arith.select %152, %142, %154 : vector<16x16x4xi1>, vector<16x16x4xf32>
    %c0_113 = arith.constant 0 : index
    %c1_114 = arith.constant 1 : index
    %c1_115 = arith.constant 1 : index
    %c0_116 = arith.constant 0 : index
    %c0_117 = arith.constant 0 : index
    %c0_118 = arith.constant 0 : index
    %156 = vector.load %arg5[%c0_113, %c1_114, %c1_115, %c0_116, %c0_117, %c0_118] : memref<1x2x2x16x16x4xf32, #tpu.memory_space<vmem>>, vector<1x1x1x16x16x4xf32>
    %157 = vector.shape_cast %156 : vector<1x1x1x16x16x4xf32> to vector<16x16x4xf32>
    %158 = vector.shape_cast %155 : vector<16x16x4xf32> to vector<1x1x1x16x16x4xf32>
    tpu.vector_store %arg5[%c0_113, %c1_114, %c1_115, %c0_116, %c0_117, %c0_118], %158 {strides = array<i32>} : memref<1x2x2x16x16x4xf32, #tpu.memory_space<vmem>>, vector<1x1x1x16x16x4xf32>,
    return
  }
  func.func @transform_0(%arg0: i32, %arg1: i32) -> (i32, i32) {
    %c0_i32 = arith.constant 0 : i32
    %c0_i32_0 = arith.constant 0 : i32
    return %c0_i32, %arg1 : i32, i32
  }
  func.func @transform_1(%arg0: i32, %arg1: i32) -> (i32, i32) {
    %c0_i32 = arith.constant 0 : i32
    %c0_i32_0 = arith.constant 0 : i32
    return %c0_i32, %arg1 : i32, i32
  }
  func.func @transform_2(%arg0: i32, %arg1: i32) -> (i32, i32, i32, i32) {
    %c0_i32 = arith.constant 0 : i32
    %c0_i32_0 = arith.constant 0 : i32
    %c0_i32_1 = arith.constant 0 : i32
    return %arg0, %c0_i32, %c0_i32_0, %arg1 : i32, i32, i32, i32
  }
  func.func @transform_3(%arg0: i32, %arg1: i32) -> (i32, i32, i32, i32, i32, i32) {
    %c0_i32 = arith.constant 0 : i32
    %c0_i32_0 = arith.constant 0 : i32
    %c0_i32_1 = arith.constant 0 : i32
    %c0_i32_2 = arith.constant 0 : i32
    %c0_i32_3 = arith.constant 0 : i32
    return %arg0, %c0_i32, %c0_i32_0, %c0_i32_1, %c0_i32_2, %arg1 : i32, i32, i32, i32, i32, i32
  }
}

</mosaic_0001>

<bundles_post_ra>
// kernel: tpu_custom_call.1
= control target key start
LH: loop header
LB: loop body
LE: loop exit
PB: predicated region body
PF: predicated region fallthrough
CT: control target
= control target key end

     0   :  { %s2680_s12 = smov 0   ;;  %s2682_s13 = smov 0   ;;  %s4219_s0 = inlined_call_operand.vmem [shape: f32[16,4], index: 0, kind: input, shape index: {}]   ;;  %s4220_s1 = inlined_call_operand.vmem [shape: f32[1,4], index: 1, kind: input, shape index: {}]   ;;  %s4221_s2 = inlined_call_operand.vmem [shape: f32[2,16,16,4], index: 2, kind: input, shape index: {}]   ;;  %s4222_s3 = inlined_call_operand.vmem [shape: f32[2,2,2,16,16,4], index: 3, kind: output, shape index: {}]  }
   0x1   :  { %s2684_s14 = smov 0  }
   0x2 LB: > { %s25_s15 = sadd.s32 1, %s2653_s13  ;;  %p2472_p0 = scmp.ge.s32.totalorder %s2657_s14, 1  ;;  %s2657_s14 = sphi %s2684_s14, %s13_s14   ;;  %s2653_s13 = sphi %s2682_s13, %s4224_s13   ;;  %s2649_s12 = sphi %s2680_s12, %s4223_s12  }
   0x3   : > { %p27_p1 = scmp.ge.s32.totalorder %s25_s15, 2  ;;  %p173_p2 = scmp.lt.s32.totalorder %s2657_s14, 3 }
   0x5   : > { %s4226_s15 = smov (%p27_p1, %s25_s15), 0  ;;  %p174_p3 = pnand %p2472_p0, %p173_p2 }
   0x6   : > { %vm236_vm0 = vcmask (!%p174_p3), 25600   ;;  %vm233_vm1 = vcmask (!%p174_p3), 31744   ;;  %vm242_vm2 = vcmask (!%p174_p3), 24576   ;;  %p217_p4 = scmp.lt.s32.totalorder (!%p174_p3), %s2649_s12, 1  ;;  %v2659_v0 = vmov (!%p174_p3), 0.0  }
   0x7   : > { %177 = sbr.rel (%p174_p3) target bundleno = 399 (0x18f), region = 32  ;;  %241 = vst.msk [vmem:[#allocation2 + $0x1a8] sm:$0x3] (!%p174_p3), %vm236_vm0, %v2659_v0  ;;  %237 = vst.msk [vmem:[#allocation2 + $0x10] sm:$0x3] (!%p174_p3), %vm236_vm0, %v2659_v0 }
   0x8   : > { %239 = vst.msk [vmem:[#allocation2 + $0x198] sm:$0xff] (!%p174_p3), %vm233_vm1, %v2659_v0  ;;  %234 = vst.msk [vmem:[#allocation2] sm:$0xff] (!%p174_p3), %vm233_vm1, %v2659_v0  ;;  %v2518_v22 = vld [vmem:[%s4219_s0 + $0x1] ss:$0 sm:$0xff] (!%p174_p3)  ;;  %v2521_v23 = vld [vmem:[%s4219_s0 + $0x2] ss:$0 sm:$0xff] (!%p174_p3) }
   0x9   : > { %235 = vst.msk [vmem:[#allocation2 + $0x8] sm:$0xff] (!%p174_p3), %vm233_vm1, %v2659_v0  ;;  %240 = vst.msk [vmem:[#allocation2 + $0x1a0] sm:$0xff] (!%p174_p3), %vm233_vm1, %v2659_v0  ;;  %v2519_v27 = vld [vmem:[%s4219_s0 + $0x3] ss:$0 sm:$0xff] (!%p174_p3)  ;;  %v2815_v31 = vld [vmem:[%s4220_s1] ss:$0 sm:$0xff] (!%p174_p3) }
   0xa   : > { %244 = vst.msk [vmem:[#allocation2 + $0x18] sm:$0x1] (!%p174_p3), %vm242_vm2, %v2659_v0  ;;  %245 = vst.msk [vmem:[#allocation2 + $0x30] sm:$0x1] (!%p174_p3), %vm242_vm2, %v2659_v0  ;;  %v2520_v32 = vld [vmem:[%s4219_s0] ss:$0 sm:$0xff] (!%p174_p3) }
   0xb   : > { %246 = vst.msk [vmem:[#allocation2 + $0x48] sm:$0x1] (!%p174_p3), %vm242_vm2, %v2659_v0  ;;  %247 = vst.msk [vmem:[#allocation2 + $0x60] sm:$0x1] (!%p174_p3), %vm242_vm2, %v2659_v0  ;;  %v2823_v33 = vld [vmem:[%s4219_s0 + $0x5] ss:$0 sm:$0xff] (!%p174_p3) }
   0xc   : > { %248 = vst.msk [vmem:[#allocation2 + $0x78] sm:$0x1] (!%p174_p3), %vm242_vm2, %v2659_v0  ;;  %249 = vst.msk [vmem:[#allocation2 + $0x90] sm:$0x1] (!%p174_p3), %vm242_vm2, %v2659_v0  ;;  %v2834_v37 = vld [vmem:[%s4219_s0 + $0x7] ss:$0 sm:$0xff] (!%p174_p3) }
   0xd   : > { %250 = vst.msk [vmem:[#allocation2 + $0xa8] sm:$0x1] (!%p174_p3), %vm242_vm2, %v2659_v0  ;;  %251 = vst.msk [vmem:[#allocation2 + $0xc0] sm:$0x1] (!%p174_p3), %vm242_vm2, %v2659_v0  ;;  %v2846_v46 = vld [vmem:[%s4219_s0 + $0xd] ss:$0 sm:$0xff] (!%p174_p3) }
   0xe   : > { %252 = vst.msk [vmem:[#allocation2 + $0xd8] sm:$0x1] %vm242_vm2, %v2659_v0  ;;  %253 = vst.msk [vmem:[#allocation2 + $0xf0] sm:$0x1] %vm242_vm2, %v2659_v0  ;;  %s4228_s12 = smov (!%p217_p4, %s2649_s12), 1 }
   0xf   : > { %254 = vst.msk [vmem:[#allocation2 + $0x108] sm:$0x1] %vm242_vm2, %v2659_v0  ;;  %255 = vst.msk [vmem:[#allocation2 + $0x120] sm:$0x1] %vm242_vm2, %v2659_v0  ;;  %s2592_s16 = sshll.u32 %s4228_s12, 8  ;;  %s2593_s23 = sshll.u32 %s4228_s12, 10 }
  0x10   : > { %256 = vst.msk [vmem:[#allocation2 + $0x138] sm:$0x1] %vm242_vm2, %v2659_v0  ;;  %257 = vst.msk [vmem:[#allocation2 + $0x150] sm:$0x1] %vm242_vm2, %v2659_v0  ;;  %s2750_s19 = scalar_lea.vmem %s4221_s2, %s2592_s16  ;;  %v1384_v40 = vld [vmem:[#allocation2 + $0x199] sm:$0xff]  ;;  %v1385_v43 = vld [vmem:[#allocation2 + $0x1a1] sm:$0xff]  ;;  %s2911_s12 = scalar_lea.vmem %s4222_s3, %s2593_s23 }
  0x11   : > { %258 = vst.msk [vmem:[#allocation2 + $0x168] sm:$0x1] %vm242_vm2, %v2659_v0  ;;  %259 = vst.msk [vmem:[#allocation2 + $0x180] sm:$0x1] %vm242_vm2, %v2659_v0  ;;  %v279_v1 = vld [vmem:[%s2750_s19] sm:$0xff]  ;;  %v280_v2 = vld [vmem:[%s2750_s19 + $0x8] sm:$0xff]  ;;  %v1420_v41 = vmul.f32 %v2518_v22, %v1384_v40  ;;  %v1691_v45 = vmul.f32 %v2521_v23, %v1384_v40  ;;  %v1421_v49 = vmul.f32 %v2518_v22, %v1385_v43 }
  0x12   : > { %262 = vst.msk [vmem:[#allocation2 + $0x29] sm:$0x1] %vm242_vm2, %v2659_v0  ;;  %263 = vst.msk [vmem:[#allocation2 + $0x41] sm:$0x1] %vm242_vm2, %v2659_v0  ;;  %v281_v3 = vld [vmem:[%s2750_s19 + $0x10] sm:$0xff]  ;;  %v282_v4 = vld [vmem:[%s2750_s19 + $0x18] sm:$0xff]  ;;  %v1692_v53 = vmul.f32 %v2521_v23, %v1385_v43 }
  0x13   : > { %264 = vst.msk [vmem:[#allocation2 + $0x59] sm:$0x1] %vm242_vm2, %v2659_v0  ;;  %265 = vst.msk [vmem:[#allocation2 + $0x71] sm:$0x1] %vm242_vm2, %v2659_v0  ;;  %v283_v5 = vld [vmem:[%s2750_s19 + $0x20] sm:$0xff]  ;;  %v284_v6 = vld [vmem:[%s2750_s19 + $0x28] sm:$0xff]  ;;  %v1452_v55 = vadd.f32 %v2815_v31, %v1420_v41  ;;  %v1453_v62 = vadd.f32 %v2815_v31, %v1421_v49 }
  0x14   : > { %266 = vst.msk [vmem:[#allocation2 + $0x89] sm:$0x1] %vm242_vm2, %v2659_v0  ;;  %267 = vst.msk [vmem:[#allocation2 + $0xa1] sm:$0x1] %vm242_vm2, %v2659_v0  ;;  %v285_v7 = vld [vmem:[%s2750_s19 + $0x30] sm:$0xff]  ;;  %v286_v8 = vld [vmem:[%s2750_s19 + $0x38] sm:$0xff] }
  0x15   : > { %268 = vst.msk [vmem:[#allocation2 + $0xb9] sm:$0x1] %vm242_vm2, %v2659_v0  ;;  %269 = vst.msk [vmem:[#allocation2 + $0xd1] sm:$0x1] %vm242_vm2, %v2659_v0  ;;  %v287_v9 = vld [vmem:[%s2750_s19 + $0x40] sm:$0xff]  ;;  %v288_v10 = vld [vmem:[%s2750_s19 + $0x48] sm:$0xff] }
  0x16   : > { %270 = vst.msk [vmem:[#allocation2 + $0xe9] sm:$0x1] %vm242_vm2, %v2659_v0  ;;  %271 = vst.msk [vmem:[#allocation2 + $0x101] sm:$0x1] %vm242_vm2, %v2659_v0  ;;  %v289_v11 = vld [vmem:[%s2750_s19 + $0x50] sm:$0xff]  ;;  %v290_v12 = vld [vmem:[%s2750_s19 + $0x58] sm:$0xff] }
  0x17   : > { %272 = vst.msk [vmem:[#allocation2 + $0x119] sm:$0x1] %vm242_vm2, %v2659_v0  ;;  %273 = vst.msk [vmem:[#allocation2 + $0x131] sm:$0x1] %vm242_vm2, %v2659_v0  ;;  %v291_v13 = vld [vmem:[%s2750_s19 + $0x60] sm:$0xff]  ;;  %v292_v14 = vld [vmem:[%s2750_s19 + $0x68] sm:$0xff] }
  0x18   : > { %274 = vst.msk [vmem:[#allocation2 + $0x149] sm:$0x1] %vm242_vm2, %v2659_v0  ;;  %275 = vst.msk [vmem:[#allocation2 + $0x161] sm:$0x1] %vm242_vm2, %v2659_v0  ;;  %v293_v15 = vld [vmem:[%s2750_s19 + $0x70] sm:$0xff]  ;;  %v294_v16 = vld [vmem:[%s2750_s19 + $0x78] sm:$0xff] }
  0x19   : > { %276 = vst.msk [vmem:[#allocation2 + $0x179] sm:$0x1] %vm242_vm2, %v2659_v0  ;;  %277 = vst.msk [vmem:[#allocation2 + $0x191] sm:$0x1] %vm242_vm2, %v2659_v0  ;;  %v295_v17 = vld [vmem:[%s2750_s19 + $0x80] sm:$0xff]  ;;  %v296_v18 = vld [vmem:[%s2750_s19 + $0x88] sm:$0xff] }
  0x1a   : > { %278 = vst.msk [vmem:[#allocation2 + $0x1a9] sm:$0x1] %vm242_vm2, %v2659_v0  ;;  %243 = vst.msk [vmem:[#allocation2] sm:$0x1] %vm242_vm2, %v2659_v0  ;;  %v297_v19 = vld [vmem:[%s2750_s19 + $0x90] sm:$0xff]  ;;  %v298_v20 = vld [vmem:[%s2750_s19 + $0x98] sm:$0xff] }
  0x1b   : > { %260 = vst.msk [vmem:[#allocation2 + $0x198] sm:$0x1] %vm242_vm2, %v2659_v0  ;;  %261 = vst.msk [vmem:[#allocation2 + $0x11] sm:$0x1] %vm242_vm2, %v2659_v0  ;;  %v299_v21 = vld [vmem:[%s2750_s19 + $0xa0] sm:$0xff]  ;;  %v300_v24 = vld [vmem:[%s2750_s19 + $0xa8] sm:$0xff] }
  0x1c   : > { %312 = vst.msk [vmem:[#allocation2 + $0x19] sm:$0xff] %vm233_vm1, %v279_v1  ;;  %313 = vst.msk [vmem:[#allocation2 + $0x21] sm:$0xff] %vm233_vm1, %v280_v2  ;;  %v301_v25 = vld [vmem:[%s2750_s19 + $0xb0] sm:$0xff]  ;;  %v302_v26 = vld [vmem:[%s2750_s19 + $0xb8] sm:$0xff] }
  0x1d   : > { %314 = vst.msk [vmem:[#allocation2 + $0x31] sm:$0xff] %vm233_vm1, %v281_v3  ;;  %315 = vst.msk [vmem:[#allocation2 + $0x39] sm:$0xff] %vm233_vm1, %v282_v4  ;;  %v303_v28 = vld [vmem:[%s2750_s19 + $0xc0] sm:$0xff]  ;;  %v304_v29 = vld [vmem:[%s2750_s19 + $0xc8] sm:$0xff] }
  0x1e   : > { %316 = vst.msk [vmem:[#allocation2 + $0x49] sm:$0xff] %vm233_vm1, %v283_v5  ;;  %317 = vst.msk [vmem:[#allocation2 + $0x51] sm:$0xff] %vm233_vm1, %v284_v6  ;;  %v305_v30 = vld [vmem:[%s2750_s19 + $0xd0] sm:$0xff]  ;;  %v306_v34 = vld [vmem:[%s2750_s19 + $0xd8] sm:$0xff] }
  0x1f   : > { %318 = vst.msk [vmem:[#allocation2 + $0x61] sm:$0xff] %vm233_vm1, %v285_v7  ;;  %319 = vst.msk [vmem:[#allocation2 + $0x69] sm:$0xff] %vm233_vm1, %v286_v8  ;;  %v307_v35 = vld [vmem:[%s2750_s19 + $0xe0] sm:$0xff]  ;;  %v308_v36 = vld [vmem:[%s2750_s19 + $0xe8] sm:$0xff] }
  0x20   : > { %320 = vst.msk [vmem:[#allocation2 + $0x79] sm:$0xff] %vm233_vm1, %v287_v9  ;;  %321 = vst.msk [vmem:[#allocation2 + $0x81] sm:$0xff] %vm233_vm1, %v288_v10  ;;  %v309_v38 = vld [vmem:[%s2750_s19 + $0xf0] sm:$0xff]  ;;  %v310_v39 = vld [vmem:[%s2750_s19 + $0xf8] sm:$0xff] }
  0x21   : > { %322 = vst.msk [vmem:[#allocation2 + $0x91] sm:$0xff] %vm233_vm1, %v289_v11  ;;  %323 = vst.msk [vmem:[#allocation2 + $0x99] sm:$0xff] %vm233_vm1, %v290_v12  ;;  %v1486_v44 = vld [vmem:[#allocation2 + $0x1a0] sm:$0xff]  ;;  %v2851_v47 = vld [vmem:[%s4219_s0 + $0xf] ss:$0 sm:$0xff] }
  0x22   : > { %324 = vst.msk [vmem:[#allocation2 + $0xa9] sm:$0xff] %vm233_vm1, %v291_v13  ;;  %325 = vst.msk [vmem:[#allocation2 + $0xb1] sm:$0xff] %vm233_vm1, %v292_v14  ;;  %v1485_v42 = vld [vmem:[#allocation2 + $0x198] sm:$0xff]  ;;  %v1522_v50 = vmul.f32 %v2519_v27, %v1486_v44  ;;  %v1587_v52 = vld [vmem:[#allocation2 + $0x1a2] sm:$0xff] }
  0x23   : > { %326 = vst.msk [vmem:[#allocation2 + $0xc1] sm:$0xff] %vm233_vm1, %v293_v15  ;;  %327 = vst.msk [vmem:[#allocation2 + $0xc9] sm:$0xff] %vm233_vm1, %v294_v16  ;;  %v1521_v48 = vmul.f32 %v2519_v27, %v1485_v42  ;;  %v1586_v51 = vld [vmem:[#allocation2 + $0x19a] sm:$0xff]  ;;  %v1623_v57 = vmul.f32 %v2520_v32, %v1587_v52  ;;  %v2866_v4 = vld [vmem:[#allocation2 + $0x9] sm:$0xff] }
  0x24   : > { %328 = vst.msk [vmem:[#allocation2 + $0xd9] sm:$0xff] %vm233_vm1, %v295_v17  ;;  %329 = vst.msk [vmem:[#allocation2 + $0xe1] sm:$0xff] %vm233_vm1, %v296_v18  ;;  %v2853_v54 = vld [vmem:[#allocation2 + $0x19] sm:$0xff]  ;;  %v1622_v56 = vmul.f32 %v2520_v32, %v1586_v51  ;;  %v724_v60 = vld [vmem:[#allocation2 + $0x1] sm:$0xff]  ;;  %v1554_v14 = vadd.f32 %v1522_v50, %v1453_v62  ;;  %v761_v18 = vmul.f32 %v2846_v46, %v2866_v4 }
  0x25   : > { %330 = vst.msk [vmem:[#allocation2 + $0xf1] sm:$0xff] %vm233_vm1, %v297_v19  ;;  %331 = vst.msk [vmem:[#allocation2 + $0xf9] sm:$0xff] %vm233_vm1, %v298_v20  ;;  %v388_v58 = vmul.f32 %v2823_v33, %v2853_v54  ;;  %v453_v59 = vld [vmem:[#allocation2 + $0x18] sm:$0xff]  ;;  %v825_v61 = vld [vmem:[#allocation2] sm:$0xff]  ;;  %v760_v0 = vmul.f32 %v2846_v46, %v724_v60  ;;  %v1553_v5 = vadd.f32 %v1521_v48, %v1452_v55 }
  0x26   : > { %332 = vst.msk [vmem:[#allocation2 + $0x109] sm:$0xff] %vm233_vm1, %v299_v21  ;;  %333 = vst.msk [vmem:[#allocation2 + $0x111] sm:$0xff] %vm233_vm1, %v300_v24  ;;  %v489_v63 = vmul.f32 %v2834_v37, %v453_v59  ;;  %v861_v1 = vmul.f32 %v2851_v47, %v825_v61  ;;  %v2862_v2 = vld [vmem:[#allocation2 + $0x21] sm:$0xff]  ;;  %v1654_v6 = vadd.f32 %v2815_v31, %v1622_v56  ;;  %v2871_v10 = vld [vmem:[#allocation2 + $0x31] sm:$0xff] }
  0x27   : > { %334 = vst.msk [vmem:[#allocation2 + $0x121] sm:$0xff] %vm233_vm1, %v301_v25  ;;  %335 = vst.msk [vmem:[#allocation2 + $0x129] sm:$0xff] %vm233_vm1, %v302_v26  ;;  %v2864_v3 = vld [vmem:[#allocation2 + $0x20] sm:$0xff]  ;;  %v1655_v7 = vadd.f32 %v2815_v31, %v1623_v57  ;;  %v420_v8 = vadd.f32 %v2815_v31, %v388_v58  ;;  %v826_v9 = vld [vmem:[#allocation2 + $0x8] sm:$0xff]  ;;  %v389_v16 = vmul.f32 %v2823_v33, %v2862_v2 }
  0x28   : > { %336 = vst.msk [vmem:[#allocation2 + $0x139] sm:$0xff] %vm233_vm1, %v303_v28  ;;  %337 = vst.msk [vmem:[#allocation2 + $0x141] sm:$0xff] %vm233_vm1, %v304_v29  ;;  %v2873_v11 = vld [vmem:[#allocation2 + $0x30] sm:$0xff]  ;;  %v2522_v12 = vld [vmem:[%s4219_s0 + $0x9] ss:$0 sm:$0xff]  ;;  %v490_v17 = vmul.f32 %v2834_v37, %v2864_v3  ;;  %v1723_v19 = vadd.f32 %v1691_v45, %v1654_v6  ;;  %v862_v23 = vmul.f32 %v2851_v47, %v826_v9 }
  0x29   : > { %338 = vst.msk [vmem:[#allocation2 + $0x151] sm:$0xff] %vm233_vm1, %v305_v30  ;;  %339 = vst.msk [vmem:[#allocation2 + $0x159] sm:$0xff] %vm233_vm1, %v306_v34  ;;  %v2523_v13 = vld [vmem:[%s4219_s0 + $0xb] ss:$0 sm:$0xff]  ;;  %v2525_v15 = vld [vmem:[%s4219_s0 + $0xa] ss:$0 sm:$0xff]  ;;  %v1724_v21 = vadd.f32 %v1692_v53, %v1655_v7  ;;  %v521_v22 = vadd.f32 %v489_v63, %v420_v8  ;;  %v421_v27 = vadd.f32 %v2815_v31, %v389_v16 }
  0x2a   : > { %340 = vst.msk [vmem:[#allocation2 + $0x169] sm:$0xff] %vm233_vm1, %v307_v35  ;;  %341 = vst.msk [vmem:[#allocation2 + $0x171] sm:$0xff] %vm233_vm1, %v308_v36  ;;  %v2524_v20 = vld [vmem:[%s4219_s0 + $0x8] ss:$0 sm:$0xff]  ;;  %v390_v28 = vmul.f32 %v2823_v33, %v2871_v10  ;;  %v491_v29 = vmul.f32 %v2834_v37, %v2873_v11  ;;  %v762_v30 = vmul.f32 %v2846_v46, %v2853_v54  ;;  %v2901_v51 = vld [vmem:[#allocation2 + $0x39] sm:$0xff] }
  0x2b   : > { %342 = vst.msk [vmem:[#allocation2 + $0x181] sm:$0xff] %vm233_vm1, %v309_v38  ;;  %343 = vst.msk [vmem:[#allocation2 + $0x189] sm:$0xff] %vm233_vm1, %v310_v39  ;;  %v792_v49 = vadd.f32 %v760_v0, %v521_v22  ;;  %v522_v50 = vadd.f32 %v490_v17, %v421_v27  ;;  %v863_v56 = vmul.f32 %v2851_v47, %v453_v59 }
  0x2c   : > { %v422_v55 = vadd.f32 %v2815_v31, %v390_v28  ;;  %v391_v0 = vmul.f32 %v2823_v33, %v2901_v51  ;;  %v864_v28 = vmul.f32 %v2851_v47, %v2864_v3 }
  0x2d   : > { %v893_v60 = vadd.f32 %v861_v1, %v792_v49  ;;  %v793_v61 = vadd.f32 %v761_v18, %v522_v50  ;;  %v2917_v18 = vld [vmem:[#allocation2 + $0x49] sm:$0xff] }
  0x2e   : > { %v523_v6 = vadd.f32 %v491_v29, %v422_v55  ;;  %v392_v29 = vmul.f32 %v2823_v33, %v2917_v18  ;;  %v460_v55 = vld [vmem:[#allocation2 + $0x68] sm:$0xff] }
  0x2f   : > { %vm1095_vm7 = vcmp.ge.f32.partialorder %v893_v60, 0.0  ;;  %v894_v16 = vadd.f32 %v862_v23, %v793_v61  ;;  %v763_v23 = vmul.f32 %v2846_v46, %v2862_v2 }
  0x30   : > { %v794_v17 = vadd.f32 %v762_v30, %v523_v6  ;;  %v424_v3 = vadd.f32 %v2815_v31, %v392_v29  ;;  %v2964_v6 = vld [vmem:[#allocation2 + $0x79] sm:$0xff] }
  0x31   : > { %vm1096_vm8 = vcmp.ge.f32.partialorder %v894_v16, 0.0 }
  0x32   : > { %v1756_v24 = vld [vmem:[#allocation2 + $0x181] sm:$0xff]  ;;  %v1757_v26 = vld [vmem:[#allocation2 + $0x189] sm:$0xff] }
  0x33   : > { %v1857_v25 = vld [vmem:[#allocation2 + $0x180] sm:$0xff]  ;;  %v1792_v32 = vmul.f32 %v2522_v12, %v1756_v24  ;;  %v1793_v35 = vmul.f32 %v2522_v12, %v1757_v26  ;;  %v1858_v36 = vld [vmem:[#allocation2 + $0x188] sm:$0xff]  ;;  %v2063_v39 = vmul.f32 %v2525_v15, %v1756_v24  ;;  %v2064_v44 = vmul.f32 %v2525_v15, %v1757_v26  ;;  %v2929_v26 = vld [vmem:[#allocation2 + $0x51] sm:$0xff] }
  0x34   : > { %v1893_v34 = vmul.f32 %v2523_v13, %v1857_v25  ;;  %v1958_v38 = vld [vmem:[#allocation2 + $0x182] sm:$0xff]  ;;  %v1959_v40 = vld [vmem:[#allocation2 + $0x18a] sm:$0xff]  ;;  %v1894_v41 = vmul.f32 %v2523_v13, %v1858_v36  ;;  %v1127_v13 = vmul.f32 0.01, %v893_v60  ;;  %v1128_v24 = vmul.f32 0.01, %v894_v16 }
  0x35   : > { %v1994_v42 = vmul.f32 %v2524_v20, %v1958_v38  ;;  %v1995_v43 = vmul.f32 %v2524_v20, %v1959_v40  ;;  %v1824_v45 = vadd.f32 %v1792_v32, %v1553_v5  ;;  %v1825_v48 = vadd.f32 %v1793_v35, %v1554_v14  ;;  %v456_v5 = vld [vmem:[#allocation2 + $0x38] sm:$0xff]  ;;  %v458_v32 = vld [vmem:[#allocation2 + $0x50] sm:$0xff] }
  0x36   : > { %v1159_v20 = vsel %vm1095_vm7, %v893_v60, %v1127_v13  ;;  %v492_v22 = vmul.f32 %v2834_v37, %v456_v5  ;;  %v895_v25 = vadd.f32 %v863_v56, %v794_v17  ;;  %v1160_v35 = vsel %vm1096_vm8, %v894_v16, %v1128_v24 }
  0x37   : > { %v2026_v52 = vadd.f32 %v1994_v42, %v1723_v19  ;;  %v2027_v53 = vadd.f32 %v1995_v43, %v1724_v21  ;;  %v1925_v57 = vadd.f32 %v1893_v34, %v1824_v45  ;;  %v1926_v58 = vadd.f32 %v1894_v41, %v1825_v48  ;;  %v457_v19 = vld [vmem:[#allocation2 + $0x48] sm:$0xff]  ;;  %1191 = vst.msk [vmem:[%s2911_s12] sm:$0xff] %vm233_vm1, %v1159_v20  ;;  %v459_v42 = vld [vmem:[#allocation2 + $0x60] sm:$0xff] }
  0x38   : > { %v423_v21 = vadd.f32 %v2815_v31, %v391_v0  ;;  %v493_v30 = vmul.f32 %v2834_v37, %v457_v19  ;;  %v2936_v34 = vld [vmem:[#allocation2 + $0x61] sm:$0xff]  ;;  %vm1097_vm9 = vcmp.ge.f32.partialorder %v895_v25, 0.0  ;;  %v1129_v36 = vmul.f32 0.01, %v895_v25  ;;  %1192 = vst.msk [vmem:[%s2911_s12 + $0x8] sm:$0xff] %vm233_vm1, %v1160_v35  ;;  %v2947_v43 = vld [vmem:[#allocation2 + $0x69] sm:$0xff] }
  0x39   : > { %v2095_v62 = vadd.f32 %v2063_v39, %v2026_v52  ;;  %v2096_v63 = vadd.f32 %v2064_v44, %v2027_v53  ;;  %vm2127_vm3 = vcmp.ge.f32.partialorder %v1925_v57, 0.0  ;;  %v2159_v59 = vmul.f32 0.01, %v1925_v57 }
  0x3a   : > { %vm2128_vm4 = vcmp.ge.f32.partialorder %v1926_v58, 0.0  ;;  %v2160_v7 = vmul.f32 0.01, %v1926_v58  ;;  %v524_v27 = vadd.f32 %v492_v22, %v423_v21  ;;  %v764_v38 = vmul.f32 %v2846_v46, %v2871_v10 }
  0x3b   : > { %vm2256_vm5 = vcmp.ge.f32.partialorder %v2095_v62, 0.0  ;;  %v2288_v1 = vmul.f32 0.01, %v2095_v62  ;;  %vm2257_vm6 = vcmp.ge.f32.partialorder %v2096_v63, 0.0  ;;  %v2289_v8 = vmul.f32 0.01, %v2096_v63 }
  0x3c   : > { %v2191_v9 = vsel %vm2127_vm3, %v1925_v57, %v2159_v59  ;;  %v2192_v12 = vsel %vm2128_vm4, %v1926_v58, %v2160_v7  ;;  %v795_v39 = vadd.f32 %v763_v23, %v524_v27  ;;  %v865_v40 = vmul.f32 %v2851_v47, %v2873_v11 }
  0x3d   : > { %2556 = vst.msk [vmem:[%s2911_s12 + $0x2f0] sm:$0xff] %vm233_vm1, %v2191_v9  ;;  %2557 = vst.msk [vmem:[%s2911_s12 + $0x2f8] sm:$0xff] %vm233_vm1, %v2192_v12  ;;  %v2320_v14 = vsel %vm2256_vm5, %v2095_v62, %v2288_v1  ;;  %v2321_v15 = vsel %vm2257_vm6, %v2096_v63, %v2289_v8  ;;  %v393_v41 = vmul.f32 %v2823_v33, %v2929_v26  ;;  %v461_v1 = vld [vmem:[#allocation2 + $0x78] sm:$0xff] }
  0x3e   : > { %2588 = vst.msk [vmem:[%s2911_s12 + $0x3f0] sm:$0xff] %vm233_vm1, %v2320_v14  ;;  %2589 = vst.msk [vmem:[%s2911_s12 + $0x3f8] sm:$0xff] %vm233_vm1, %v2321_v15  ;;  %v1161_v44 = vsel %vm1097_vm9, %v895_v25, %v1129_v36  ;;  %v494_v45 = vmul.f32 %v2834_v37, %v458_v32  ;;  %v765_v48 = vmul.f32 %v2846_v46, %v2901_v51 }
  0x3f   : > { %v394_v49 = vmul.f32 %v2823_v33, %v2936_v34  ;;  %1193 = vst.msk [vmem:[%s2911_s12 + $0x10] sm:$0xff] %vm233_vm1, %v1161_v44  ;;  %v896_v50 = vadd.f32 %v864_v28, %v795_v39  ;;  %v525_v52 = vadd.f32 %v493_v30, %v424_v3  ;;  %v425_v11 = vadd.f32 %v2815_v31, %v393_v41  ;;  %v462_v28 = vld [vmem:[#allocation2 + $0x80] sm:$0xff]  ;;  %v2986_v39 = vld [vmem:[#allocation2 + $0x91] sm:$0xff] }
  0x40   : > { %v866_v53 = vmul.f32 %v2851_v47, %v456_v5  ;;  %v495_v57 = vmul.f32 %v2834_v37, %v459_v42  ;;  %v766_v58 = vmul.f32 %v2846_v46, %v2917_v18  ;;  %v395_v60 = vmul.f32 %v2823_v33, %v2947_v43 }
  0x41   : > { %v426_v56 = vadd.f32 %v2815_v31, %v394_v49  ;;  %vm1098_vm10 = vcmp.ge.f32.partialorder %v896_v50, 0.0  ;;  %v1130_v61 = vmul.f32 0.01, %v896_v50  ;;  %v796_v62 = vadd.f32 %v764_v38, %v525_v52  ;;  %v2993_v52 = vld [vmem:[#allocation2 + $0x99] sm:$0xff] }
  0x42   : > { %v526_v63 = vadd.f32 %v494_v45, %v425_v11  ;;  %v867_v5 = vmul.f32 %v2851_v47, %v457_v19  ;;  %v427_v59 = vadd.f32 %v2815_v31, %v395_v60  ;;  %v496_v7 = vmul.f32 %v2834_v37, %v460_v55  ;;  %v2976_v19 = vld [vmem:[#allocation2 + $0x81] sm:$0xff]  ;;  %v463_v45 = vld [vmem:[#allocation2 + $0x90] sm:$0xff] }
  0x43   : > { %v527_v0 = vadd.f32 %v495_v57, %v426_v56  ;;  %v1162_v8 = vsel %vm1098_vm10, %v896_v50, %v1130_v61  ;;  %v897_v9 = vadd.f32 %v865_v40, %v796_v62  ;;  %v767_v13 = vmul.f32 %v2846_v46, %v2929_v26  ;;  %v464_v57 = vld [vmem:[#allocation2 + $0x98] sm:$0xff] }
  0x44   : > { %v797_v12 = vadd.f32 %v765_v48, %v526_v63  ;;  %1194 = vst.msk [vmem:[%s2911_s12 + $0x18] sm:$0xff] %vm233_vm1, %v1162_v8  ;;  %v528_v15 = vadd.f32 %v496_v7, %v427_v59  ;;  %v868_v16 = vmul.f32 %v2851_v47, %v458_v32  ;;  %v396_v17 = vmul.f32 %v2823_v33, %v2964_v6  ;;  %v3005_v63 = vld [vmem:[#allocation2 + $0xa9] sm:$0xff] }
  0x45   : > { %v798_v14 = vadd.f32 %v766_v58, %v527_v0  ;;  %vm1099_vm11 = vcmp.ge.f32.partialorder %v897_v9, 0.0  ;;  %v1131_v20 = vmul.f32 0.01, %v897_v9  ;;  %v497_v22 = vmul.f32 %v2834_v37, %v461_v1  ;;  %v465_v7 = vld [vmem:[#allocation2 + $0xa8] sm:$0xff] }
  0x46   : > { %v898_v21 = vadd.f32 %v866_v53, %v797_v12  ;;  %v799_v25 = vadd.f32 %v767_v13, %v528_v15  ;;  %v428_v23 = vadd.f32 %v2815_v31, %v396_v17  ;;  %v768_v27 = vmul.f32 %v2846_v46, %v2936_v34  ;;  %v466_v17 = vld [vmem:[#allocation2 + $0xb0] sm:$0xff] }
  0x47   : > { %v899_v24 = vadd.f32 %v867_v5, %v798_v14  ;;  %v1163_v29 = vsel %vm1099_vm11, %v897_v9, %v1131_v20  ;;  %v397_v32 = vmul.f32 %v2823_v33, %v2976_v19  ;;  %v869_v40 = vmul.f32 %v2851_v47, %v459_v42 }
  0x48   : > { %vm1100_vm12 = vcmp.ge.f32.partialorder %v898_v21, 0.0  ;;  %v1132_v30 = vmul.f32 0.01, %v898_v21  ;;  %1195 = vst.msk [vmem:[%s2911_s12 + $0x20] sm:$0xff] %vm233_vm1, %v1163_v29  ;;  %v900_v36 = vadd.f32 %v868_v16, %v799_v25  ;;  %v529_v38 = vadd.f32 %v497_v22, %v428_v23  ;;  %v3027_v29 = vld [vmem:[#allocation2 + $0xc1] sm:$0xff] }
  0x49   : > { %vm1101_vm13 = vcmp.ge.f32.partialorder %v899_v24, 0.0  ;;  %v1133_v35 = vmul.f32 0.01, %v899_v24  ;;  %v429_v41 = vadd.f32 %v2815_v31, %v397_v32  ;;  %v498_v44 = vmul.f32 %v2834_v37, %v462_v28 }
  0x4a   : > { %v1164_v3 = vsel %vm1100_vm12, %v898_v21, %v1132_v30  ;;  %vm1102_vm14 = vcmp.ge.f32.partialorder %v900_v36, 0.0  ;;  %v1134_v49 = vmul.f32 0.01, %v900_v36  ;;  %v800_v50 = vadd.f32 %v768_v27, %v529_v38 }
  0x4b   : > { %1196 = vst.msk [vmem:[%s2911_s12 + $0x28] sm:$0xff] %vm233_vm1, %v1164_v3  ;;  %v1165_v48 = vsel %vm1101_vm13, %v899_v24, %v1133_v35  ;;  %v530_v11 = vadd.f32 %v498_v44, %v429_v41  ;;  %v769_v42 = vmul.f32 %v2846_v46, %v2947_v43  ;;  %v870_v53 = vmul.f32 %v2851_v47, %v460_v55 }
  0x4c   : > { %1197 = vst.msk [vmem:[%s2911_s12 + $0x30] sm:$0xff] %vm233_vm1, %v1165_v48  ;;  %v398_v56 = vmul.f32 %v2823_v33, %v2986_v39  ;;  %v1166_v58 = vsel %vm1102_vm14, %v900_v36, %v1134_v49  ;;  %v901_v60 = vadd.f32 %v869_v40, %v800_v50  ;;  %v499_v61 = vmul.f32 %v2834_v37, %v463_v45  ;;  %v467_v36 = vld [vmem:[#allocation2 + $0xc0] sm:$0xff]  ;;  %v3042_v50 = vld [vmem:[#allocation2 + $0xc9] sm:$0xff] }
  0x4d   : > { %v770_v62 = vmul.f32 %v2846_v46, %v2964_v6  ;;  %1198 = vst.msk [vmem:[%s2911_s12 + $0x38] sm:$0xff] %vm233_vm1, %v1166_v58  ;;  %v801_v0 = vadd.f32 %v769_v42, %v530_v11  ;;  %v871_v55 = vmul.f32 %v2851_v47, %v461_v1  ;;  %v399_v59 = vmul.f32 %v2823_v33, %v2993_v52  ;;  %v3019_v1 = vld [vmem:[#allocation2 + $0xb1] sm:$0xff] }
  0x4e   : > { %v430_v5 = vadd.f32 %v2815_v31, %v398_v56  ;;  %vm1103_vm15 = vcmp.ge.f32.partialorder %v901_v60, 0.0  ;;  %v1135_v8 = vmul.f32 0.01, %v901_v60  ;;  %v500_v9 = vmul.f32 %v2834_v37, %v464_v57 }
  0x4f   : > { %v771_v12 = vmul.f32 %v2846_v46, %v2976_v19  ;;  %v902_v13 = vadd.f32 %v870_v53, %v801_v0  ;;  %v431_v15 = vadd.f32 %v2815_v31, %v399_v59  ;;  %v400_v16 = vmul.f32 %v2823_v33, %v3005_v63 }
  0x50   : > { %v531_v14 = vadd.f32 %v499_v61, %v430_v5  ;;  %v1167_v20 = vsel %vm1103_vm15, %v901_v60, %v1135_v8  ;;  %v872_v21 = vmul.f32 %v2851_v47, %v462_v28  ;;  %v501_v22 = vmul.f32 %v2834_v37, %v465_v7 }
  0x51   : > { %v772_v24 = vmul.f32 %v2846_v46, %v2986_v39  ;;  %1199 = vst.msk [vmem:[%s2911_s12 + $0x40] sm:$0xff] %vm233_vm1, %v1167_v20  ;;  %vm1104_vm0 = vcmp.ge.f32.partialorder %v902_v13, 0.0  ;;  %v1136_v25 = vmul.f32 0.01, %v902_v13  ;;  %v532_v27 = vadd.f32 %v500_v9, %v431_v15 }
  0x52   : > { %v802_v23 = vadd.f32 %v770_v62, %v531_v14  ;;  %v432_v30 = vadd.f32 %v2815_v31, %v400_v16  ;;  %v873_v32 = vmul.f32 %v2851_v47, %v463_v45  ;;  %v401_v28 = vmul.f32 %v2823_v33, %v3019_v1  ;;  %v468_v62 = vld [vmem:[#allocation2 + $0xc8] sm:$0xff] }
  0x53   : > { %v502_v35 = vmul.f32 %v2834_v37, %v466_v17  ;;  %v1168_v38 = vsel %vm1104_vm0, %v902_v13, %v1136_v25  ;;  %v803_v40 = vadd.f32 %v771_v12, %v532_v27  ;;  %v773_v41 = vmul.f32 %v2846_v46, %v2993_v52  ;;  %v3053_v12 = vld [vmem:[#allocation2 + $0xd9] sm:$0xff]  ;;  %v3061_v25 = vld [vmem:[#allocation2 + $0xe1] sm:$0xff] }
  0x54   : > { %v903_v3 = vadd.f32 %v871_v55, %v802_v23  ;;  %1200 = vst.msk [vmem:[%s2911_s12 + $0x48] sm:$0xff] %vm233_vm1, %v1168_v38  ;;  %v533_v44 = vadd.f32 %v501_v22, %v432_v30  ;;  %v433_v48 = vadd.f32 %v2815_v31, %v401_v28  ;;  %v874_v49 = vmul.f32 %v2851_v47, %v464_v57  ;;  %v469_v13 = vld [vmem:[#allocation2 + $0xd8] sm:$0xff]  ;;  %v470_v38 = vld [vmem:[#allocation2 + $0xe0] sm:$0xff] }
  0x55   : > { %v402_v45 = vmul.f32 %v2823_v33, %v3027_v29  ;;  %v904_v42 = vadd.f32 %v872_v21, %v803_v40  ;;  %v503_v53 = vmul.f32 %v2834_v37, %v467_v36  ;;  %v774_v61 = vmul.f32 %v2846_v46, %v3005_v63 }
  0x56   : > { %vm1105_vm2 = vcmp.ge.f32.partialorder %v903_v3, 0.0  ;;  %v1137_v11 = vmul.f32 0.01, %v903_v3  ;;  %v804_v56 = vadd.f32 %v772_v24, %v533_v44  ;;  %v534_v58 = vadd.f32 %v502_v35, %v433_v48  ;;  %v3074_v44 = vld [vmem:[#allocation2 + $0xf1] sm:$0xff] }
  0x57   : > { %v434_v60 = vadd.f32 %v2815_v31, %v402_v45  ;;  %vm1106_vm3 = vcmp.ge.f32.partialorder %v904_v42, 0.0  ;;  %v1138_v0 = vmul.f32 0.01, %v904_v42  ;;  %v403_v5 = vmul.f32 %v2823_v33, %v3042_v50 }
  0x58   : > { %v1169_v57 = vsel %vm1105_vm2, %v903_v3, %v1137_v11  ;;  %v905_v55 = vadd.f32 %v873_v32, %v804_v56  ;;  %v805_v59 = vadd.f32 %v773_v41, %v534_v58  ;;  %v875_v9 = vmul.f32 %v2851_v47, %v465_v7  ;;  %v471_v58 = vld [vmem:[#allocation2 + $0xf0] sm:$0xff] }
  0x59   : > { %1201 = vst.msk [vmem:[%s2911_s12 + $0x50] sm:$0xff] %vm233_vm1, %v1169_v57  ;;  %v535_v8 = vadd.f32 %v503_v53, %v434_v60  ;;  %v1170_v14 = vsel %vm1106_vm3, %v904_v42, %v1138_v0  ;;  %v435_v15 = vadd.f32 %v2815_v31, %v403_v5  ;;  %v504_v16 = vmul.f32 %v2834_v37, %v468_v62  ;;  %v3081_v60 = vld [vmem:[#allocation2 + $0xf9] sm:$0xff] }
  0x5a   : > { %v775_v20 = vmul.f32 %v2846_v46, %v3019_v1  ;;  %1202 = vst.msk [vmem:[%s2911_s12 + $0x58] sm:$0xff] %vm233_vm1, %v1170_v14  ;;  %vm1107_vm4 = vcmp.ge.f32.partialorder %v905_v55, 0.0  ;;  %v1139_v21 = vmul.f32 0.01, %v905_v55  ;;  %v906_v22 = vadd.f32 %v874_v49, %v805_v59 }
  0x5b   : > { %v806_v24 = vadd.f32 %v774_v61, %v535_v8  ;;  %v536_v7 = vadd.f32 %v504_v16, %v435_v15  ;;  %v876_v23 = vmul.f32 %v2851_v47, %v466_v17  ;;  %v404_v27 = vmul.f32 %v2823_v33, %v3053_v12  ;;  %v472_v8 = vld [vmem:[#allocation2 + $0xf8] sm:$0xff]  ;;  %v3096_v16 = vld [vmem:[#allocation2 + $0x109] sm:$0xff] }
  0x5c   : > { %v505_v30 = vmul.f32 %v2834_v37, %v469_v13  ;;  %v1171_v32 = vsel %vm1107_vm4, %v905_v55, %v1139_v21  ;;  %vm1108_vm5 = vcmp.ge.f32.partialorder %v906_v22, 0.0  ;;  %v1140_v28 = vmul.f32 0.01, %v906_v22 }
  0x5d   : > { %v907_v35 = vadd.f32 %v875_v9, %v806_v24  ;;  %1203 = vst.msk [vmem:[%s2911_s12 + $0x60] sm:$0xff] %vm233_vm1, %v1171_v32  ;;  %v807_v3 = vadd.f32 %v775_v20, %v536_v7  ;;  %v436_v40 = vadd.f32 %v2815_v31, %v404_v27  ;;  %v776_v41 = vmul.f32 %v2846_v46, %v3027_v29  ;;  %v473_v7 = vld [vmem:[#allocation2 + $0x108] sm:$0xff] }
  0x5e   : > { %v405_v17 = vmul.f32 %v2823_v33, %v3061_v25  ;;  %v1172_v48 = vsel %vm1108_vm5, %v906_v22, %v1140_v28  ;;  %v877_v45 = vmul.f32 %v2851_v47, %v467_v36  ;;  %v506_v56 = vmul.f32 %v2834_v37, %v470_v38 }
  0x5f   : > { %vm1109_vm6 = vcmp.ge.f32.partialorder %v907_v35, 0.0  ;;  %v1141_v49 = vmul.f32 0.01, %v907_v35  ;;  %1204 = vst.msk [vmem:[%s2911_s12 + $0x68] sm:$0xff] %vm233_vm1, %v1172_v48  ;;  %v908_v11 = vadd.f32 %v876_v23, %v807_v3  ;;  %v537_v42 = vadd.f32 %v505_v30, %v436_v40  ;;  %v3107_v40 = vld [vmem:[#allocation2 + $0x111] sm:$0xff] }
  0x60   : > { %v437_v53 = vadd.f32 %v2815_v31, %v405_v17  ;;  %v777_v57 = vmul.f32 %v2846_v46, %v3042_v50  ;;  %v878_v0 = vmul.f32 %v2851_v47, %v468_v62  ;;  %v406_v36 = vmul.f32 %v2823_v33, %v3074_v44 }
  0x61   : > { %v1173_v61 = vsel %vm1109_vm6, %v907_v35, %v1141_v49  ;;  %vm1110_vm7 = vcmp.ge.f32.partialorder %v908_v11, 0.0  ;;  %v1142_v5 = vmul.f32 0.01, %v908_v11  ;;  %v808_v55 = vadd.f32 %v776_v41, %v537_v42  ;;  %v474_v49 = vld [vmem:[#allocation2 + $0x110] sm:$0xff] }
  0x62   : > { %1205 = vst.msk [vmem:[%s2911_s12 + $0x70] sm:$0xff] %vm233_vm1, %v1173_v61  ;;  %v538_v59 = vadd.f32 %v506_v56, %v437_v53  ;;  %v438_v9 = vadd.f32 %v2815_v31, %v406_v36  ;;  %v507_v14 = vmul.f32 %v2834_v37, %v471_v58  ;;  %v778_v15 = vmul.f32 %v2846_v46, %v3053_v12 }
  0x63   : > { %v407_v62 = vmul.f32 %v2823_v33, %v3081_v60  ;;  %v1174_v20 = vsel %vm1110_vm7, %v908_v11, %v1142_v5  ;;  %v909_v21 = vadd.f32 %v877_v45, %v808_v55  ;;  %v879_v24 = vmul.f32 %v2851_v47, %v469_v13 }
  0x64   : > { %v809_v22 = vadd.f32 %v777_v57, %v538_v59  ;;  %1206 = vst.msk [vmem:[%s2911_s12 + $0x78] sm:$0xff] %vm233_vm1, %v1174_v20  ;;  %v539_v23 = vadd.f32 %v507_v14, %v438_v9  ;;  %v508_v30 = vmul.f32 %v2834_v37, %v472_v8  ;;  %v779_v32 = vmul.f32 %v2846_v46, %v3061_v25 }
  0x65   : > { %v439_v27 = vadd.f32 %v2815_v31, %v407_v62  ;;  %vm1111_vm8 = vcmp.ge.f32.partialorder %v909_v21, 0.0  ;;  %v1143_v28 = vmul.f32 0.01, %v909_v21  ;;  %v408_v3 = vmul.f32 %v2823_v33, %v3096_v16 }
  0x66   : > { %v910_v35 = vadd.f32 %v878_v0, %v809_v22  ;;  %v810_v13 = vadd.f32 %v778_v15, %v539_v23  ;;  %v880_v17 = vmul.f32 %v2851_v47, %v470_v38  ;;  %v509_v48 = vmul.f32 %v2834_v37, %v473_v7  ;;  %v3118_v38 = vld [vmem:[#allocation2 + $0x121] sm:$0xff]  ;;  %v3130_v22 = vld [vmem:[#allocation2 + $0x129] sm:$0xff] }
  0x67   : > { %v540_v41 = vadd.f32 %v508_v30, %v439_v27  ;;  %v1175_v45 = vsel %vm1111_vm8, %v909_v21, %v1143_v28  ;;  %v440_v42 = vadd.f32 %v2815_v31, %v408_v3  ;;  %v780_v61 = vmul.f32 %v2846_v46, %v3074_v44  ;;  %v475_v15 = vld [vmem:[#allocation2 + $0x120] sm:$0xff]  ;;  %v476_v30 = vld [vmem:[#allocation2 + $0x128] sm:$0xff] }
  0x68   : > { %vm1112_vm9 = vcmp.ge.f32.partialorder %v910_v35, 0.0  ;;  %v1144_v11 = vmul.f32 0.01, %v910_v35  ;;  %1207 = vst.msk [vmem:[%s2911_s12 + $0x80] sm:$0xff] %vm233_vm1, %v1175_v45  ;;  %v911_v53 = vadd.f32 %v879_v24, %v810_v13  ;;  %v409_v57 = vmul.f32 %v2823_v33, %v3107_v40  ;;  %v3138_v3 = vld [vmem:[#allocation2 + $0x139] sm:$0xff] }
  0x69   : > { %v811_v56 = vadd.f32 %v779_v32, %v540_v41  ;;  %v541_v36 = vadd.f32 %v509_v48, %v440_v42  ;;  %v881_v5 = vmul.f32 %v2851_v47, %v471_v58  ;;  %v510_v55 = vmul.f32 %v2834_v37, %v474_v49  ;;  %v477_v45 = vld [vmem:[#allocation2 + $0x138] sm:$0xff] }
  0x6a   : > { %v1176_v0 = vsel %vm1112_vm9, %v910_v35, %v1144_v11  ;;  %vm1113_vm10 = vcmp.ge.f32.partialorder %v911_v53, 0.0  ;;  %v1145_v59 = vmul.f32 0.01, %v911_v53  ;;  %v441_v14 = vadd.f32 %v2815_v31, %v409_v57 }
  0x6b   : > { %1208 = vst.msk [vmem:[%s2911_s12 + $0x88] sm:$0xff] %vm233_vm1, %v1176_v0  ;;  %v912_v9 = vadd.f32 %v880_v17, %v811_v56  ;;  %v812_v62 = vadd.f32 %v780_v61, %v541_v36  ;;  %v781_v20 = vmul.f32 %v2846_v46, %v3081_v60  ;;  %v882_v21 = vmul.f32 %v2851_v47, %v472_v8  ;;  %v3151_v0 = vld [vmem:[#allocation2 + $0x141] sm:$0xff] }
  0x6c   : > { %v410_v58 = vmul.f32 %v2823_v33, %v3118_v38  ;;  %v1177_v24 = vsel %vm1113_vm10, %v911_v53, %v1145_v59  ;;  %v542_v27 = vadd.f32 %v510_v55, %v441_v14  ;;  %v511_v35 = vmul.f32 %v2834_v37, %v475_v15 }
  0x6d   : > { %vm1114_vm11 = vcmp.ge.f32.partialorder %v912_v9, 0.0  ;;  %v1146_v23 = vmul.f32 0.01, %v912_v9  ;;  %1209 = vst.msk [vmem:[%s2911_s12 + $0x90] sm:$0xff] %vm233_vm1, %v1177_v24  ;;  %v913_v32 = vadd.f32 %v881_v5, %v812_v62  ;;  %v782_v8 = vmul.f32 %v2846_v46, %v3096_v16 }
  0x6e   : > { %v442_v28 = vadd.f32 %v2815_v31, %v410_v58  ;;  %v813_v41 = vadd.f32 %v781_v20, %v542_v27  ;;  %v883_v17 = vmul.f32 %v2851_v47, %v473_v7  ;;  %v411_v48 = vmul.f32 %v2823_v33, %v3130_v22 }
  0x6f   : > { %v1178_v13 = vsel %vm1114_vm11, %v912_v9, %v1146_v23  ;;  %vm1115_vm12 = vcmp.ge.f32.partialorder %v913_v32, 0.0  ;;  %v1147_v11 = vmul.f32 0.01, %v913_v32  ;;  %v512_v53 = vmul.f32 %v2834_v37, %v476_v30  ;;  %v478_v9 = vld [vmem:[#allocation2 + $0x140] sm:$0xff]  ;;  %v3163_v23 = vld [vmem:[#allocation2 + $0x151] sm:$0xff] }
  0x70   : > { %1210 = vst.msk [vmem:[%s2911_s12 + $0x98] sm:$0xff] %vm233_vm1, %v1178_v13  ;;  %v543_v42 = vadd.f32 %v511_v35, %v442_v28  ;;  %v914_v56 = vadd.f32 %v882_v21, %v813_v41  ;;  %v443_v61 = vadd.f32 %v2815_v31, %v411_v48  ;;  %v783_v57 = vmul.f32 %v2846_v46, %v3107_v40 }
  0x71   : > { %v412_v7 = vmul.f32 %v2823_v33, %v3138_v3  ;;  %v1179_v36 = vsel %vm1115_vm12, %v913_v32, %v1147_v11  ;;  %v884_v55 = vmul.f32 %v2851_v47, %v474_v49  ;;  %v513_v59 = vmul.f32 %v2834_v37, %v477_v45 }
  0x72   : > { %v814_v5 = vadd.f32 %v782_v8, %v543_v42  ;;  %1211 = vst.msk [vmem:[%s2911_s12 + $0xa0] sm:$0xff] %vm233_vm1, %v1179_v36  ;;  %vm1116_vm13 = vcmp.ge.f32.partialorder %v914_v56, 0.0  ;;  %v1148_v14 = vmul.f32 0.01, %v914_v56  ;;  %v544_v62 = vadd.f32 %v512_v53, %v443_v61  ;;  %v479_v8 = vld [vmem:[#allocation2 + $0x150] sm:$0xff]  ;;  %v3174_v53 = vld [vmem:[#allocation2 + $0x159] sm:$0xff] }
  0x73   : > { %v444_v20 = vadd.f32 %v2815_v31, %v412_v7  ;;  %v784_v58 = vmul.f32 %v2846_v46, %v3118_v38  ;;  %v885_v24 = vmul.f32 %v2851_v47, %v475_v15  ;;  %v413_v49 = vmul.f32 %v2823_v33, %v3151_v0 }
  0x74   : > { %v915_v21 = vadd.f32 %v883_v17, %v814_v5  ;;  %v1180_v27 = vsel %vm1116_vm13, %v914_v56, %v1148_v14  ;;  %v815_v32 = vadd.f32 %v783_v57, %v544_v62  ;;  %v514_v35 = vmul.f32 %v2834_v37, %v478_v9  ;;  %v480_v56 = vld [vmem:[#allocation2 + $0x158] sm:$0xff] }
  0x75   : > { %v545_v28 = vadd.f32 %v513_v59, %v444_v20  ;;  %1212 = vst.msk [vmem:[%s2911_s12 + $0xa8] sm:$0xff] %vm233_vm1, %v1180_v27  ;;  %v445_v41 = vadd.f32 %v2815_v31, %v413_v49  ;;  %v785_v15 = vmul.f32 %v2846_v46, %v3130_v22  ;;  %v886_v11 = vmul.f32 %v2851_v47, %v476_v30  ;;  %v3182_v59 = vld [vmem:[#allocation2 + $0x169] sm:$0xff] }
  0x76   : > { %vm1117_vm14 = vcmp.ge.f32.partialorder %v915_v21, 0.0  ;;  %v1149_v13 = vmul.f32 0.01, %v915_v21  ;;  %v916_v17 = vadd.f32 %v884_v55, %v815_v32  ;;  %v414_v42 = vmul.f32 %v2823_v33, %v3163_v23 }
  0x77   : > { %v816_v48 = vadd.f32 %v784_v58, %v545_v28  ;;  %v546_v57 = vadd.f32 %v514_v35, %v445_v41  ;;  %v515_v7 = vmul.f32 %v2834_v37, %v479_v8  ;;  %v786_v36 = vmul.f32 %v2846_v46, %v3138_v3  ;;  %v481_v58 = vld [vmem:[#allocation2 + $0x168] sm:$0xff] }
  0x78   : > { %v1181_v61 = vsel %vm1117_vm14, %v915_v21, %v1149_v13  ;;  %vm1118_vm15 = vcmp.ge.f32.partialorder %v916_v17, 0.0  ;;  %v1150_v5 = vmul.f32 0.01, %v916_v17  ;;  %v446_v30 = vadd.f32 %v2815_v31, %v414_v42  ;;  %v3195_v13 = vld [vmem:[#allocation2 + $0x171] sm:$0xff] }
  0x79   : > { %1213 = vst.msk [vmem:[%s2911_s12 + $0xb0] sm:$0xff] %vm233_vm1, %v1181_v61  ;;  %v917_v55 = vadd.f32 %v885_v24, %v816_v48  ;;  %v817_v14 = vadd.f32 %v785_v15, %v546_v57  ;;  %v887_v62 = vmul.f32 %v2851_v47, %v477_v45  ;;  %v415_v20 = vmul.f32 %v2823_v33, %v3174_v53  ;;  %v3199_v42 = vld [vmem:[#allocation2 + $0x170] sm:$0xff] }
  0x7a   : > { %v516_v21 = vmul.f32 %v2834_v37, %v480_v56  ;;  %v1182_v49 = vsel %vm1118_vm15, %v916_v17, %v1150_v5  ;;  %v547_v32 = vadd.f32 %v515_v7, %v446_v30  ;;  %v787_v35 = vmul.f32 %v2846_v46, %v3151_v0 }
  0x7b   : > { %vm1119_vm0 = vcmp.ge.f32.partialorder %v917_v55, 0.0  ;;  %v1151_v27 = vmul.f32 0.01, %v917_v55  ;;  %1214 = vst.msk [vmem:[%s2911_s12 + $0xb8] sm:$0xff] %vm233_vm1, %v1182_v49  ;;  %v918_v24 = vadd.f32 %v886_v11, %v817_v14  ;;  %v447_v28 = vadd.f32 %v2815_v31, %v415_v20 }
  0x7c   : > { %v416_v45 = vmul.f32 %v2823_v33, %v3182_v59  ;;  %v818_v15 = vadd.f32 %v786_v36, %v547_v32  ;;  %v888_v17 = vmul.f32 %v2851_v47, %v478_v9  ;;  %v517_v48 = vmul.f32 %v2834_v37, %v481_v58 }
  0x7d   : > { %v1183_v41 = vsel %vm1119_vm0, %v917_v55, %v1151_v27  ;;  %vm1120_vm2 = vcmp.ge.f32.partialorder %v918_v24, 0.0  ;;  %v1152_v11 = vmul.f32 0.01, %v918_v24  ;;  %v548_v61 = vadd.f32 %v516_v21, %v447_v28  ;;  %v3209_v55 = vld [vmem:[#allocation2 + $0x181] sm:$0xff] }
  0x7e   : > { %1215 = vst.msk [vmem:[%s2911_s12 + $0xc0] sm:$0xff] %vm233_vm1, %v1183_v41  ;;  %v448_v57 = vadd.f32 %v2815_v31, %v416_v45  ;;  %v919_v7 = vadd.f32 %v887_v62, %v818_v15  ;;  %v788_v5 = vmul.f32 %v2846_v46, %v3163_v23  ;;  %v889_v36 = vmul.f32 %v2851_v47, %v479_v8  ;;  %v483_v21 = vld [vmem:[#allocation2 + $0x180] sm:$0xff]  ;;  %v3221_v45 = vld [vmem:[#allocation2 + $0x189] sm:$0xff] }
  0x7f   : > { %v417_v9 = vmul.f32 %v2823_v33, %v3195_v13  ;;  %v1184_v30 = vsel %vm1120_vm2, %v918_v24, %v1152_v11  ;;  %v819_v14 = vadd.f32 %v787_v35, %v548_v61  ;;  %v518_v49 = vmul.f32 %v2834_v37, %v3199_v42  ;;  %v484_v41 = vld [vmem:[#allocation2 + $0x188] sm:$0xff] }
  0x80   : > { %v549_v20 = vadd.f32 %v517_v48, %v448_v57  ;;  %1216 = vst.msk [vmem:[%s2911_s12 + $0xc8] sm:$0xff] %vm233_vm1, %v1184_v30  ;;  %vm1121_vm3 = vcmp.ge.f32.partialorder %v919_v7, 0.0  ;;  %v1153_v62 = vmul.f32 0.01, %v919_v7  ;;  %v789_v8 = vmul.f32 %v2846_v46, %v3174_v53 }
  0x81   : > { %v449_v27 = vadd.f32 %v2815_v31, %v417_v9  ;;  %v920_v32 = vadd.f32 %v888_v17, %v819_v14  ;;  %v890_v24 = vmul.f32 %v2851_v47, %v480_v56  ;;  %v418_v35 = vmul.f32 %v2823_v33, %v3209_v55 }
  0x82   : > { %v820_v28 = vadd.f32 %v788_v5, %v549_v20  ;;  %v1185_v15 = vsel %vm1121_vm3, %v919_v7, %v1153_v62  ;;  %v519_v11 = vmul.f32 %v2834_v37, %v483_v21  ;;  %v790_v61 = vmul.f32 %v2846_v46, %v3182_v59  ;;  %v3232_v5 = vld [vmem:[%s4219_s0 + $0x4] ss:$0 sm:$0xff]  ;;  %v554_v7 = vld [vmem:[#allocation2 + $0x1a] sm:$0xff] }
  0x83   : > { %v550_v48 = vadd.f32 %v518_v49, %v449_v27  ;;  %1217 = vst.msk [vmem:[%s2911_s12 + $0xd0] sm:$0xff] %vm233_vm1, %v1185_v15  ;;  %vm1122_vm4 = vcmp.ge.f32.partialorder %v920_v32, 0.0  ;;  %v1154_v17 = vmul.f32 0.01, %v920_v32  ;;  %v450_v56 = vadd.f32 %v2815_v31, %v418_v35  ;;  %v926_v31 = vld [vmem:[#allocation2 + $0x2] sm:$0xff] }
  0x84   : > { %v921_v57 = vadd.f32 %v889_v36, %v820_v28  ;;  %v891_v30 = vmul.f32 %v2851_v47, %v481_v58  ;;  %v419_v14 = vmul.f32 %v2823_v33, %v3221_v45  ;;  %v520_v20 = vmul.f32 %v2834_v37, %v484_v41  ;;  %v3241_v36 = vld [vmem:[%s4219_s0 + $0x6] ss:$0 sm:$0xff]  ;;  %v3248_v33 = vld [vmem:[%s4220_s1] ss:$0 sm:$0xff] }
  0x85   : > { %v821_v9 = vadd.f32 %v789_v8, %v550_v48  ;;  %v1186_v49 = vsel %vm1122_vm4, %v920_v32, %v1154_v17  ;;  %v551_v62 = vadd.f32 %v519_v11, %v450_v56  ;;  %v791_v58 = vmul.f32 %v2846_v46, %v3195_v13  ;;  %v3257_v32 = vld [vmem:[%s4219_s0 + $0xc] ss:$0 sm:$0xff]  ;;  %v555_v28 = vld [vmem:[#allocation2 + $0x22] sm:$0xff] }
  0x86   : > { %vm1123_vm5 = vcmp.ge.f32.partialorder %v921_v57, 0.0  ;;  %v1155_v21 = vmul.f32 0.01, %v921_v57  ;;  %1218 = vst.msk [vmem:[%s2911_s12 + $0xd8] sm:$0xff] %vm233_vm1, %v1186_v49  ;;  %v451_v37 = vadd.f32 %v3248_v33, %v419_v14  ;;  %v590_v8 = vmul.f32 %v3232_v5, %v554_v7  ;;  %v927_v17 = vld [vmem:[#allocation2 + $0xa] sm:$0xff] }
  0x87   : > { %v922_v27 = vadd.f32 %v890_v24, %v821_v9  ;;  %v822_v24 = vadd.f32 %v790_v61, %v551_v62  ;;  %v659_v41 = vmul.f32 %v3241_v36, %v2853_v54  ;;  %v962_v15 = vmul.f32 %v3257_v32, %v926_v31 }
  0x88   : > { %v1187_v35 = vsel %vm1123_vm5, %v921_v57, %v1155_v21  ;;  %v552_v48 = vadd.f32 %v520_v20, %v451_v37  ;;  %v622_v11 = vadd.f32 %v3248_v33, %v590_v8  ;;  %v892_v9 = vmul.f32 %v2851_v47, %v3199_v42  ;;  %v556_v57 = vld [vmem:[#allocation2 + $0x32] sm:$0xff] }
  0x89   : > { %1219 = vst.msk [vmem:[%s2911_s12 + $0xe0] sm:$0xff] %vm233_vm1, %v1187_v35  ;;  %vm1124_vm6 = vcmp.ge.f32.partialorder %v922_v27, 0.0  ;;  %v1156_v46 = vmul.f32 0.01, %v922_v27  ;;  %v923_v56 = vadd.f32 %v891_v30, %v822_v24  ;;  %v591_v61 = vmul.f32 %v3232_v5, %v555_v28  ;;  %v3275_v30 = vld [vmem:[%s4219_s0 + $0xe] ss:$0 sm:$0xff] }
  0x8a   : > { %v823_v54 = vadd.f32 %v791_v58, %v552_v48  ;;  %v691_v49 = vadd.f32 %v659_v41, %v622_v11  ;;  %v660_v31 = vmul.f32 %v3241_v36, %v2862_v2  ;;  %v963_v42 = vmul.f32 %v3257_v32, %v927_v17  ;;  %v557_v58 = vld [vmem:[#allocation2 + $0x3a] sm:$0xff]  ;;  %v558_v11 = vld [vmem:[#allocation2 + $0x4a] sm:$0xff] }
  0x8b   : > { %v1188_v14 = vsel %vm1124_vm6, %v922_v27, %v1156_v46  ;;  %vm1125_vm7 = vcmp.ge.f32.partialorder %v923_v56, 0.0  ;;  %v1157_v20 = vmul.f32 0.01, %v923_v56  ;;  %v623_v47 = vadd.f32 %v3248_v33, %v591_v61  ;;  %v2620_v27 = vld [vmem:[#allocation2 + $0x1] sm:$0xff] }
  0x8c   : > { %1220 = vst.msk [vmem:[%s2911_s12 + $0xe8] sm:$0xff] %vm233_vm1, %v1188_v14  ;;  %v924_v21 = vadd.f32 %v892_v9, %v823_v54  ;;  %v994_v62 = vadd.f32 %v962_v15, %v691_v49  ;;  %v1031_v37 = vmul.f32 %v2620_v27, %v3275_v30  ;;  %v592_v2 = vmul.f32 %v3232_v5, %v556_v57 }
  0x8d   : > { %v1189_v8 = vsel %vm1125_vm7, %v923_v56, %v1157_v20  ;;  %v692_v35 = vadd.f32 %v660_v31, %v623_v47  ;;  %v1032_v24 = vmul.f32 %v3275_v30, %v2866_v4  ;;  %v661_v41 = vmul.f32 %v3241_v36, %v2871_v10  ;;  %v2621_v56 = vld [vmem:[#allocation2 + $0x19] sm:$0xff] }
  0x8e   : > { %1221 = vst.msk [vmem:[%s2911_s12 + $0xf0] sm:$0xff] %vm233_vm1, %v1189_v8  ;;  %vm1126_vm8 = vcmp.ge.f32.partialorder %v924_v21, 0.0  ;;  %v1158_v46 = vmul.f32 0.01, %v924_v21  ;;  %v1063_v15 = vadd.f32 %v1031_v37, %v994_v62  ;;  %v624_v48 = vadd.f32 %v3248_v33, %v592_v2  ;;  %v559_v47 = vld [vmem:[#allocation2 + $0x52] sm:$0xff] }
  0x8f   : > { %v995_v17 = vadd.f32 %v963_v42, %v692_v35  ;;  %v964_v9 = vmul.f32 %v3257_v32, %v554_v7  ;;  %v1033_v61 = vmul.f32 %v2621_v56, %v3275_v30  ;;  %v593_v4 = vmul.f32 %v3232_v5, %v557_v58 }
  0x90   : > { %v1190_v14 = vsel %vm1126_vm8, %v924_v21, %v1158_v46  ;;  %vm1223_vm9 = vcmp.ge.f32.partialorder %v1063_v15, 0.0  ;;  %v1255_v10 = vmul.f32 0.01, %v1063_v15  ;;  %v693_v54 = vadd.f32 %v661_v41, %v624_v48 }
  0x91   : > { %1222 = vst.msk [vmem:[%s2911_s12 + $0xf8] sm:$0xff] %vm233_vm1, %v1190_v14  ;;  %v1064_v49 = vadd.f32 %v1032_v24, %v995_v17  ;;  %v625_v31 = vadd.f32 %v3248_v33, %v593_v4  ;;  %v662_v20 = vmul.f32 %v3241_v36, %v2901_v51  ;;  %v594_v7 = vmul.f32 %v3232_v5, %v558_v11  ;;  %v2622_v51 = vld [vmem:[#allocation2 + $0x21] sm:$0xff] }
  0x92   : > { %v1287_v42 = vsel %vm1223_vm9, %v1063_v15, %v1255_v10  ;;  %v996_v62 = vadd.f32 %v964_v9, %v693_v54  ;;  %v965_v27 = vmul.f32 %v3257_v32, %v555_v28  ;;  %v663_v21 = vmul.f32 %v3241_v36, %v2917_v18  ;;  %v560_v28 = vld [vmem:[#allocation2 + $0x62] sm:$0xff]  ;;  %v2623_v9 = vld [vmem:[#allocation2 + $0x31] sm:$0xff] }
  0x93   : > { %2486 = vst.msk [vmem:[%s2911_s12 + $0x100] sm:$0xff] %vm233_vm1, %v1287_v42  ;;  %vm1224_vm10 = vcmp.ge.f32.partialorder %v1064_v49, 0.0  ;;  %v1256_v37 = vmul.f32 0.01, %v1064_v49  ;;  %v694_v2 = vadd.f32 %v662_v20, %v625_v31  ;;  %v626_v8 = vadd.f32 %v3248_v33, %v594_v7  ;;  %v561_v31 = vld [vmem:[#allocation2 + $0x6a] sm:$0xff]  ;;  %v2624_v42 = vld [vmem:[#allocation2 + $0x39] sm:$0xff] }
  0x94   : > { %v1065_v35 = vadd.f32 %v1033_v61, %v996_v62  ;;  %v1034_v24 = vmul.f32 %v2622_v51, %v3275_v30  ;;  %v966_v41 = vmul.f32 %v3257_v32, %v556_v57  ;;  %v595_v46 = vmul.f32 %v3232_v5, %v559_v47 }
  0x95   : > { %v1288_v15 = vsel %vm1224_vm10, %v1064_v49, %v1256_v37  ;;  %v997_v48 = vadd.f32 %v965_v27, %v694_v2  ;;  %v695_v17 = vadd.f32 %v663_v21, %v626_v8  ;;  %v1035_v56 = vmul.f32 %v2623_v9, %v3275_v30 }
  0x96   : > { %2487 = vst.msk [vmem:[%s2911_s12 + $0x108] sm:$0xff] %vm233_vm1, %v1288_v15  ;;  %vm1225_vm11 = vcmp.ge.f32.partialorder %v1065_v35, 0.0  ;;  %v1257_v4 = vmul.f32 0.01, %v1065_v35  ;;  %v627_v61 = vadd.f32 %v3248_v33, %v595_v46  ;;  %v664_v14 = vmul.f32 %v3241_v36, %v2929_v26 }
  0x97   : > { %v1066_v57 = vadd.f32 %v1034_v24, %v997_v48  ;;  %v998_v10 = vadd.f32 %v966_v41, %v695_v17  ;;  %v967_v54 = vmul.f32 %v3257_v32, %v557_v58  ;;  %v596_v49 = vmul.f32 %v3232_v5, %v560_v28  ;;  %v562_v58 = vld [vmem:[#allocation2 + $0x7a] sm:$0xff] }
  0x98   : > { %v1289_v20 = vsel %vm1225_vm11, %v1065_v35, %v1257_v4  ;;  %v696_v7 = vadd.f32 %v664_v14, %v627_v61  ;;  %v1036_v62 = vmul.f32 %v2624_v42, %v3275_v30  ;;  %v665_v27 = vmul.f32 %v3241_v36, %v2936_v34 }
  0x99   : > { %2488 = vst.msk [vmem:[%s2911_s12 + $0x110] sm:$0xff] %vm233_vm1, %v1289_v20  ;;  %vm1226_vm12 = vcmp.ge.f32.partialorder %v1066_v57, 0.0  ;;  %v1258_v21 = vmul.f32 0.01, %v1066_v57  ;;  %v1067_v37 = vadd.f32 %v1035_v56, %v998_v10  ;;  %v628_v2 = vadd.f32 %v3248_v33, %v596_v49  ;;  %v563_v56 = vld [vmem:[#allocation2 + $0x82] sm:$0xff] }
  0x9a   : > { %v999_v8 = vadd.f32 %v967_v54, %v696_v7  ;;  %v968_v51 = vmul.f32 %v3257_v32, %v558_v11  ;;  %v1037_v35 = vmul.f32 %v3275_v30, %v2917_v18  ;;  %v597_v24 = vmul.f32 %v3232_v5, %v561_v31 }
  0x9b   : > { %v1290_v41 = vsel %vm1226_vm12, %v1066_v57, %v1258_v21  ;;  %vm1227_vm13 = vcmp.ge.f32.partialorder %v1067_v37, 0.0  ;;  %v1259_v46 = vmul.f32 0.01, %v1067_v37  ;;  %v697_v15 = vadd.f32 %v665_v27, %v628_v2 }
  0x9c   : > { %2489 = vst.msk [vmem:[%s2911_s12 + $0x118] sm:$0xff] %vm233_vm1, %v1290_v41  ;;  %v1068_v48 = vadd.f32 %v1036_v62, %v999_v8  ;;  %v629_v17 = vadd.f32 %v3248_v33, %v597_v24  ;;  %v666_v9 = vmul.f32 %v3241_v36, %v2947_v43  ;;  %v598_v11 = vmul.f32 %v3232_v5, %v562_v58  ;;  %v565_v41 = vld [vmem:[#allocation2 + $0x9a] sm:$0xff] }
  0x9d   : > { %v1291_v4 = vsel %vm1227_vm13, %v1067_v37, %v1259_v46  ;;  %v1000_v18 = vadd.f32 %v968_v51, %v697_v15  ;;  %v969_v61 = vmul.f32 %v3257_v32, %v559_v47  ;;  %v667_v14 = vmul.f32 %v3241_v36, %v2964_v6  ;;  %v564_v47 = vld [vmem:[#allocation2 + $0x92] sm:$0xff] }
  0x9e   : > { %2490 = vst.msk [vmem:[%s2911_s12 + $0x120] sm:$0xff] %vm233_vm1, %v1291_v4  ;;  %vm1228_vm14 = vcmp.ge.f32.partialorder %v1068_v48, 0.0  ;;  %v1260_v57 = vmul.f32 0.01, %v1068_v48  ;;  %v698_v10 = vadd.f32 %v666_v9, %v629_v17  ;;  %v630_v54 = vadd.f32 %v3248_v33, %v598_v11 }
  0x9f   : > { %v1069_v49 = vadd.f32 %v1037_v35, %v1000_v18  ;;  %v1038_v20 = vmul.f32 %v3275_v30, %v2929_v26  ;;  %v970_v7 = vmul.f32 %v3257_v32, %v560_v28  ;;  %v599_v42 = vmul.f32 %v3232_v5, %v563_v56 }
  0xa0   : > { %v1292_v62 = vsel %vm1228_vm14, %v1068_v48, %v1260_v57  ;;  %v1001_v27 = vadd.f32 %v969_v61, %v698_v10  ;;  %v699_v21 = vadd.f32 %v667_v14, %v630_v54  ;;  %v1039_v37 = vmul.f32 %v3275_v30, %v2936_v34 }
  0xa1   : > { %2491 = vst.msk [vmem:[%s2911_s12 + $0x128] sm:$0xff] %vm233_vm1, %v1292_v62  ;;  %vm1229_vm15 = vcmp.ge.f32.partialorder %v1069_v49, 0.0  ;;  %v1261_v2 = vmul.f32 0.01, %v1069_v49  ;;  %v631_v8 = vadd.f32 %v3248_v33, %v599_v42  ;;  %v668_v26 = vmul.f32 %v3241_v36, %v2976_v19 }
  0xa2   : > { %v1070_v28 = vadd.f32 %v1038_v20, %v1001_v27  ;;  %v1002_v51 = vadd.f32 %v970_v7, %v699_v21  ;;  %v971_v35 = vmul.f32 %v3257_v32, %v561_v31  ;;  %v600_v24 = vmul.f32 %v3232_v5, %v564_v47  ;;  %v566_v31 = vld [vmem:[#allocation2 + $0xaa] sm:$0xff]  ;;  %v567_v7 = vld [vmem:[#allocation2 + $0xb2] sm:$0xff] }
  0xa3   : > { %v1293_v46 = vsel %vm1229_vm15, %v1069_v49, %v1261_v2  ;;  %v700_v15 = vadd.f32 %v668_v26, %v631_v8  ;;  %v1040_v34 = vmul.f32 %v3275_v30, %v2947_v43  ;;  %v669_v48 = vmul.f32 %v3241_v36, %v2986_v39 }
  0xa4   : > { %2492 = vst.msk [vmem:[%s2911_s12 + $0x130] sm:$0xff] %vm233_vm1, %v1293_v46  ;;  %vm1230_vm0 = vcmp.ge.f32.partialorder %v1070_v28, 0.0  ;;  %v1262_v17 = vmul.f32 0.01, %v1070_v28  ;;  %v1071_v9 = vadd.f32 %v1039_v37, %v1002_v51  ;;  %v632_v11 = vadd.f32 %v3248_v33, %v600_v24 }
  0xa5   : > { %v1003_v4 = vadd.f32 %v971_v35, %v700_v15  ;;  %v972_v18 = vmul.f32 %v3257_v32, %v562_v58  ;;  %v1041_v61 = vmul.f32 %v3275_v30, %v2964_v6  ;;  %v601_v43 = vmul.f32 %v3232_v5, %v565_v41 }
  0xa6   : > { %v1294_v14 = vsel %vm1230_vm0, %v1070_v28, %v1262_v17  ;;  %vm1231_vm2 = vcmp.ge.f32.partialorder %v1071_v9, 0.0  ;;  %v1263_v57 = vmul.f32 0.01, %v1071_v9  ;;  %v701_v10 = vadd.f32 %v669_v48, %v632_v11 }
  0xa7   : > { %2493 = vst.msk [vmem:[%s2911_s12 + $0x138] sm:$0xff] %vm233_vm1, %v1294_v14  ;;  %v1072_v54 = vadd.f32 %v1040_v34, %v1003_v4  ;;  %v633_v49 = vadd.f32 %v3248_v33, %v601_v43  ;;  %v670_v20 = vmul.f32 %v3241_v36, %v2993_v52  ;;  %v602_v58 = vmul.f32 %v3232_v5, %v566_v31  ;;  %v569_v4 = vld [vmem:[#allocation2 + $0xca] sm:$0xff] }
  0xa8   : > { %v1295_v42 = vsel %vm1231_vm2, %v1071_v9, %v1263_v57  ;;  %v1004_v6 = vadd.f32 %v972_v18, %v701_v10  ;;  %v973_v62 = vmul.f32 %v3257_v32, %v563_v56  ;;  %v671_v27 = vmul.f32 %v3241_v36, %v3005_v63  ;;  %v568_v56 = vld [vmem:[#allocation2 + $0xc2] sm:$0xff] }
  0xa9   : > { %2494 = vst.msk [vmem:[%s2911_s12 + $0x140] sm:$0xff] %vm233_vm1, %v1295_v42  ;;  %vm1232_vm3 = vcmp.ge.f32.partialorder %v1072_v54, 0.0  ;;  %v1264_v21 = vmul.f32 0.01, %v1072_v54  ;;  %v702_v37 = vadd.f32 %v670_v20, %v633_v49  ;;  %v634_v2 = vadd.f32 %v3248_v33, %v602_v58 }
  0xaa   : > { %v1073_v8 = vadd.f32 %v1041_v61, %v1004_v6  ;;  %v1042_v26 = vmul.f32 %v3275_v30, %v2976_v19  ;;  %v974_v28 = vmul.f32 %v3257_v32, %v564_v47  ;;  %v603_v51 = vmul.f32 %v3232_v5, %v567_v7 }
  0xab   : > { %v1296_v35 = vsel %vm1232_vm3, %v1072_v54, %v1264_v21  ;;  %v1005_v24 = vadd.f32 %v973_v62, %v702_v37  ;;  %v703_v46 = vadd.f32 %v671_v27, %v634_v2  ;;  %v1043_v15 = vmul.f32 %v3275_v30, %v2986_v39  ;;  %v571_v37 = vld [vmem:[#allocation2 + $0xe2] sm:$0xff] }
  0xac   : > { %2495 = vst.msk [vmem:[%s2911_s12 + $0x148] sm:$0xff] %vm233_vm1, %v1296_v35  ;;  %vm1233_vm4 = vcmp.ge.f32.partialorder %v1073_v8, 0.0  ;;  %v1265_v34 = vmul.f32 0.01, %v1073_v8  ;;  %v635_v48 = vadd.f32 %v3248_v33, %v603_v51  ;;  %v672_v19 = vmul.f32 %v3241_v36, %v3019_v1 }
  0xad   : > { %v1074_v47 = vadd.f32 %v1042_v26, %v1005_v24  ;;  %v1006_v17 = vadd.f32 %v974_v28, %v703_v46  ;;  %v975_v9 = vmul.f32 %v3257_v32, %v565_v41  ;;  %v604_v11 = vmul.f32 %v3232_v5, %v568_v56  ;;  %v570_v41 = vld [vmem:[#allocation2 + $0xda] sm:$0xff] }
  0xae   : > { %v1297_v18 = vsel %vm1233_vm4, %v1073_v8, %v1265_v34  ;;  %v704_v61 = vadd.f32 %v672_v19, %v635_v48  ;;  %v1044_v39 = vmul.f32 %v3275_v30, %v2993_v52  ;;  %v673_v43 = vmul.f32 %v3241_v36, %v3027_v29 }
  0xaf   : > { %2496 = vst.msk [vmem:[%s2911_s12 + $0x150] sm:$0xff] %vm233_vm1, %v1297_v18  ;;  %vm1234_vm5 = vcmp.ge.f32.partialorder %v1074_v47, 0.0  ;;  %v1266_v14 = vmul.f32 0.01, %v1074_v47  ;;  %v1075_v57 = vadd.f32 %v1043_v15, %v1006_v17  ;;  %v636_v10 = vadd.f32 %v3248_v33, %v604_v11 }
  0xb0   : > { %v1007_v54 = vadd.f32 %v975_v9, %v704_v61  ;;  %v976_v49 = vmul.f32 %v3257_v32, %v566_v31  ;;  %v1045_v20 = vmul.f32 %v3275_v30, %v3005_v63  ;;  %v605_v52 = vmul.f32 %v3232_v5, %v569_v4 }
  0xb1   : > { %v1298_v58 = vsel %vm1234_vm5, %v1074_v47, %v1266_v14  ;;  %vm1235_vm6 = vcmp.ge.f32.partialorder %v1075_v57, 0.0  ;;  %v1267_v42 = vmul.f32 0.01, %v1075_v57  ;;  %v705_v6 = vadd.f32 %v673_v43, %v636_v10  ;;  %v573_v43 = vld [vmem:[#allocation2 + $0xfa] sm:$0xff] }
  0xb2   : > { %2497 = vst.msk [vmem:[%s2911_s12 + $0x158] sm:$0xff] %vm233_vm1, %v1298_v58  ;;  %v1076_v62 = vadd.f32 %v1044_v39, %v1007_v54  ;;  %v637_v27 = vadd.f32 %v3248_v33, %v605_v52  ;;  %v674_v21 = vmul.f32 %v3241_v36, %v3042_v50  ;;  %v606_v31 = vmul.f32 %v3232_v5, %v570_v41 }
  0xb3   : > { %v1299_v2 = vsel %vm1235_vm6, %v1075_v57, %v1267_v42  ;;  %v1008_v63 = vadd.f32 %v976_v49, %v705_v6  ;;  %v977_v8 = vmul.f32 %v3257_v32, %v567_v7  ;;  %v675_v26 = vmul.f32 %v3241_v36, %v3053_v12  ;;  %v572_v7 = vld [vmem:[#allocation2 + $0xf2] sm:$0xff] }
  0xb4   : > { %2498 = vst.msk [vmem:[%s2911_s12 + $0x160] sm:$0xff] %vm233_vm1, %v1299_v2  ;;  %vm1236_vm7 = vcmp.ge.f32.partialorder %v1076_v62, 0.0  ;;  %v1268_v28 = vmul.f32 0.01, %v1076_v62  ;;  %v706_v51 = vadd.f32 %v674_v21, %v637_v27  ;;  %v638_v35 = vadd.f32 %v3248_v33, %v606_v31 }
  0xb5   : > { %v1077_v24 = vadd.f32 %v1045_v20, %v1008_v63  ;;  %v1046_v46 = vmul.f32 %v3275_v30, %v3019_v1  ;;  %v978_v15 = vmul.f32 %v3257_v32, %v568_v56  ;;  %v607_v34 = vmul.f32 %v3232_v5, %v571_v37  ;;  %v575_v63 = vld [vmem:[#allocation2 + $0x112] sm:$0xff] }
  0xb6   : > { %v1300_v48 = vsel %vm1236_vm7, %v1076_v62, %v1268_v28  ;;  %v1009_v19 = vadd.f32 %v977_v8, %v706_v51  ;;  %v707_v47 = vadd.f32 %v675_v26, %v638_v35  ;;  %v1047_v17 = vmul.f32 %v3275_v30, %v3027_v29 }
  0xb7   : > { %2499 = vst.msk [vmem:[%s2911_s12 + $0x168] sm:$0xff] %vm233_vm1, %v1300_v48  ;;  %vm1237_vm8 = vcmp.ge.f32.partialorder %v1077_v24, 0.0  ;;  %v1269_v9 = vmul.f32 0.01, %v1077_v24  ;;  %v639_v11 = vadd.f32 %v3248_v33, %v607_v34  ;;  %v676_v1 = vmul.f32 %v3241_v36, %v3061_v25 }
  0xb8   : > { %v1078_v56 = vadd.f32 %v1046_v46, %v1009_v19  ;;  %v1010_v18 = vadd.f32 %v978_v15, %v707_v47  ;;  %v979_v61 = vmul.f32 %v3257_v32, %v569_v4  ;;  %v608_v39 = vmul.f32 %v3232_v5, %v572_v7  ;;  %v574_v4 = vld [vmem:[#allocation2 + $0x10a] sm:$0xff] }
  0xb9   : > { %v1301_v14 = vsel %vm1237_vm8, %v1077_v24, %v1269_v9  ;;  %v708_v57 = vadd.f32 %v676_v1, %v639_v11  ;;  %v1048_v29 = vmul.f32 %v3275_v30, %v3042_v50  ;;  %v677_v10 = vmul.f32 %v3241_v36, %v3074_v44 }
  0xba   : > { %2500 = vst.msk [vmem:[%s2911_s12 + $0x170] sm:$0xff] %vm233_vm1, %v1301_v14  ;;  %vm1238_vm9 = vcmp.ge.f32.partialorder %v1078_v56, 0.0  ;;  %v1270_v54 = vmul.f32 0.01, %v1078_v56  ;;  %v1079_v49 = vadd.f32 %v1047_v17, %v1010_v18  ;;  %v640_v20 = vadd.f32 %v3248_v33, %v608_v39  ;;  %v577_v39 = vld [vmem:[#allocation2 + $0x12a] sm:$0xff] }
  0xbb   : > { %v1011_v52 = vadd.f32 %v979_v61, %v708_v57  ;;  %v980_v58 = vmul.f32 %v3257_v32, %v570_v41  ;;  %v1049_v42 = vmul.f32 %v3275_v30, %v3053_v12  ;;  %v609_v50 = vmul.f32 %v3232_v5, %v573_v43 }
  0xbc   : > { %v1302_v6 = vsel %vm1238_vm9, %v1078_v56, %v1270_v54  ;;  %vm1239_vm10 = vcmp.ge.f32.partialorder %v1079_v49, 0.0  ;;  %v1271_v62 = vmul.f32 0.01, %v1079_v49  ;;  %v709_v27 = vadd.f32 %v677_v10, %v640_v20 }
  0xbd   : > { %2501 = vst.msk [vmem:[%s2911_s12 + $0x178] sm:$0xff] %vm233_vm1, %v1302_v6  ;;  %v1080_v21 = vadd.f32 %v1048_v29, %v1011_v52  ;;  %v641_v31 = vadd.f32 %v3248_v33, %v609_v50  ;;  %v678_v2 = vmul.f32 %v3241_v36, %v3081_v60  ;;  %v610_v41 = vmul.f32 %v3232_v5, %v574_v4 }
  0xbe   : > { %v1303_v8 = vsel %vm1239_vm10, %v1079_v49, %v1271_v62  ;;  %v1012_v12 = vadd.f32 %v980_v58, %v709_v27  ;;  %v981_v26 = vmul.f32 %v3257_v32, %v571_v37  ;;  %v679_v28 = vmul.f32 %v3241_v36, %v3096_v16  ;;  %v576_v37 = vld [vmem:[#allocation2 + $0x122] sm:$0xff] }
  0xbf   : > { %2502 = vst.msk [vmem:[%s2911_s12 + $0x180] sm:$0xff] %vm233_vm1, %v1303_v8  ;;  %vm1240_vm11 = vcmp.ge.f32.partialorder %v1080_v21, 0.0  ;;  %v1272_v51 = vmul.f32 0.01, %v1080_v21  ;;  %v710_v35 = vadd.f32 %v678_v2, %v641_v31  ;;  %v642_v24 = vadd.f32 %v3248_v33, %v610_v41  ;;  %v579_v31 = vld [vmem:[#allocation2 + $0x142] sm:$0xff] }
  0xc0   : > { %v1081_v46 = vadd.f32 %v1049_v42, %v1012_v12  ;;  %v1050_v15 = vmul.f32 %v3275_v30, %v3061_v25  ;;  %v982_v34 = vmul.f32 %v3257_v32, %v572_v7  ;;  %v611_v48 = vmul.f32 %v3232_v5, %v575_v63 }
  0xc1   : > { %v1304_v19 = vsel %vm1240_vm11, %v1080_v21, %v1272_v51  ;;  %v1013_v47 = vadd.f32 %v981_v26, %v710_v35  ;;  %v711_v17 = vadd.f32 %v679_v28, %v642_v24  ;;  %v1051_v9 = vmul.f32 %v3275_v30, %v3074_v44 }
  0xc2   : > { %2503 = vst.msk [vmem:[%s2911_s12 + $0x188] sm:$0xff] %vm233_vm1, %v1304_v19  ;;  %vm1241_vm12 = vcmp.ge.f32.partialorder %v1081_v46, 0.0  ;;  %v1273_v11 = vmul.f32 0.01, %v1081_v46  ;;  %v643_v1 = vadd.f32 %v3248_v33, %v611_v48  ;;  %v680_v25 = vmul.f32 %v3241_v36, %v3107_v40 }
  0xc3   : > { %v1082_v7 = vadd.f32 %v1050_v15, %v1013_v47  ;;  %v1014_v56 = vadd.f32 %v982_v34, %v711_v17  ;;  %v983_v18 = vmul.f32 %v3257_v32, %v573_v43  ;;  %v612_v61 = vmul.f32 %v3232_v5, %v576_v37  ;;  %v578_v43 = vld [vmem:[#allocation2 + $0x13a] sm:$0xff] }
  0xc4   : > { %v1305_v14 = vsel %vm1241_vm12, %v1081_v46, %v1273_v11  ;;  %v712_v57 = vadd.f32 %v680_v25, %v643_v1  ;;  %v1052_v44 = vmul.f32 %v3275_v30, %v3081_v60  ;;  %v681_v29 = vmul.f32 %v3241_v36, %v3118_v38  ;;  %v581_v25 = vld [vmem:[#allocation2 + $0x15a] sm:$0xff] }
  0xc5   : > { %2504 = vst.msk [vmem:[%s2911_s12 + $0x190] sm:$0xff] %vm233_vm1, %v1305_v14  ;;  %vm1242_vm13 = vcmp.ge.f32.partialorder %v1082_v7, 0.0  ;;  %v1274_v10 = vmul.f32 0.01, %v1082_v7  ;;  %v1083_v54 = vadd.f32 %v1051_v9, %v1014_v56  ;;  %v644_v49 = vadd.f32 %v3248_v33, %v612_v61 }
  0xc6   : > { %v1015_v20 = vadd.f32 %v983_v18, %v712_v57  ;;  %v984_v52 = vmul.f32 %v3257_v32, %v574_v4  ;;  %v1053_v58 = vmul.f32 %v3275_v30, %v3096_v16  ;;  %v613_v60 = vmul.f32 %v3232_v5, %v577_v39 }
  0xc7   : > { %v1306_v42 = vsel %vm1242_vm13, %v1082_v7, %v1274_v10  ;;  %vm1243_vm14 = vcmp.ge.f32.partialorder %v1083_v54, 0.0  ;;  %v1275_v50 = vmul.f32 0.01, %v1083_v54  ;;  %v713_v6 = vadd.f32 %v681_v29, %v644_v49 }
  0xc8   : > { %2505 = vst.msk [vmem:[%s2911_s12 + $0x198] sm:$0xff] %vm233_vm1, %v1306_v42  ;;  %v1084_v62 = vadd.f32 %v1052_v44, %v1015_v20  ;;  %v645_v27 = vadd.f32 %v3248_v33, %v613_v60  ;;  %v682_v21 = vmul.f32 %v3241_v36, %v3130_v22  ;;  %v614_v4 = vmul.f32 %v3232_v5, %v578_v43  ;;  %v583_v42 = vld [vmem:[#allocation2 + $0x172] sm:$0xff] }
  0xc9   : > { %v1307_v2 = vsel %vm1243_vm14, %v1083_v54, %v1275_v50  ;;  %v1016_v16 = vadd.f32 %v984_v52, %v713_v6  ;;  %v985_v41 = vmul.f32 %v3257_v32, %v575_v63  ;;  %v683_v8 = vmul.f32 %v3241_v36, %v3138_v3  ;;  %v580_v63 = vld [vmem:[#allocation2 + $0x152] sm:$0xff] }
  0xca   : > { %2506 = vst.msk [vmem:[%s2911_s12 + $0x1a0] sm:$0xff] %vm233_vm1, %v1307_v2  ;;  %vm1244_vm15 = vcmp.ge.f32.partialorder %v1084_v62, 0.0  ;;  %v1276_v12 = vmul.f32 0.01, %v1084_v62  ;;  %v714_v26 = vadd.f32 %v682_v21, %v645_v27  ;;  %v646_v28 = vadd.f32 %v3248_v33, %v614_v4 }
  0xcb   : > { %v1085_v51 = vadd.f32 %v1053_v58, %v1016_v16  ;;  %v1054_v35 = vmul.f32 %v3275_v30, %v3107_v40  ;;  %v986_v24 = vmul.f32 %v3257_v32, %v576_v37  ;;  %v615_v46 = vmul.f32 %v3232_v5, %v579_v31 }
  0xcc   : > { %v1308_v15 = vsel %vm1244_vm15, %v1084_v62, %v1276_v12  ;;  %v1017_v34 = vadd.f32 %v985_v41, %v714_v26  ;;  %v715_v48 = vadd.f32 %v683_v8, %v646_v28  ;;  %v1055_v19 = vmul.f32 %v3275_v30, %v3118_v38 }
  0xcd   : > { %2507 = vst.msk [vmem:[%s2911_s12 + $0x1a8] sm:$0xff] %vm233_vm1, %v1308_v15  ;;  %vm1245_vm0 = vcmp.ge.f32.partialorder %v1085_v51, 0.0  ;;  %v1277_v47 = vmul.f32 0.01, %v1085_v51  ;;  %v647_v17 = vadd.f32 %v3248_v33, %v615_v46  ;;  %v684_v40 = vmul.f32 %v3241_v36, %v3151_v0 }
  0xce   : > { %v1086_v37 = vadd.f32 %v1054_v35, %v1017_v34  ;;  %v1018_v9 = vadd.f32 %v986_v24, %v715_v48  ;;  %v987_v11 = vmul.f32 %v3257_v32, %v577_v39  ;;  %v616_v1 = vmul.f32 %v3232_v5, %v580_v63  ;;  %v582_v39 = vld [vmem:[#allocation2 + $0x16a] sm:$0xff] }
  0xcf   : > { %v1309_v7 = vsel %vm1245_vm0, %v1085_v51, %v1277_v47  ;;  %v716_v56 = vadd.f32 %v684_v40, %v647_v17  ;;  %v1056_v38 = vmul.f32 %v3275_v30, %v3130_v22  ;;  %v685_v18 = vmul.f32 %v3241_v36, %v3163_v23  ;;  %v585_v48 = vld [vmem:[#allocation2 + $0x18a] sm:$0xff] }
  0xd0   : > { %2508 = vst.msk [vmem:[%s2911_s12 + $0x1b0] sm:$0xff] %vm233_vm1, %v1309_v7  ;;  %vm1246_vm2 = vcmp.ge.f32.partialorder %v1086_v37, 0.0  ;;  %v1278_v61 = vmul.f32 0.01, %v1086_v37  ;;  %v1087_v14 = vadd.f32 %v1055_v19, %v1018_v9  ;;  %v648_v57 = vadd.f32 %v3248_v33, %v616_v1 }
  0xd1   : > { %v1019_v44 = vadd.f32 %v987_v11, %v716_v56  ;;  %v988_v29 = vmul.f32 %v3257_v32, %v578_v43  ;;  %v1057_v10 = vmul.f32 %v3275_v30, %v3138_v3  ;;  %v617_v22 = vmul.f32 %v3232_v5, %v581_v25  ;;  %v3536_v11 = vld [vmem:[#allocation2 + $0x31] sm:$0xff] }
  0xd2   : > { %v1310_v54 = vsel %vm1246_vm2, %v1086_v37, %v1278_v61  ;;  %vm1247_vm3 = vcmp.ge.f32.partialorder %v1087_v14, 0.0  ;;  %v1279_v49 = vmul.f32 0.01, %v1087_v14  ;;  %v717_v20 = vadd.f32 %v685_v18, %v648_v57  ;;  %v1455_v56 = vld [vmem:[#allocation2 + $0x30] sm:$0xff] }
  0xd3   : > { %2509 = vst.msk [vmem:[%s2911_s12 + $0x1b8] sm:$0xff] %vm233_vm1, %v1310_v54  ;;  %v1088_v52 = vadd.f32 %v1056_v38, %v1019_v44  ;;  %v649_v58 = vadd.f32 %v3248_v33, %v617_v22  ;;  %v686_v60 = vmul.f32 %v3241_v36, %v3174_v53  ;;  %v618_v43 = vmul.f32 %v3232_v5, %v582_v39  ;;  %v3556_v44 = vld [vmem:[#allocation2 + $0x39] sm:$0xff] }
  0xd4   : > { %v1311_v50 = vsel %vm1247_vm3, %v1087_v14, %v1279_v49  ;;  %v1020_v3 = vadd.f32 %v988_v29, %v717_v20  ;;  %v989_v6 = vmul.f32 %v3257_v32, %v579_v31  ;;  %v687_v62 = vmul.f32 %v3241_v36, %v3182_v59  ;;  %v584_v31 = vld [vmem:[#allocation2 + $0x182] sm:$0xff]  ;;  %v1827_v54 = vld [vmem:[#allocation2 + $0x18] sm:$0xff] }
  0xd5   : > { %2510 = vst.msk [vmem:[%s2911_s12 + $0x1c0] sm:$0xff] %vm233_vm1, %v1311_v50  ;;  %vm1248_vm4 = vcmp.ge.f32.partialorder %v1088_v52, 0.0  ;;  %v1280_v27 = vmul.f32 0.01, %v1088_v52  ;;  %v718_v21 = vadd.f32 %v686_v60, %v649_v58  ;;  %v650_v4 = vadd.f32 %v3248_v33, %v618_v43  ;;  %v1456_v58 = vld [vmem:[#allocation2 + $0x38] sm:$0xff] }
  0xd6   : > { %v1089_v2 = vadd.f32 %v1057_v10, %v1020_v3  ;;  %v1058_v16 = vmul.f32 %v3275_v30, %v3151_v0  ;;  %v990_v41 = vmul.f32 %v3257_v32, %v580_v63  ;;  %v619_v8 = vmul.f32 %v3232_v5, %v583_v42  ;;  %v3573_v43 = vld [vmem:[%s4219_s0 + $0x9] ss:$0 sm:$0xff]  ;;  %v3579_v3 = vld [vmem:[#allocation2 + $0x21] sm:$0xff] }
  0xd7   : > { %v1312_v12 = vsel %vm1248_vm4, %v1088_v52, %v1280_v27  ;;  %v1021_v26 = vadd.f32 %v989_v6, %v718_v21  ;;  %v719_v28 = vadd.f32 %v687_v62, %v650_v4  ;;  %v1059_v51 = vmul.f32 %v3275_v30, %v3163_v23  ;;  %v3581_v6 = vld [vmem:[#allocation2 + $0x49] sm:$0xff]  ;;  %v1828_v4 = vld [vmem:[#allocation2 + $0x20] sm:$0xff] }
  0xd8   : > { %2511 = vst.msk [vmem:[%s2911_s12 + $0x1c8] sm:$0xff] %vm233_vm1, %v1312_v12  ;;  %vm1249_vm5 = vcmp.ge.f32.partialorder %v1089_v2, 0.0  ;;  %v1281_v35 = vmul.f32 0.01, %v1089_v2  ;;  %v651_v24 = vadd.f32 %v3248_v33, %v619_v8  ;;  %v688_v0 = vmul.f32 %v3241_v36, %v3195_v13 }
  0xd9   : > { %v1090_v46 = vadd.f32 %v1058_v16, %v1021_v26  ;;  %v1022_v63 = vadd.f32 %v990_v41, %v719_v28  ;;  %v991_v15 = vmul.f32 %v3257_v32, %v581_v25  ;;  %v620_v34 = vmul.f32 %v3232_v5, %v584_v31 }
  0xda   : > { %v1313_v19 = vsel %vm1249_vm5, %v1089_v2, %v1281_v35  ;;  %v720_v47 = vadd.f32 %v688_v0, %v651_v24  ;;  %v1060_v23 = vmul.f32 %v3275_v30, %v3174_v53  ;;  %v689_v17 = vmul.f32 %v3241_v36, %v3209_v55  ;;  %v1457_v2 = vld [vmem:[#allocation2 + $0x48] sm:$0xff] }
  0xdb   : > { %2512 = vst.msk [vmem:[%s2911_s12 + $0x1d0] sm:$0xff] %vm233_vm1, %v1313_v19  ;;  %vm1250_vm6 = vcmp.ge.f32.partialorder %v1090_v46, 0.0  ;;  %v1282_v40 = vmul.f32 0.01, %v1090_v46  ;;  %v1091_v37 = vadd.f32 %v1059_v51, %v1022_v63  ;;  %v652_v9 = vadd.f32 %v3248_v33, %v620_v34  ;;  %v3597_v51 = vld [vmem:[#allocation2 + $0x51] sm:$0xff]  ;;  %v3604_v19 = vld [vmem:[#allocation2 + $0x61] sm:$0xff] }
  0xdc   : > { %v1023_v1 = vadd.f32 %v991_v15, %v720_v47  ;;  %v992_v25 = vmul.f32 %v3257_v32, %v582_v39  ;;  %v1061_v7 = vmul.f32 %v3275_v30, %v3182_v59  ;;  %v621_v53 = vmul.f32 %v3232_v5, %v585_v48  ;;  %v3550_v59 = vld [vmem:[%s4219_s0 + $0x1] ss:$0 sm:$0xff]  ;;  %v3554_v39 = vld [vmem:[#allocation2 + $0x19] sm:$0xff]  ;;  %v1458_v48 = vld [vmem:[#allocation2 + $0x50] sm:$0xff] }
  0xdd   : > { %v1314_v55 = vsel %vm1250_vm6, %v1090_v46, %v1282_v40  ;;  %vm1251_vm7 = vcmp.ge.f32.partialorder %v1091_v37, 0.0  ;;  %v1283_v38 = vmul.f32 0.01, %v1091_v37  ;;  %v721_v18 = vadd.f32 %v689_v17, %v652_v9 }
  0xde   : > { %2513 = vst.msk [vmem:[%s2911_s12 + $0x1d8] sm:$0xff] %vm233_vm1, %v1314_v55  ;;  %v1092_v61 = vadd.f32 %v1060_v23, %v1023_v1  ;;  %v653_v14 = vadd.f32 %v3248_v33, %v621_v53  ;;  %v690_v57 = vmul.f32 %v3241_v36, %v3221_v45  ;;  %v1390_v5 = vmul.f32 %v3550_v59, %v3536_v11  ;;  %v3562_v45 = vld [vmem:[%s4219_s0 + $0x3] ss:$0 sm:$0xff] }
  0xdf   : > { %v1315_v29 = vsel %vm1251_vm7, %v1091_v37, %v1283_v38  ;;  %v1024_v10 = vadd.f32 %v992_v25, %v721_v18  ;;  %v993_v22 = vmul.f32 %v3257_v32, %v583_v42  ;;  %v1491_v36 = vmul.f32 %v3562_v45, %v1455_v56  ;;  %v1459_v37 = vld [vmem:[#allocation2 + $0x60] sm:$0xff] }
  0xe0   : > { %2514 = vst.msk [vmem:[%s2911_s12 + $0x1e0] sm:$0xff] %vm233_vm1, %v1315_v29  ;;  %vm1252_vm8 = vcmp.ge.f32.partialorder %v1092_v61, 0.0  ;;  %v1284_v49 = vmul.f32 0.01, %v1092_v61  ;;  %v722_v20 = vadd.f32 %v690_v57, %v653_v14  ;;  %v1422_v52 = vadd.f32 %v3248_v33, %v1390_v5 }
  0xe1   : > { %v1093_v60 = vadd.f32 %v1061_v7, %v1024_v10  ;;  %v1062_v32 = vmul.f32 %v3275_v30, %v3195_v13  ;;  %v1762_v42 = vmul.f32 %v3573_v43, %v3554_v39  ;;  %v1391_v50 = vmul.f32 %v3550_v59, %v3556_v44  ;;  %v3586_v13 = vld [vmem:[%s4219_s0 + $0xb] ss:$0 sm:$0xff] }
  0xe2   : > { %v1316_v62 = vsel %vm1252_vm8, %v1092_v61, %v1284_v49  ;;  %v1025_v27 = vadd.f32 %v993_v22, %v722_v20  ;;  %v1523_v21 = vadd.f32 %v1491_v36, %v1422_v52  ;;  %v1863_v30 = vmul.f32 %v3586_v13, %v1827_v54  ;;  %v1460_v22 = vld [vmem:[#allocation2 + $0x68] sm:$0xff]  ;;  %v3630_v52 = vld [vmem:[#allocation2 + $0x79] sm:$0xff] }
  0xe3   : > { %2515 = vst.msk [vmem:[%s2911_s12 + $0x1e8] sm:$0xff] %vm233_vm1, %v1316_v62  ;;  %vm1253_vm9 = vcmp.ge.f32.partialorder %v1093_v60, 0.0  ;;  %v1285_v16 = vmul.f32 0.01, %v1093_v60  ;;  %v1423_v41 = vadd.f32 %v3248_v33, %v1391_v50  ;;  %v1492_v8 = vmul.f32 %v3562_v45, %v1456_v58  ;;  %v1461_v62 = vld [vmem:[#allocation2 + $0x78] sm:$0xff] }
  0xe4   : > { %v1094_v31 = vadd.f32 %v1062_v32, %v1025_v27  ;;  %v1794_v12 = vadd.f32 %v1762_v42, %v1523_v21  ;;  %v1763_v26 = vmul.f32 %v3573_v43, %v3579_v3  ;;  %v1392_v28 = vmul.f32 %v3550_v59, %v3581_v6 }
  0xe5   : > { %v1317_v35 = vsel %vm1253_vm9, %v1093_v60, %v1285_v16  ;;  %v1524_v24 = vadd.f32 %v1492_v8, %v1423_v41  ;;  %v1864_v0 = vmul.f32 %v3586_v13, %v1828_v4  ;;  %v1493_v46 = vmul.f32 %v3562_v45, %v1457_v2  ;;  %v3641_v8 = vld [vmem:[#allocation2 + $0x81] sm:$0xff] }
  0xe6   : > { %2516 = vst.msk [vmem:[%s2911_s12 + $0x1f0] sm:$0xff] %vm233_vm1, %v1317_v35  ;;  %vm1254_vm10 = vcmp.ge.f32.partialorder %v1094_v31, 0.0  ;;  %v1286_v63 = vmul.f32 0.01, %v1094_v31  ;;  %v1895_v15 = vadd.f32 %v1863_v30, %v1794_v12  ;;  %v1424_v34 = vadd.f32 %v3248_v33, %v1392_v28  ;;  %v3650_v35 = vld [vmem:[%s4220_s1] ss:$0 sm:$0xff] }
  0xe7   : > { %v1795_v47 = vadd.f32 %v1763_v26, %v1524_v24  ;;  %v1764_v23 = vmul.f32 %v3573_v43, %v3536_v11  ;;  %v1865_v17 = vmul.f32 %v3586_v13, %v1455_v56  ;;  %v1393_v40 = vmul.f32 %v3550_v59, %v3597_v51  ;;  %v3617_v56 = vld [vmem:[#allocation2 + $0x69] sm:$0xff] }
  0xe8   : > { %v1318_v9 = vsel %vm1254_vm10, %v1094_v31, %v1286_v63  ;;  %vm2097_vm11 = vcmp.ge.f32.partialorder %v1895_v15, 0.0  ;;  %v2129_v1 = vmul.f32 0.01, %v1895_v15  ;;  %v1525_v25 = vadd.f32 %v1493_v46, %v1424_v34  ;;  %v3653_v46 = vld [vmem:[#allocation2 + $0x91] sm:$0xff] }
  0xe9   : > { %2517 = vst.msk [vmem:[%s2911_s12 + $0x1f8] sm:$0xff] %vm233_vm1, %v1318_v9  ;;  %v1896_v7 = vadd.f32 %v1864_v0, %v1795_v47  ;;  %v1425_v53 = vadd.f32 %v3248_v33, %v1393_v40  ;;  %v1494_v55 = vmul.f32 %v3562_v45, %v1458_v48  ;;  %v1394_v38 = vmul.f32 %v3550_v59, %v3604_v19  ;;  %v1462_v0 = vld [vmem:[#allocation2 + $0x80] sm:$0xff]  ;;  %v1463_v47 = vld [vmem:[#allocation2 + $0x90] sm:$0xff] }
  0xea   : > { %v2161_v18 = vsel %vm2097_vm11, %v1895_v15, %v2129_v1  ;;  %v1796_v61 = vadd.f32 %v1764_v23, %v1525_v25  ;;  %v1765_v14 = vmul.f32 %v3573_v43, %v3556_v44  ;;  %v1495_v57 = vmul.f32 %v3562_v45, %v1459_v37 }
  0xeb   : > { %2526 = vst.msk [vmem:[%s2911_s12 + $0x200] sm:$0xff] %vm233_vm1, %v2161_v18  ;;  %vm2098_vm12 = vcmp.ge.f32.partialorder %v1896_v7, 0.0  ;;  %v2130_v5 = vmul.f32 0.01, %v1896_v7  ;;  %v1526_v29 = vadd.f32 %v1494_v55, %v1425_v53  ;;  %v1426_v10 = vadd.f32 %v3248_v33, %v1394_v38 }
  0xec   : > { %v1897_v36 = vadd.f32 %v1865_v17, %v1796_v61  ;;  %v1866_v54 = vmul.f32 %v3586_v13, %v1456_v58  ;;  %v1766_v49 = vmul.f32 %v3573_v43, %v3581_v6  ;;  %v1395_v20 = vmul.f32 %v3550_v59, %v3617_v56 }
  0xed   : > { %v2162_v60 = vsel %vm2098_vm12, %v1896_v7, %v2130_v5  ;;  %v1797_v32 = vadd.f32 %v1765_v14, %v1526_v29  ;;  %v1527_v42 = vadd.f32 %v1495_v57, %v1426_v10  ;;  %v1867_v50 = vmul.f32 %v3586_v13, %v1457_v2  ;;  %v1464_v5 = vld [vmem:[#allocation2 + $0x98] sm:$0xff] }
  0xee   : > { %2527 = vst.msk [vmem:[%s2911_s12 + $0x208] sm:$0xff] %vm233_vm1, %v2162_v60  ;;  %vm2099_vm13 = vcmp.ge.f32.partialorder %v1897_v36, 0.0  ;;  %v2131_v27 = vmul.f32 0.01, %v1897_v36  ;;  %v1427_v58 = vadd.f32 %v3248_v33, %v1395_v20  ;;  %v1496_v21 = vmul.f32 %v3562_v45, %v1460_v22 }
  0xef   : > { %v1898_v30 = vadd.f32 %v1866_v54, %v1797_v32  ;;  %v1798_v4 = vadd.f32 %v1766_v49, %v1527_v42  ;;  %v1767_v16 = vmul.f32 %v3573_v43, %v3597_v51  ;;  %v1396_v41 = vmul.f32 %v3550_v59, %v3630_v52  ;;  %v3679_v49 = vld [vmem:[#allocation2 + $0xa9] sm:$0xff] }
  0xf0   : > { %v2163_v2 = vsel %vm2099_vm13, %v1897_v36, %v2131_v27  ;;  %v1528_v31 = vadd.f32 %v1496_v21, %v1427_v58  ;;  %v1868_v12 = vmul.f32 %v3586_v13, %v1458_v48  ;;  %v1497_v26 = vmul.f32 %v3562_v45, %v1461_v62 }
  0xf1   : > { %2528 = vst.msk [vmem:[%s2911_s12 + $0x210] sm:$0xff] %vm233_vm1, %v2163_v2  ;;  %vm2100_vm14 = vcmp.ge.f32.partialorder %v1898_v30, 0.0  ;;  %v2132_v33 = vmul.f32 0.01, %v1898_v30  ;;  %v1899_v28 = vadd.f32 %v1867_v50, %v1798_v4  ;;  %v1428_v24 = vadd.f32 %v3650_v35, %v1396_v41  ;;  %v1465_v50 = vld [vmem:[#allocation2 + $0xa8] sm:$0xff]  ;;  %v3690_v41 = vld [vmem:[#allocation2 + $0xb1] sm:$0xff] }
  0xf2   : > { %v1799_v63 = vadd.f32 %v1767_v16, %v1528_v31  ;;  %v1768_v15 = vmul.f32 %v3573_v43, %v3604_v19  ;;  %v1869_v34 = vmul.f32 %v3586_v13, %v1459_v37  ;;  %v1397_v48 = vmul.f32 %v3550_v59, %v3641_v8  ;;  %v3666_v37 = vld [vmem:[#allocation2 + $0x99] sm:$0xff] }
  0xf3   : > { %v2164_v23 = vsel %vm2100_vm14, %v1898_v30, %v2132_v33  ;;  %vm2101_vm15 = vcmp.ge.f32.partialorder %v1899_v28, 0.0  ;;  %v2133_v17 = vmul.f32 0.01, %v1899_v28  ;;  %v1529_v40 = vadd.f32 %v1497_v26, %v1428_v24  ;;  %v1466_v24 = vld [vmem:[#allocation2 + $0xb0] sm:$0xff] }
  0xf4   : > { %2529 = vst.msk [vmem:[%s2911_s12 + $0x218] sm:$0xff] %vm233_vm1, %v2164_v23  ;;  %v1900_v9 = vadd.f32 %v1868_v12, %v1799_v63  ;;  %v1429_v1 = vadd.f32 %v3650_v35, %v1397_v48  ;;  %v1498_v25 = vmul.f32 %v3562_v45, %v1462_v0  ;;  %v1398_v7 = vmul.f32 %v3550_v59, %v3653_v46  ;;  %v3697_v63 = vld [vmem:[#allocation2 + $0xc1] sm:$0xff] }
  0xf5   : > { %v2165_v53 = vsel %vm2101_vm15, %v1899_v28, %v2133_v17  ;;  %v1800_v55 = vadd.f32 %v1768_v15, %v1529_v40  ;;  %v1769_v38 = vmul.f32 %v3573_v43, %v3617_v56  ;;  %v1499_v18 = vmul.f32 %v3562_v45, %v1463_v47  ;;  %v1467_v23 = vld [vmem:[#allocation2 + $0xc0] sm:$0xff] }
  0xf6   : > { %2530 = vst.msk [vmem:[%s2911_s12 + $0x220] sm:$0xff] %vm233_vm1, %v2165_v53  ;;  %vm2102_vm0 = vcmp.ge.f32.partialorder %v1900_v9, 0.0  ;;  %v2134_v61 = vmul.f32 0.01, %v1900_v9  ;;  %v1530_v14 = vadd.f32 %v1498_v25, %v1429_v1  ;;  %v1430_v57 = vadd.f32 %v3650_v35, %v1398_v7 }
  0xf7   : > { %v1901_v29 = vadd.f32 %v1869_v34, %v1800_v55  ;;  %v1870_v10 = vmul.f32 %v3586_v13, %v1460_v22  ;;  %v1770_v36 = vmul.f32 %v3573_v43, %v3630_v52  ;;  %v1399_v54 = vmul.f32 %v3550_v59, %v3666_v37 }
  0xf8   : > { %v2166_v20 = vsel %vm2102_vm0, %v1900_v9, %v2134_v61  ;;  %v1801_v60 = vadd.f32 %v1769_v38, %v1530_v14  ;;  %v1531_v32 = vadd.f32 %v1499_v18, %v1430_v57  ;;  %v1871_v42 = vmul.f32 %v3586_v13, %v1461_v62 }
  0xf9   : > { %2531 = vst.msk [vmem:[%s2911_s12 + $0x228] sm:$0xff] %vm233_vm1, %v2166_v20  ;;  %vm2103_vm2 = vcmp.ge.f32.partialorder %v1901_v29, 0.0  ;;  %v2135_v27 = vmul.f32 0.01, %v1901_v29  ;;  %v1431_v22 = vadd.f32 %v3650_v35, %v1399_v54  ;;  %v1500_v58 = vmul.f32 %v3562_v45, %v1464_v5 }
  0xfa   : > { %v1902_v21 = vadd.f32 %v1870_v10, %v1801_v60  ;;  %v1802_v30 = vadd.f32 %v1770_v36, %v1531_v32  ;;  %v1771_v4 = vmul.f32 %v3573_v43, %v3641_v8  ;;  %v1400_v16 = vmul.f32 %v3550_v59, %v3679_v49  ;;  %v1468_v10 = vld [vmem:[#allocation2 + $0xc8] sm:$0xff]  ;;  %v3723_v32 = vld [vmem:[#allocation2 + $0xd9] sm:$0xff] }
  0xfb   : > { %v2167_v62 = vsel %vm2103_vm2, %v1901_v29, %v2135_v27  ;;  %v1532_v2 = vadd.f32 %v1500_v58, %v1431_v22  ;;  %v1872_v31 = vmul.f32 %v3586_v13, %v1462_v0  ;;  %v1501_v12 = vmul.f32 %v3562_v45, %v1465_v50 }
  0xfc   : > { %2532 = vst.msk [vmem:[%s2911_s12 + $0x230] sm:$0xff] %vm233_vm1, %v2167_v62  ;;  %vm2104_vm3 = vcmp.ge.f32.partialorder %v1902_v21, 0.0  ;;  %v2136_v26 = vmul.f32 0.01, %v1902_v21  ;;  %v1903_v33 = vadd.f32 %v1871_v42, %v1802_v30  ;;  %v1432_v28 = vadd.f32 %v3650_v35, %v1400_v16 }
  0xfd   : > { %v1803_v15 = vadd.f32 %v1771_v4, %v1532_v2  ;;  %v1772_v34 = vmul.f32 %v3573_v43, %v3653_v46  ;;  %v1873_v48 = vmul.f32 %v3586_v13, %v1463_v47  ;;  %v1401_v0 = vmul.f32 %v3550_v59, %v3690_v41  ;;  %v3710_v47 = vld [vmem:[#allocation2 + $0xc9] sm:$0xff] }
  0xfe   : > { %v2168_v17 = vsel %vm2104_vm3, %v1902_v21, %v2136_v26  ;;  %vm2105_vm4 = vcmp.ge.f32.partialorder %v1903_v33, 0.0  ;;  %v2137_v40 = vmul.f32 0.01, %v1903_v33  ;;  %v1533_v9 = vadd.f32 %v1501_v12, %v1432_v28  ;;  %v1469_v21 = vld [vmem:[#allocation2 + $0xd8] sm:$0xff]  ;;  %v3734_v12 = vld [vmem:[#allocation2 + $0xe1] sm:$0xff] }
  0xff   : > { %2533 = vst.msk [vmem:[%s2911_s12 + $0x238] sm:$0xff] %vm233_vm1, %v2168_v17  ;;  %v1904_v1 = vadd.f32 %v1872_v31, %v1803_v15  ;;  %v1433_v25 = vadd.f32 %v3650_v35, %v1401_v0  ;;  %v1502_v7 = vmul.f32 %v3562_v45, %v1466_v24  ;;  %v1402_v53 = vmul.f32 %v3550_v59, %v3697_v63  ;;  %v1470_v0 = vld [vmem:[#allocation2 + $0xe0] sm:$0xff]  ;;  %v3741_v17 = vld [vmem:[#allocation2 + $0xf1] sm:$0xff] }
 0x100   : > { %v2169_v55 = vsel %vm2105_vm4, %v1903_v33, %v2137_v40  ;;  %v1804_v38 = vadd.f32 %v1772_v34, %v1533_v9  ;;  %v1773_v18 = vmul.f32 %v3573_v43, %v3666_v37  ;;  %v1503_v61 = vmul.f32 %v3562_v45, %v1467_v23 }
 0x101   : > { %2534 = vst.msk [vmem:[%s2911_s12 + $0x240] sm:$0xff] %vm233_vm1, %v2169_v55  ;;  %vm2106_vm5 = vcmp.ge.f32.partialorder %v1904_v1, 0.0  ;;  %v2138_v14 = vmul.f32 0.01, %v1904_v1  ;;  %v1534_v57 = vadd.f32 %v1502_v7, %v1433_v25  ;;  %v1434_v29 = vadd.f32 %v3650_v35, %v1402_v53  ;;  %v1471_v25 = vld [vmem:[#allocation2 + $0xf0] sm:$0xff] }
 0x102   : > { %v1905_v36 = vadd.f32 %v1873_v48, %v1804_v38  ;;  %v1874_v54 = vmul.f32 %v3586_v13, %v1464_v5  ;;  %v1774_v20 = vmul.f32 %v3573_v43, %v3679_v49  ;;  %v1403_v60 = vmul.f32 %v3550_v59, %v3710_v47 }
 0x103   : > { %v2170_v42 = vsel %vm2106_vm5, %v1904_v1, %v2138_v14  ;;  %v1805_v27 = vadd.f32 %v1773_v18, %v1534_v57  ;;  %v1535_v22 = vadd.f32 %v1503_v61, %v1434_v29  ;;  %v1875_v58 = vmul.f32 %v3586_v13, %v1465_v50 }
 0x104   : > { %2535 = vst.msk [vmem:[%s2911_s12 + $0x248] sm:$0xff] %vm233_vm1, %v2170_v42  ;;  %vm2107_vm6 = vcmp.ge.f32.partialorder %v1905_v36, 0.0  ;;  %v2139_v30 = vmul.f32 0.01, %v1905_v36  ;;  %v1435_v5 = vadd.f32 %v3650_v35, %v1403_v60  ;;  %v1504_v4 = vmul.f32 %v3562_v45, %v1468_v10 }
 0x105   : > { %v1906_v16 = vadd.f32 %v1874_v54, %v1805_v27  ;;  %v1806_v62 = vadd.f32 %v1774_v20, %v1535_v22  ;;  %v1775_v2 = vmul.f32 %v3573_v43, %v3690_v41  ;;  %v1404_v31 = vmul.f32 %v3550_v59, %v3723_v32  ;;  %v1472_v27 = vld [vmem:[#allocation2 + $0xf8] sm:$0xff] }
 0x106   : > { %v2171_v50 = vsel %vm2107_vm6, %v1905_v36, %v2139_v30  ;;  %v1536_v26 = vadd.f32 %v1504_v4, %v1435_v5  ;;  %v1876_v33 = vmul.f32 %v3586_v13, %v1466_v24  ;;  %v1505_v28 = vmul.f32 %v3562_v45, %v1469_v21  ;;  %v3767_v4 = vld [vmem:[#allocation2 + $0x109] sm:$0xff] }
 0x107   : > { %2536 = vst.msk [vmem:[%s2911_s12 + $0x250] sm:$0xff] %vm233_vm1, %v2171_v50  ;;  %vm2108_vm7 = vcmp.ge.f32.partialorder %v1906_v16, 0.0  ;;  %v2140_v15 = vmul.f32 0.01, %v1906_v16  ;;  %v1907_v34 = vadd.f32 %v1875_v58, %v1806_v62  ;;  %v1436_v48 = vadd.f32 %v3650_v35, %v1404_v31  ;;  %v1473_v50 = vld [vmem:[#allocation2 + $0x108] sm:$0xff] }
 0x108   : > { %v1807_v40 = vadd.f32 %v1775_v2, %v1536_v26  ;;  %v1776_v9 = vmul.f32 %v3573_v43, %v3697_v63  ;;  %v1877_v1 = vmul.f32 %v3586_v13, %v1467_v23  ;;  %v1405_v24 = vmul.f32 %v3550_v59, %v3734_v12  ;;  %v3754_v23 = vld [vmem:[#allocation2 + $0xf9] sm:$0xff] }
 0x109   : > { %v2172_v7 = vsel %vm2108_vm7, %v1906_v16, %v2140_v15  ;;  %vm2109_vm8 = vcmp.ge.f32.partialorder %v1907_v34, 0.0  ;;  %v2141_v53 = vmul.f32 0.01, %v1907_v34  ;;  %v1537_v55 = vadd.f32 %v1505_v28, %v1436_v48 }
 0x10a   : > { %2537 = vst.msk [vmem:[%s2911_s12 + $0x258] sm:$0xff] %vm233_vm1, %v2172_v7  ;;  %v1908_v38 = vadd.f32 %v1876_v33, %v1807_v40  ;;  %v1437_v18 = vadd.f32 %v3650_v35, %v1405_v24  ;;  %v1506_v61 = vmul.f32 %v3562_v45, %v1470_v0  ;;  %v1406_v14 = vmul.f32 %v3550_v59, %v3741_v17  ;;  %v3778_v40 = vld [vmem:[#allocation2 + $0x111] sm:$0xff] }
 0x10b   : > { %v2173_v57 = vsel %vm2109_vm8, %v1907_v34, %v2141_v53  ;;  %v1808_v29 = vadd.f32 %v1776_v9, %v1537_v55  ;;  %v1777_v36 = vmul.f32 %v3573_v43, %v3710_v47  ;;  %v1507_v54 = vmul.f32 %v3562_v45, %v1471_v25 }
 0x10c   : > { %2538 = vst.msk [vmem:[%s2911_s12 + $0x260] sm:$0xff] %vm233_vm1, %v2173_v57  ;;  %vm2110_vm9 = vcmp.ge.f32.partialorder %v1908_v38, 0.0  ;;  %v2142_v20 = vmul.f32 0.01, %v1908_v38  ;;  %v1538_v60 = vadd.f32 %v1506_v61, %v1437_v18  ;;  %v1438_v42 = vadd.f32 %v3650_v35, %v1406_v14  ;;  %v3785_v18 = vld [vmem:[#allocation2 + $0x121] sm:$0xff] }
 0x10d   : > { %v1909_v22 = vadd.f32 %v1877_v1, %v1808_v29  ;;  %v1878_v58 = vmul.f32 %v3586_v13, %v1468_v10  ;;  %v1778_v30 = vmul.f32 %v3573_v43, %v3723_v32  ;;  %v1407_v5 = vmul.f32 %v3550_v59, %v3754_v23  ;;  %v1475_v29 = vld [vmem:[#allocation2 + $0x120] sm:$0xff] }
 0x10e   : > { %v2174_v16 = vsel %vm2110_vm9, %v1908_v38, %v2142_v20  ;;  %v1809_v62 = vadd.f32 %v1777_v36, %v1538_v60  ;;  %v1539_v2 = vadd.f32 %v1507_v54, %v1438_v42  ;;  %v1879_v31 = vmul.f32 %v3586_v13, %v1469_v21  ;;  %v1474_v38 = vld [vmem:[#allocation2 + $0x110] sm:$0xff] }
 0x10f   : > { %2539 = vst.msk [vmem:[%s2911_s12 + $0x268] sm:$0xff] %vm233_vm1, %v2174_v16  ;;  %vm2111_vm10 = vcmp.ge.f32.partialorder %v1909_v22, 0.0  ;;  %v2143_v26 = vmul.f32 0.01, %v1909_v22  ;;  %v1439_v10 = vadd.f32 %v3650_v35, %v1407_v5  ;;  %v1508_v33 = vmul.f32 %v3562_v45, %v1472_v27 }
 0x110   : > { %v1910_v28 = vadd.f32 %v1878_v58, %v1809_v62  ;;  %v1810_v15 = vadd.f32 %v1778_v30, %v1539_v2  ;;  %v1779_v34 = vmul.f32 %v3573_v43, %v3734_v12  ;;  %v1408_v48 = vmul.f32 %v3550_v59, %v3767_v4 }
 0x111   : > { %v2175_v21 = vsel %vm2111_vm10, %v1909_v22, %v2143_v26  ;;  %v1540_v9 = vadd.f32 %v1508_v33, %v1439_v10  ;;  %v1880_v1 = vmul.f32 %v3586_v13, %v1470_v0  ;;  %v1509_v24 = vmul.f32 %v3562_v45, %v1473_v50  ;;  %v1476_v10 = vld [vmem:[#allocation2 + $0x128] sm:$0xff] }
 0x112   : > { %2540 = vst.msk [vmem:[%s2911_s12 + $0x270] sm:$0xff] %vm233_vm1, %v2175_v21  ;;  %vm2112_vm11 = vcmp.ge.f32.partialorder %v1910_v28, 0.0  ;;  %v2144_v7 = vmul.f32 0.01, %v1910_v28  ;;  %v1911_v53 = vadd.f32 %v1879_v31, %v1810_v15  ;;  %v1440_v55 = vadd.f32 %v3650_v35, %v1408_v48  ;;  %v3811_v48 = vld [vmem:[#allocation2 + $0x139] sm:$0xff] }
 0x113   : > { %v1811_v61 = vadd.f32 %v1779_v34, %v1540_v9  ;;  %v1780_v14 = vmul.f32 %v3573_v43, %v3741_v17  ;;  %v1881_v57 = vmul.f32 %v3586_v13, %v1471_v25  ;;  %v1409_v0 = vmul.f32 %v3550_v59, %v3778_v40  ;;  %v3798_v25 = vld [vmem:[#allocation2 + $0x129] sm:$0xff] }
 0x114   : > { %v2176_v36 = vsel %vm2112_vm11, %v1910_v28, %v2144_v7  ;;  %vm2113_vm12 = vcmp.ge.f32.partialorder %v1911_v53, 0.0  ;;  %v2145_v54 = vmul.f32 0.01, %v1911_v53  ;;  %v1541_v20 = vadd.f32 %v1509_v24, %v1440_v55  ;;  %v1477_v7 = vld [vmem:[#allocation2 + $0x138] sm:$0xff] }
 0x115   : > { %2541 = vst.msk [vmem:[%s2911_s12 + $0x278] sm:$0xff] %vm233_vm1, %v2176_v36  ;;  %v1912_v60 = vadd.f32 %v1880_v1, %v1811_v61  ;;  %v1441_v42 = vadd.f32 %v3650_v35, %v1409_v0  ;;  %v1510_v22 = vmul.f32 %v3562_v45, %v1474_v38  ;;  %v1410_v58 = vmul.f32 %v3550_v59, %v3785_v18  ;;  %v3822_v36 = vld [vmem:[#allocation2 + $0x141] sm:$0xff] }
 0x116   : > { %v2177_v30 = vsel %vm2113_vm12, %v1911_v53, %v2145_v54  ;;  %v1812_v5 = vadd.f32 %v1780_v14, %v1541_v20  ;;  %v1781_v16 = vmul.f32 %v3573_v43, %v3754_v23  ;;  %v1511_v62 = vmul.f32 %v3562_v45, %v1475_v29 }
 0x117   : > { %2542 = vst.msk [vmem:[%s2911_s12 + $0x280] sm:$0xff] %vm233_vm1, %v2177_v30  ;;  %vm2114_vm13 = vcmp.ge.f32.partialorder %v1912_v60, 0.0  ;;  %v2146_v2 = vmul.f32 0.01, %v1912_v60  ;;  %v1542_v31 = vadd.f32 %v1510_v22, %v1441_v42  ;;  %v1442_v26 = vadd.f32 %v3650_v35, %v1410_v58  ;;  %v1478_v30 = vld [vmem:[#allocation2 + $0x140] sm:$0xff] }
 0x118   : > { %v1913_v33 = vadd.f32 %v1881_v57, %v1812_v5  ;;  %v1882_v28 = vmul.f32 %v3586_v13, %v1472_v27  ;;  %v1782_v15 = vmul.f32 %v3573_v43, %v3767_v4  ;;  %v1411_v34 = vmul.f32 %v3550_v59, %v3798_v25  ;;  %v3829_v5 = vld [vmem:[#allocation2 + $0x151] sm:$0xff] }
 0x119   : > { %v2178_v21 = vsel %vm2114_vm13, %v1912_v60, %v2146_v2  ;;  %v1813_v9 = vadd.f32 %v1781_v16, %v1542_v31  ;;  %v1543_v1 = vadd.f32 %v1511_v62, %v1442_v26  ;;  %v1883_v24 = vmul.f32 %v3586_v13, %v1473_v50  ;;  %v1479_v31 = vld [vmem:[#allocation2 + $0x150] sm:$0xff] }
 0x11a   : > { %2543 = vst.msk [vmem:[%s2911_s12 + $0x288] sm:$0xff] %vm233_vm1, %v2178_v21  ;;  %vm2115_vm14 = vcmp.ge.f32.partialorder %v1913_v33, 0.0  ;;  %v2147_v53 = vmul.f32 0.01, %v1913_v33  ;;  %v1443_v27 = vadd.f32 %v3650_v35, %v1411_v34  ;;  %v1512_v55 = vmul.f32 %v3562_v45, %v1476_v10 }
 0x11b   : > { %v1914_v61 = vadd.f32 %v1882_v28, %v1813_v9  ;;  %v1814_v14 = vadd.f32 %v1782_v15, %v1543_v1  ;;  %v1783_v57 = vmul.f32 %v3573_v43, %v3778_v40  ;;  %v1412_v0 = vmul.f32 %v3550_v59, %v3811_v48 }
 0x11c   : > { %v2179_v50 = vsel %vm2115_vm14, %v1913_v33, %v2147_v53  ;;  %v1544_v54 = vadd.f32 %v1512_v55, %v1443_v27  ;;  %v1884_v20 = vmul.f32 %v3586_v13, %v1474_v38  ;;  %v1513_v60 = vmul.f32 %v3562_v45, %v1477_v7 }
 0x11d   : > { %2544 = vst.msk [vmem:[%s2911_s12 + $0x290] sm:$0xff] %vm233_vm1, %v2179_v50  ;;  %vm2116_vm15 = vcmp.ge.f32.partialorder %v1914_v61, 0.0  ;;  %v2148_v42 = vmul.f32 0.01, %v1914_v61  ;;  %v1915_v22 = vadd.f32 %v1883_v24, %v1814_v14  ;;  %v1444_v58 = vadd.f32 %v3650_v35, %v1412_v0 }
 0x11e   : > { %v1815_v16 = vadd.f32 %v1783_v57, %v1544_v54  ;;  %v1784_v62 = vmul.f32 %v3573_v43, %v3785_v18  ;;  %v1885_v2 = vmul.f32 %v3586_v13, %v1475_v29  ;;  %v1413_v38 = vmul.f32 %v3550_v59, %v3822_v36  ;;  %v3842_v29 = vld [vmem:[#allocation2 + $0x159] sm:$0xff] }
 0x11f   : > { %v2180_v26 = vsel %vm2116_vm15, %v1914_v61, %v2148_v42  ;;  %vm2117_vm0 = vcmp.ge.f32.partialorder %v1915_v22, 0.0  ;;  %v2149_v33 = vmul.f32 0.01, %v1915_v22  ;;  %v1545_v28 = vadd.f32 %v1513_v60, %v1444_v58  ;;  %v1480_v57 = vld [vmem:[#allocation2 + $0x158] sm:$0xff]  ;;  %v3855_v60 = vld [vmem:[#allocation2 + $0x169] sm:$0xff] }
 0x120   : > { %2545 = vst.msk [vmem:[%s2911_s12 + $0x298] sm:$0xff] %vm233_vm1, %v2180_v26  ;;  %v1916_v15 = vadd.f32 %v1884_v20, %v1815_v16  ;;  %v1445_v34 = vadd.f32 %v3650_v35, %v1413_v38  ;;  %v1514_v21 = vmul.f32 %v3562_v45, %v1478_v30  ;;  %v1414_v9 = vmul.f32 %v3550_v59, %v3829_v5 }
 0x121   : > { %v2181_v1 = vsel %vm2117_vm0, %v1915_v22, %v2149_v33  ;;  %v1816_v24 = vadd.f32 %v1784_v62, %v1545_v28  ;;  %v1785_v53 = vmul.f32 %v3573_v43, %v3798_v25  ;;  %v1515_v27 = vmul.f32 %v3562_v45, %v1479_v31  ;;  %v1481_v62 = vld [vmem:[#allocation2 + $0x168] sm:$0xff] }
 0x122   : > { %2546 = vst.msk [vmem:[%s2911_s12 + $0x2a0] sm:$0xff] %vm233_vm1, %v2181_v1  ;;  %vm2118_vm2 = vcmp.ge.f32.partialorder %v1916_v15, 0.0  ;;  %v2150_v55 = vmul.f32 0.01, %v1916_v15  ;;  %v1546_v61 = vadd.f32 %v1514_v21, %v1445_v34  ;;  %v1446_v14 = vadd.f32 %v3650_v35, %v1414_v9  ;;  %v3866_v34 = vld [vmem:[#allocation2 + $0x171] sm:$0xff] }
 0x123   : > { %v1917_v0 = vadd.f32 %v1885_v2, %v1816_v24  ;;  %v1886_v50 = vmul.f32 %v3586_v13, %v1476_v10  ;;  %v1786_v54 = vmul.f32 %v3573_v43, %v3811_v48  ;;  %v1415_v20 = vmul.f32 %v3550_v59, %v3842_v29 }
 0x124   : > { %v2182_v42 = vsel %vm2118_vm2, %v1916_v15, %v2150_v55  ;;  %v1817_v22 = vadd.f32 %v1785_v53, %v1546_v61  ;;  %v1547_v58 = vadd.f32 %v1515_v27, %v1446_v14  ;;  %v1887_v16 = vmul.f32 %v3586_v13, %v1477_v7  ;;  %v1482_v55 = vld [vmem:[#allocation2 + $0x170] sm:$0xff]  ;;  %v3873_v61 = vld [vmem:[#allocation2 + $0x181] sm:$0xff] }
 0x125   : > { %2547 = vst.msk [vmem:[%s2911_s12 + $0x2a8] sm:$0xff] %vm233_vm1, %v2182_v42  ;;  %vm2119_vm3 = vcmp.ge.f32.partialorder %v1917_v0, 0.0  ;;  %v2151_v2 = vmul.f32 0.01, %v1917_v0  ;;  %v1447_v10 = vadd.f32 %v3650_v35, %v1415_v20  ;;  %v1516_v38 = vmul.f32 %v3562_v45, %v1480_v57 }
 0x126   : > { %v1918_v26 = vadd.f32 %v1886_v50, %v1817_v22  ;;  %v1818_v33 = vadd.f32 %v1786_v54, %v1547_v58  ;;  %v1787_v28 = vmul.f32 %v3573_v43, %v3822_v36  ;;  %v1416_v15 = vmul.f32 %v3550_v59, %v3855_v60  ;;  %v1483_v54 = vld [vmem:[#allocation2 + $0x180] sm:$0xff] }
 0x127   : > { %v2183_v7 = vsel %vm2119_vm3, %v1917_v0, %v2151_v2  ;;  %v1548_v21 = vadd.f32 %v1516_v38, %v1447_v10  ;;  %v1888_v9 = vmul.f32 %v3586_v13, %v1478_v30  ;;  %v1517_v1 = vmul.f32 %v3562_v45, %v1481_v62 }
 0x128   : > { %2548 = vst.msk [vmem:[%s2911_s12 + $0x2b0] sm:$0xff] %vm233_vm1, %v2183_v7  ;;  %vm2120_vm4 = vcmp.ge.f32.partialorder %v1918_v26, 0.0  ;;  %v2152_v24 = vmul.f32 0.01, %v1918_v26  ;;  %v1919_v53 = vadd.f32 %v1887_v16, %v1818_v33  ;;  %v1448_v27 = vadd.f32 %v3650_v35, %v1416_v15 }
 0x129   : > { %v1819_v14 = vadd.f32 %v1787_v28, %v1548_v21  ;;  %v1788_v0 = vmul.f32 %v3573_v43, %v3829_v5  ;;  %v1889_v50 = vmul.f32 %v3586_v13, %v1479_v31  ;;  %v1417_v30 = vmul.f32 %v3550_v59, %v3866_v34  ;;  %v3886_v31 = vld [vmem:[#allocation2 + $0x189] sm:$0xff] }
 0x12a   : > { %v2184_v20 = vsel %vm2120_vm4, %v1918_v26, %v2152_v24  ;;  %vm2121_vm5 = vcmp.ge.f32.partialorder %v1919_v53, 0.0  ;;  %v2153_v42 = vmul.f32 0.01, %v1919_v53  ;;  %v1549_v22 = vadd.f32 %v1517_v1, %v1448_v27 }
 0x12b   : > { %2549 = vst.msk [vmem:[%s2911_s12 + $0x2b8] sm:$0xff] %vm233_vm1, %v2184_v20  ;;  %v1920_v58 = vadd.f32 %v1888_v9, %v1819_v14  ;;  %v1449_v16 = vadd.f32 %v3650_v35, %v1417_v30  ;;  %v1518_v2 = vmul.f32 %v3562_v45, %v1482_v55  ;;  %v1418_v10 = vmul.f32 %v3550_v59, %v3873_v61  ;;  %v1484_v9 = vld [vmem:[#allocation2 + $0x188] sm:$0xff]  ;;  %v1556_v14 = vld [vmem:[#allocation2 + $0x32] sm:$0xff] }
 0x12c   : > { %v2185_v38 = vsel %vm2121_vm5, %v1919_v53, %v2153_v42  ;;  %v1820_v33 = vadd.f32 %v1788_v0, %v1549_v22  ;;  %v1789_v26 = vmul.f32 %v3573_v43, %v3842_v29  ;;  %v1519_v28 = vmul.f32 %v3562_v45, %v1483_v54 }
 0x12d   : > { %2550 = vst.msk [vmem:[%s2911_s12 + $0x2c0] sm:$0xff] %vm233_vm1, %v2185_v38  ;;  %vm2122_vm6 = vcmp.ge.f32.partialorder %v1920_v58, 0.0  ;;  %v2154_v15 = vmul.f32 0.01, %v1920_v58  ;;  %v1550_v7 = vadd.f32 %v1518_v2, %v1449_v16  ;;  %v1450_v21 = vadd.f32 %v3650_v35, %v1418_v10  ;;  %v1928_v2 = vld [vmem:[#allocation2 + $0x1a] sm:$0xff] }
 0x12e   : > { %v1921_v1 = vadd.f32 %v1889_v50, %v1820_v33  ;;  %v1890_v24 = vmul.f32 %v3586_v13, %v1480_v57  ;;  %v1790_v53 = vmul.f32 %v3573_v43, %v3855_v60  ;;  %v1419_v27 = vmul.f32 %v3550_v59, %v3886_v31  ;;  %v1557_v10 = vld [vmem:[#allocation2 + $0x3a] sm:$0xff] }
 0x12f   : > { %v2186_v0 = vsel %vm2122_vm6, %v1920_v58, %v2154_v15  ;;  %v1821_v30 = vadd.f32 %v1789_v26, %v1550_v7  ;;  %v1551_v54 = vadd.f32 %v1519_v28, %v1450_v21  ;;  %v1891_v20 = vmul.f32 %v3586_v13, %v1481_v62  ;;  %v3909_v58 = vld [vmem:[%s4219_s0] ss:$0 sm:$0xff]  ;;  %v1558_v21 = vld [vmem:[#allocation2 + $0x4a] sm:$0xff] }
 0x130   : > { %2551 = vst.msk [vmem:[%s2911_s12 + $0x2c8] sm:$0xff] %vm233_vm1, %v2186_v0  ;;  %vm2123_vm7 = vcmp.ge.f32.partialorder %v1921_v1, 0.0  ;;  %v2155_v42 = vmul.f32 0.01, %v1921_v1  ;;  %v1451_v50 = vadd.f32 %v3650_v35, %v1419_v27  ;;  %v1520_v57 = vmul.f32 %v3562_v45, %v1484_v9  ;;  %v3916_v45 = vld [vmem:[%s4219_s0 + $0x2] ss:$0 sm:$0xff] }
 0x131   : > { %v1922_v22 = vadd.f32 %v1890_v24, %v1821_v30  ;;  %v1822_v16 = vadd.f32 %v1790_v53, %v1551_v54  ;;  %v1791_v59 = vmul.f32 %v3573_v43, %v3866_v34  ;;  %v1592_v62 = vmul.f32 %v3909_v58, %v1556_v14  ;;  %v1929_v27 = vld [vmem:[#allocation2 + $0x22] sm:$0xff] }
 0x132   : > { %v2187_v38 = vsel %vm2123_vm7, %v1921_v1, %v2155_v42  ;;  %v1552_v33 = vadd.f32 %v1520_v57, %v1451_v50  ;;  %v1892_v26 = vmul.f32 %v3586_v13, %v1482_v55  ;;  %v1661_v43 = vmul.f32 %v3916_v45, %v3536_v11  ;;  %v3926_v13 = vld [vmem:[%s4219_s0 + $0x8] ss:$0 sm:$0xff]  ;;  %v3932_v1 = vld [vmem:[%s4219_s0 + $0xa] ss:$0 sm:$0xff] }
 0x133   : > { %2552 = vst.msk [vmem:[%s2911_s12 + $0x2d0] sm:$0xff] %vm233_vm1, %v2187_v38  ;;  %vm2124_vm8 = vcmp.ge.f32.partialorder %v1922_v22, 0.0  ;;  %v2156_v28 = vmul.f32 0.01, %v1922_v22  ;;  %v1923_v15 = vadd.f32 %v1891_v20, %v1822_v16  ;;  %v1624_v7 = vadd.f32 %v3650_v35, %v1592_v62  ;;  %v1559_v16 = vld [vmem:[#allocation2 + $0x52] sm:$0xff] }
 0x134   : > { %v1823_v9 = vadd.f32 %v1791_v59, %v1552_v33  ;;  %v1964_v55 = vmul.f32 %v3926_v13, %v1928_v2  ;;  %v2033_v24 = vmul.f32 %v3932_v1, %v3554_v39  ;;  %v1593_v53 = vmul.f32 %v3909_v58, %v1557_v10 }
 0x135   : > { %v2188_v0 = vsel %vm2124_vm8, %v1922_v22, %v2156_v28  ;;  %vm2125_vm9 = vcmp.ge.f32.partialorder %v1923_v15, 0.0  ;;  %v2157_v30 = vmul.f32 0.01, %v1923_v15  ;;  %v1693_v54 = vadd.f32 %v1661_v43, %v1624_v7  ;;  %v1560_v7 = vld [vmem:[#allocation2 + $0x62] sm:$0xff] }
 0x136   : > { %2553 = vst.msk [vmem:[%s2911_s12 + $0x2d8] sm:$0xff] %vm233_vm1, %v2188_v0  ;;  %v1924_v20 = vadd.f32 %v1892_v26, %v1823_v9  ;;  %v1625_v42 = vadd.f32 %v3650_v35, %v1593_v53  ;;  %v1662_v50 = vmul.f32 %v3916_v45, %v3556_v44  ;;  %v1594_v57 = vmul.f32 %v3909_v58, %v1558_v21 }
 0x137   : > { %v2189_v39 = vsel %vm2125_vm9, %v1923_v15, %v2157_v30  ;;  %v1996_v59 = vadd.f32 %v1964_v55, %v1693_v54  ;;  %v1965_v62 = vmul.f32 %v3926_v13, %v1929_v27  ;;  %v1663_v22 = vmul.f32 %v3916_v45, %v3581_v6 }
 0x138   : > { %2554 = vst.msk [vmem:[%s2911_s12 + $0x2e0] sm:$0xff] %vm233_vm1, %v2189_v39  ;;  %vm2126_vm10 = vcmp.ge.f32.partialorder %v1924_v20, 0.0  ;;  %v2158_v2 = vmul.f32 0.01, %v1924_v20  ;;  %v1694_v38 = vadd.f32 %v1662_v50, %v1625_v42  ;;  %v1626_v33 = vadd.f32 %v3650_v35, %v1594_v57  ;;  %v1561_v42 = vld [vmem:[#allocation2 + $0x6a] sm:$0xff] }
 0x139   : > { %v2065_v26 = vadd.f32 %v2033_v24, %v1996_v59  ;;  %v2034_v43 = vmul.f32 %v3932_v1, %v3579_v3  ;;  %v1966_v28 = vmul.f32 %v3926_v13, %v1556_v14  ;;  %v1595_v15 = vmul.f32 %v3909_v58, %v1559_v16 }
 0x13a   : > { %v2190_v9 = vsel %vm2126_vm10, %v1924_v20, %v2158_v2  ;;  %v1997_v55 = vadd.f32 %v1965_v62, %v1694_v38  ;;  %v1695_v53 = vadd.f32 %v1663_v22, %v1626_v33  ;;  %v2035_v27 = vmul.f32 %v3932_v1, %v3536_v11 }
 0x13b   : > { %2555 = vst.msk [vmem:[%s2911_s12 + $0x2e8] sm:$0xff] %vm233_vm1, %v2190_v9  ;;  %vm2226_vm11 = vcmp.ge.f32.partialorder %v2065_v26, 0.0  ;;  %v2258_v0 = vmul.f32 0.01, %v2065_v26  ;;  %v1627_v24 = vadd.f32 %v3650_v35, %v1595_v15  ;;  %v1664_v3 = vmul.f32 %v3916_v45, %v3597_v51 }
 0x13c   : > { %v2066_v14 = vadd.f32 %v2034_v43, %v1997_v55  ;;  %v1998_v30 = vadd.f32 %v1966_v28, %v1695_v53  ;;  %v1967_v54 = vmul.f32 %v3926_v13, %v1557_v10  ;;  %v1596_v20 = vmul.f32 %v3909_v58, %v1560_v7  ;;  %v1562_v10 = vld [vmem:[#allocation2 + $0x7a] sm:$0xff]  ;;  %v1563_v53 = vld [vmem:[#allocation2 + $0x82] sm:$0xff] }
 0x13d   : > { %v2290_v50 = vsel %vm2226_vm11, %v2065_v26, %v2258_v0  ;;  %v1696_v57 = vadd.f32 %v1664_v3, %v1627_v24  ;;  %v2036_v11 = vmul.f32 %v3932_v1, %v3556_v44  ;;  %v1665_v39 = vmul.f32 %v3916_v45, %v3604_v19 }
 0x13e   : > { %2558 = vst.msk [vmem:[%s2911_s12 + $0x300] sm:$0xff] %vm233_vm1, %v2290_v50  ;;  %vm2227_vm12 = vcmp.ge.f32.partialorder %v2066_v14, 0.0  ;;  %v2259_v59 = vmul.f32 0.01, %v2066_v14  ;;  %v2067_v62 = vadd.f32 %v2035_v27, %v1998_v30  ;;  %v1628_v22 = vadd.f32 %v3650_v35, %v1596_v20 }
 0x13f   : > { %v1999_v2 = vadd.f32 %v1967_v54, %v1696_v57  ;;  %v1968_v38 = vmul.f32 %v3926_v13, %v1558_v21  ;;  %v2037_v33 = vmul.f32 %v3932_v1, %v3581_v6  ;;  %v1597_v44 = vmul.f32 %v3909_v58, %v1561_v42 }
 0x140   : > { %v2291_v26 = vsel %vm2227_vm12, %v2066_v14, %v2259_v59  ;;  %vm2228_vm13 = vcmp.ge.f32.partialorder %v2067_v62, 0.0  ;;  %v2260_v43 = vmul.f32 0.01, %v2067_v62  ;;  %v1697_v28 = vadd.f32 %v1665_v39, %v1628_v22 }
 0x141   : > { %2559 = vst.msk [vmem:[%s2911_s12 + $0x308] sm:$0xff] %vm233_vm1, %v2291_v26  ;;  %v2068_v15 = vadd.f32 %v2036_v11, %v1999_v2  ;;  %v1629_v9 = vadd.f32 %v3650_v35, %v1597_v44  ;;  %v1666_v55 = vmul.f32 %v3916_v45, %v3617_v56  ;;  %v1598_v21 = vmul.f32 %v3909_v58, %v1562_v10  ;;  %v1565_v26 = vld [vmem:[#allocation2 + $0x9a] sm:$0xff] }
 0x142   : > { %v2292_v27 = vsel %vm2228_vm13, %v2067_v62, %v2260_v43  ;;  %v2000_v6 = vadd.f32 %v1968_v38, %v1697_v28  ;;  %v1969_v0 = vmul.f32 %v3926_v13, %v1559_v16  ;;  %v1667_v24 = vmul.f32 %v3916_v45, %v3630_v52  ;;  %v1564_v16 = vld [vmem:[#allocation2 + $0x92] sm:$0xff] }
 0x143   : > { %2560 = vst.msk [vmem:[%s2911_s12 + $0x310] sm:$0xff] %vm233_vm1, %v2292_v27  ;;  %vm2229_vm14 = vcmp.ge.f32.partialorder %v2068_v15, 0.0  ;;  %v2261_v3 = vmul.f32 0.01, %v2068_v15  ;;  %v1698_v14 = vadd.f32 %v1666_v55, %v1629_v9  ;;  %v1630_v30 = vadd.f32 %v3650_v35, %v1598_v21 }
 0x144   : > { %v2069_v54 = vadd.f32 %v2037_v33, %v2000_v6  ;;  %v2038_v20 = vmul.f32 %v3932_v1, %v3597_v51  ;;  %v1970_v50 = vmul.f32 %v3926_v13, %v1560_v7  ;;  %v1599_v57 = vmul.f32 %v3909_v58, %v1563_v53 }
 0x145   : > { %v2293_v11 = vsel %vm2229_vm14, %v2068_v15, %v2261_v3  ;;  %v2001_v39 = vadd.f32 %v1969_v0, %v1698_v14  ;;  %v1699_v59 = vadd.f32 %v1667_v24, %v1630_v30  ;;  %v2039_v62 = vmul.f32 %v3932_v1, %v3604_v19 }
 0x146   : > { %2561 = vst.msk [vmem:[%s2911_s12 + $0x318] sm:$0xff] %vm233_vm1, %v2293_v11  ;;  %vm2230_vm15 = vcmp.ge.f32.partialorder %v2069_v54, 0.0  ;;  %v2262_v22 = vmul.f32 0.01, %v2069_v54  ;;  %v1631_v2 = vadd.f32 %v3650_v35, %v1599_v57  ;;  %v1668_v51 = vmul.f32 %v3916_v45, %v3641_v8 }
 0x147   : > { %v2070_v7 = vadd.f32 %v2038_v20, %v2001_v39  ;;  %v2002_v38 = vadd.f32 %v1970_v50, %v1699_v59  ;;  %v1971_v33 = vmul.f32 %v3926_v13, %v1561_v42  ;;  %v1600_v44 = vmul.f32 %v3909_v58, %v1564_v16  ;;  %v1566_v42 = vld [vmem:[#allocation2 + $0xaa] sm:$0xff]  ;;  %v1567_v50 = vld [vmem:[#allocation2 + $0xb2] sm:$0xff] }
 0x148   : > { %v2294_v43 = vsel %vm2230_vm15, %v2069_v54, %v2262_v22  ;;  %v1700_v28 = vadd.f32 %v1668_v51, %v1631_v2  ;;  %v2040_v19 = vmul.f32 %v3932_v1, %v3617_v56  ;;  %v1669_v15 = vmul.f32 %v3916_v45, %v3653_v46 }
 0x149   : > { %2562 = vst.msk [vmem:[%s2911_s12 + $0x320] sm:$0xff] %vm233_vm1, %v2294_v43  ;;  %vm2231_vm0 = vcmp.ge.f32.partialorder %v2070_v7, 0.0  ;;  %v2263_v9 = vmul.f32 0.01, %v2070_v7  ;;  %v2071_v55 = vadd.f32 %v2039_v62, %v2002_v38  ;;  %v1632_v21 = vadd.f32 %v3650_v35, %v1600_v44 }
 0x14a   : > { %v2003_v27 = vadd.f32 %v1971_v33, %v1700_v28  ;;  %v1972_v6 = vmul.f32 %v3926_v13, %v1562_v10  ;;  %v2041_v0 = vmul.f32 %v3932_v1, %v3630_v52  ;;  %v1601_v56 = vmul.f32 %v3909_v58, %v1565_v26 }
 0x14b   : > { %v2295_v24 = vsel %vm2231_vm0, %v2070_v7, %v2263_v9  ;;  %vm2232_vm2 = vcmp.ge.f32.partialorder %v2071_v55, 0.0  ;;  %v2264_v3 = vmul.f32 0.01, %v2071_v55  ;;  %v1701_v14 = vadd.f32 %v1669_v15, %v1632_v21 }
 0x14c   : > { %2563 = vst.msk [vmem:[%s2911_s12 + $0x328] sm:$0xff] %vm233_vm1, %v2295_v24  ;;  %v2072_v30 = vadd.f32 %v2040_v19, %v2003_v27  ;;  %v1633_v54 = vadd.f32 %v3650_v35, %v1601_v56  ;;  %v1670_v20 = vmul.f32 %v3916_v45, %v3666_v37  ;;  %v1602_v10 = vmul.f32 %v3909_v58, %v1566_v42  ;;  %v1569_v27 = vld [vmem:[#allocation2 + $0xca] sm:$0xff] }
 0x14d   : > { %v2296_v57 = vsel %vm2232_vm2, %v2071_v55, %v2264_v3  ;;  %v2004_v52 = vadd.f32 %v1972_v6, %v1701_v14  ;;  %v1973_v11 = vmul.f32 %v3926_v13, %v1563_v53  ;;  %v1671_v39 = vmul.f32 %v3916_v45, %v3679_v49  ;;  %v1568_v53 = vld [vmem:[#allocation2 + $0xc2] sm:$0xff] }
 0x14e   : > { %2564 = vst.msk [vmem:[%s2911_s12 + $0x330] sm:$0xff] %vm233_vm1, %v2296_v57  ;;  %vm2233_vm3 = vcmp.ge.f32.partialorder %v2072_v30, 0.0  ;;  %v2265_v59 = vmul.f32 0.01, %v2072_v30  ;;  %v1702_v62 = vadd.f32 %v1670_v20, %v1633_v54  ;;  %v1634_v22 = vadd.f32 %v3650_v35, %v1602_v10 }
 0x14f   : > { %v2073_v2 = vadd.f32 %v2041_v0, %v2004_v52  ;;  %v2042_v51 = vmul.f32 %v3932_v1, %v3641_v8  ;;  %v1974_v7 = vmul.f32 %v3926_v13, %v1564_v16  ;;  %v1603_v38 = vmul.f32 %v3909_v58, %v1567_v50 }
 0x150   : > { %v2297_v33 = vsel %vm2233_vm3, %v2072_v30, %v2265_v59  ;;  %v2005_v44 = vadd.f32 %v1973_v11, %v1702_v62  ;;  %v1703_v43 = vadd.f32 %v1671_v39, %v1634_v22  ;;  %v2043_v28 = vmul.f32 %v3932_v1, %v3653_v46  ;;  %v1571_v62 = vld [vmem:[#allocation2 + $0xe2] sm:$0xff] }
 0x151   : > { %2565 = vst.msk [vmem:[%s2911_s12 + $0x338] sm:$0xff] %vm233_vm1, %v2297_v33  ;;  %vm2234_vm4 = vcmp.ge.f32.partialorder %v2073_v2, 0.0  ;;  %v2266_v19 = vmul.f32 0.01, %v2073_v2  ;;  %v1635_v15 = vadd.f32 %v3650_v35, %v1603_v38  ;;  %v1672_v8 = vmul.f32 %v3916_v45, %v3690_v41 }
 0x152   : > { %v2074_v16 = vadd.f32 %v2042_v51, %v2005_v44  ;;  %v2006_v9 = vadd.f32 %v1974_v7, %v1703_v43  ;;  %v1975_v55 = vmul.f32 %v3926_v13, %v1565_v26  ;;  %v1604_v21 = vmul.f32 %v3909_v58, %v1568_v53  ;;  %v1570_v26 = vld [vmem:[#allocation2 + $0xda] sm:$0xff] }
 0x153   : > { %v2298_v6 = vsel %vm2234_vm4, %v2073_v2, %v2266_v19  ;;  %v1704_v0 = vadd.f32 %v1672_v8, %v1635_v15  ;;  %v2044_v46 = vmul.f32 %v3932_v1, %v3666_v37  ;;  %v1673_v56 = vmul.f32 %v3916_v45, %v3697_v63  ;;  %v1572_v19 = vld [vmem:[#allocation2 + $0xf2] sm:$0xff] }
 0x154   : > { %2566 = vst.msk [vmem:[%s2911_s12 + $0x340] sm:$0xff] %vm233_vm1, %v2298_v6  ;;  %vm2235_vm5 = vcmp.ge.f32.partialorder %v2074_v16, 0.0  ;;  %v2267_v24 = vmul.f32 0.01, %v2074_v16  ;;  %v2075_v3 = vadd.f32 %v2043_v28, %v2006_v9  ;;  %v1636_v14 = vadd.f32 %v3650_v35, %v1604_v21 }
 0x155   : > { %v2007_v30 = vadd.f32 %v1975_v55, %v1704_v0  ;;  %v1976_v54 = vmul.f32 %v3926_v13, %v1566_v42  ;;  %v2045_v20 = vmul.f32 %v3932_v1, %v3679_v49  ;;  %v1605_v37 = vmul.f32 %v3909_v58, %v1569_v27 }
 0x156   : > { %v2299_v10 = vsel %vm2235_vm5, %v2074_v16, %v2267_v24  ;;  %vm2236_vm6 = vcmp.ge.f32.partialorder %v2075_v3, 0.0  ;;  %v2268_v57 = vmul.f32 0.01, %v2075_v3  ;;  %v1705_v52 = vadd.f32 %v1673_v56, %v1636_v14  ;;  %v1573_v56 = vld [vmem:[#allocation2 + $0xfa] sm:$0xff] }
 0x157   : > { %2567 = vst.msk [vmem:[%s2911_s12 + $0x348] sm:$0xff] %vm233_vm1, %v2299_v10  ;;  %v2076_v11 = vadd.f32 %v2044_v46, %v2007_v30  ;;  %v1637_v39 = vadd.f32 %v3650_v35, %v1605_v37  ;;  %v1674_v59 = vmul.f32 %v3916_v45, %v3710_v47  ;;  %v1606_v42 = vmul.f32 %v3909_v58, %v1570_v26  ;;  %v4059_v35 = vld [vmem:[%s4220_s1] ss:$0 sm:$0xff] }
 0x158   : > { %v2300_v22 = vsel %vm2236_vm6, %v2075_v3, %v2268_v57  ;;  %v2008_v49 = vadd.f32 %v1976_v54, %v1705_v52  ;;  %v1977_v2 = vmul.f32 %v3926_v13, %v1567_v50  ;;  %v1675_v51 = vmul.f32 %v3916_v45, %v3723_v32 }
 0x159   : > { %2568 = vst.msk [vmem:[%s2911_s12 + $0x350] sm:$0xff] %vm233_vm1, %v2300_v22  ;;  %vm2237_vm7 = vcmp.ge.f32.partialorder %v2076_v11, 0.0  ;;  %v2269_v7 = vmul.f32 0.01, %v2076_v11  ;;  %v1706_v38 = vadd.f32 %v1674_v59, %v1637_v39  ;;  %v1638_v33 = vadd.f32 %v4059_v35, %v1606_v42 }
 0x15a   : > { %v2077_v44 = vadd.f32 %v2045_v20, %v2008_v49  ;;  %v2046_v50 = vmul.f32 %v3932_v1, %v3690_v41  ;;  %v1978_v43 = vmul.f32 %v3926_v13, %v1568_v53  ;;  %v1607_v28 = vmul.f32 %v3909_v58, %v1571_v62  ;;  %v1575_v49 = vld [vmem:[#allocation2 + $0x112] sm:$0xff] }
 0x15b   : > { %v2301_v15 = vsel %vm2237_vm7, %v2076_v11, %v2269_v7  ;;  %v2009_v8 = vadd.f32 %v1977_v2, %v1706_v38  ;;  %v1707_v16 = vadd.f32 %v1675_v51, %v1638_v33  ;;  %v2047_v9 = vmul.f32 %v3932_v1, %v3697_v63 }
 0x15c   : > { %2569 = vst.msk [vmem:[%s2911_s12 + $0x358] sm:$0xff] %vm233_vm1, %v2301_v15  ;;  %vm2238_vm8 = vcmp.ge.f32.partialorder %v2077_v44, 0.0  ;;  %v2270_v55 = vmul.f32 0.01, %v2077_v44  ;;  %v1639_v21 = vadd.f32 %v4059_v35, %v1607_v28  ;;  %v1676_v41 = vmul.f32 %v3916_v45, %v3734_v12 }
 0x15d   : > { %v2078_v53 = vadd.f32 %v2046_v50, %v2009_v8  ;;  %v2010_v6 = vadd.f32 %v1978_v43, %v1707_v16  ;;  %v1979_v0 = vmul.f32 %v3926_v13, %v1569_v27  ;;  %v1608_v46 = vmul.f32 %v3909_v58, %v1572_v19  ;;  %v1574_v27 = vld [vmem:[#allocation2 + $0x10a] sm:$0xff] }
 0x15e   : > { %v2302_v24 = vsel %vm2238_vm8, %v2077_v44, %v2270_v55  ;;  %v1708_v3 = vadd.f32 %v1676_v41, %v1639_v21  ;;  %v2048_v63 = vmul.f32 %v3932_v1, %v3710_v47  ;;  %v1677_v14 = vmul.f32 %v3916_v45, %v3741_v17 }
 0x15f   : > { %2570 = vst.msk [vmem:[%s2911_s12 + $0x360] sm:$0xff] %vm233_vm1, %v2302_v24  ;;  %vm2239_vm9 = vcmp.ge.f32.partialorder %v2078_v53, 0.0  ;;  %v2271_v30 = vmul.f32 0.01, %v2078_v53  ;;  %v2079_v54 = vadd.f32 %v2047_v9, %v2010_v6  ;;  %v1640_v20 = vadd.f32 %v4059_v35, %v1608_v46  ;;  %v1577_v46 = vld [vmem:[#allocation2 + $0x12a] sm:$0xff] }
 0x160   : > { %v2011_v37 = vadd.f32 %v1979_v0, %v1708_v3  ;;  %v1980_v10 = vmul.f32 %v3926_v13, %v1570_v26  ;;  %v2049_v57 = vmul.f32 %v3932_v1, %v3723_v32  ;;  %v1609_v47 = vmul.f32 %v3909_v58, %v1573_v56 }
 0x161   : > { %v2303_v52 = vsel %vm2239_vm9, %v2078_v53, %v2271_v30  ;;  %vm2240_vm10 = vcmp.ge.f32.partialorder %v2079_v54, 0.0  ;;  %v2272_v11 = vmul.f32 0.01, %v2079_v54  ;;  %v1709_v39 = vadd.f32 %v1677_v14, %v1640_v20 }
 0x162   : > { %2571 = vst.msk [vmem:[%s2911_s12 + $0x368] sm:$0xff] %vm233_vm1, %v2303_v52  ;;  %v2080_v59 = vadd.f32 %v2048_v63, %v2011_v37  ;;  %v1641_v42 = vadd.f32 %v4059_v35, %v1609_v47  ;;  %v1678_v22 = vmul.f32 %v3916_v45, %v3754_v23  ;;  %v1610_v26 = vmul.f32 %v3909_v58, %v1574_v27 }
 0x163   : > { %v2304_v2 = vsel %vm2240_vm10, %v2079_v54, %v2272_v11  ;;  %v2012_v32 = vadd.f32 %v1980_v10, %v1709_v39  ;;  %v1981_v51 = vmul.f32 %v3926_v13, %v1571_v62  ;;  %v1679_v7 = vmul.f32 %v3916_v45, %v3767_v4  ;;  %v1576_v62 = vld [vmem:[#allocation2 + $0x122] sm:$0xff] }
 0x164   : > { %2572 = vst.msk [vmem:[%s2911_s12 + $0x370] sm:$0xff] %vm233_vm1, %v2304_v2  ;;  %vm2241_vm11 = vcmp.ge.f32.partialorder %v2080_v59, 0.0  ;;  %v2273_v38 = vmul.f32 0.01, %v2080_v59  ;;  %v1710_v33 = vadd.f32 %v1678_v22, %v1641_v42  ;;  %v1642_v44 = vadd.f32 %v4059_v35, %v1610_v26  ;;  %v1579_v42 = vld [vmem:[#allocation2 + $0x142] sm:$0xff] }
 0x165   : > { %v2081_v50 = vadd.f32 %v2049_v57, %v2012_v32  ;;  %v2050_v43 = vmul.f32 %v3932_v1, %v3734_v12  ;;  %v1982_v28 = vmul.f32 %v3926_v13, %v1572_v19  ;;  %v1611_v15 = vmul.f32 %v3909_v58, %v1575_v49 }
 0x166   : > { %v2305_v8 = vsel %vm2241_vm11, %v2080_v59, %v2273_v38  ;;  %v2013_v16 = vadd.f32 %v1981_v51, %v1710_v33  ;;  %v1711_v9 = vadd.f32 %v1679_v7, %v1642_v44  ;;  %v2051_v55 = vmul.f32 %v3932_v1, %v3741_v17 }
 0x167   : > { %2573 = vst.msk [vmem:[%s2911_s12 + $0x378] sm:$0xff] %vm233_vm1, %v2305_v8  ;;  %vm2242_vm12 = vcmp.ge.f32.partialorder %v2081_v50, 0.0  ;;  %v2274_v21 = vmul.f32 0.01, %v2081_v50  ;;  %v1643_v41 = vadd.f32 %v4059_v35, %v1611_v15  ;;  %v1680_v12 = vmul.f32 %v3916_v45, %v3778_v40 }
 0x168   : > { %v2082_v19 = vadd.f32 %v2050_v43, %v2013_v16  ;;  %v2014_v53 = vadd.f32 %v1982_v28, %v1711_v9  ;;  %v1983_v6 = vmul.f32 %v3926_v13, %v1573_v56  ;;  %v1612_v0 = vmul.f32 %v3909_v58, %v1576_v62  ;;  %v1578_v56 = vld [vmem:[#allocation2 + $0x13a] sm:$0xff] }
 0x169   : > { %v2306_v24 = vsel %vm2242_vm12, %v2081_v50, %v2274_v21  ;;  %v1712_v3 = vadd.f32 %v1680_v12, %v1643_v41  ;;  %v2052_v17 = vmul.f32 %v3932_v1, %v3754_v23  ;;  %v1681_v63 = vmul.f32 %v3916_v45, %v3785_v18  ;;  %v1581_v12 = vld [vmem:[#allocation2 + $0x15a] sm:$0xff] }
 0x16a   : > { %2574 = vst.msk [vmem:[%s2911_s12 + $0x380] sm:$0xff] %vm233_vm1, %v2306_v24  ;;  %vm2243_vm13 = vcmp.ge.f32.partialorder %v2082_v19, 0.0  ;;  %v2275_v14 = vmul.f32 0.01, %v2082_v19  ;;  %v2083_v30 = vadd.f32 %v2051_v55, %v2014_v53  ;;  %v1644_v54 = vadd.f32 %v4059_v35, %v1612_v0 }
 0x16b   : > { %v2015_v20 = vadd.f32 %v1983_v6, %v1712_v3  ;;  %v1984_v37 = vmul.f32 %v3926_v13, %v1574_v27  ;;  %v2053_v10 = vmul.f32 %v3932_v1, %v3767_v4  ;;  %v1613_v23 = vmul.f32 %v3909_v58, %v1577_v46 }
 0x16c   : > { %v2307_v57 = vsel %vm2243_vm13, %v2082_v19, %v2275_v14  ;;  %vm2244_vm14 = vcmp.ge.f32.partialorder %v2083_v30, 0.0  ;;  %v2276_v47 = vmul.f32 0.01, %v2083_v30  ;;  %v1713_v52 = vadd.f32 %v1681_v63, %v1644_v54 }
 0x16d   : > { %2575 = vst.msk [vmem:[%s2911_s12 + $0x388] sm:$0xff] %vm233_vm1, %v2307_v57  ;;  %v2084_v11 = vadd.f32 %v2052_v17, %v2015_v20  ;;  %v1645_v39 = vadd.f32 %v4059_v35, %v1613_v23  ;;  %v1682_v59 = vmul.f32 %v3916_v45, %v3798_v25  ;;  %v1614_v27 = vmul.f32 %v3909_v58, %v1578_v56  ;;  %v1583_v57 = vld [vmem:[#allocation2 + $0x172] sm:$0xff] }
 0x16e   : > { %v2308_v22 = vsel %vm2244_vm14, %v2083_v30, %v2276_v47  ;;  %v2016_v4 = vadd.f32 %v1984_v37, %v1713_v52  ;;  %v1985_v26 = vmul.f32 %v3926_v13, %v1575_v49  ;;  %v1683_v2 = vmul.f32 %v3916_v45, %v3811_v48  ;;  %v1580_v49 = vld [vmem:[#allocation2 + $0x152] sm:$0xff] }
 0x16f   : > { %2576 = vst.msk [vmem:[%s2911_s12 + $0x390] sm:$0xff] %vm233_vm1, %v2308_v22  ;;  %vm2245_vm15 = vcmp.ge.f32.partialorder %v2084_v11, 0.0  ;;  %v2277_v32 = vmul.f32 0.01, %v2084_v11  ;;  %v1714_v51 = vadd.f32 %v1682_v59, %v1645_v39  ;;  %v1646_v7 = vadd.f32 %v4059_v35, %v1614_v27 }
 0x170   : > { %v2085_v38 = vadd.f32 %v2053_v10, %v2016_v4  ;;  %v2054_v33 = vmul.f32 %v3932_v1, %v3778_v40  ;;  %v1986_v44 = vmul.f32 %v3926_v13, %v1576_v62  ;;  %v1615_v50 = vmul.f32 %v3909_v58, %v1579_v42 }
 0x171   : > { %v2309_v43 = vsel %vm2245_vm15, %v2084_v11, %v2277_v32  ;;  %v2017_v28 = vadd.f32 %v1985_v26, %v1714_v51  ;;  %v1715_v15 = vadd.f32 %v1683_v2, %v1646_v7  ;;  %v2055_v8 = vmul.f32 %v3932_v1, %v3785_v18  ;;  %v1584_v2 = vld [vmem:[#allocation2 + $0x182] sm:$0xff] }
 0x172   : > { %2577 = vst.msk [vmem:[%s2911_s12 + $0x398] sm:$0xff] %vm233_vm1, %v2309_v43  ;;  %vm2246_vm0 = vcmp.ge.f32.partialorder %v2085_v38, 0.0  ;;  %v2278_v16 = vmul.f32 0.01, %v2085_v38  ;;  %v1647_v9 = vadd.f32 %v4059_v35, %v1615_v50  ;;  %v1684_v40 = vmul.f32 %v3916_v45, %v3822_v36 }
 0x173   : > { %v2086_v62 = vadd.f32 %v2054_v33, %v2017_v28  ;;  %v2018_v55 = vadd.f32 %v1986_v44, %v1715_v15  ;;  %v1987_v21 = vmul.f32 %v3926_v13, %v1577_v46  ;;  %v1616_v41 = vmul.f32 %v3909_v58, %v1580_v49  ;;  %v1582_v46 = vld [vmem:[#allocation2 + $0x16a] sm:$0xff] }
 0x174   : > { %v2310_v19 = vsel %vm2246_vm0, %v2085_v38, %v2278_v16  ;;  %v1716_v53 = vadd.f32 %v1684_v40, %v1647_v9  ;;  %v2056_v18 = vmul.f32 %v3932_v1, %v3798_v25  ;;  %v1685_v6 = vmul.f32 %v3916_v45, %v3829_v5  ;;  %v1585_v15 = vld [vmem:[#allocation2 + $0x18a] sm:$0xff] }
 0x175   : > { %2578 = vst.msk [vmem:[%s2911_s12 + $0x3a0] sm:$0xff] %vm233_vm1, %v2310_v19  ;;  %vm2247_vm2 = vcmp.ge.f32.partialorder %v2086_v62, 0.0  ;;  %v2279_v0 = vmul.f32 0.01, %v2086_v62  ;;  %v2087_v24 = vadd.f32 %v2055_v8, %v2018_v55  ;;  %v1648_v3 = vadd.f32 %v4059_v35, %v1616_v41 }
 0x176   : > { %v2019_v17 = vadd.f32 %v1987_v21, %v1716_v53  ;;  %v1988_v63 = vmul.f32 %v3926_v13, %v1578_v56  ;;  %v2057_v14 = vmul.f32 %v3932_v1, %v3811_v48  ;;  %v1617_v25 = vmul.f32 %v3909_v58, %v1581_v12 }
 0x177   : > { %v2311_v30 = vsel %vm2247_vm2, %v2086_v62, %v2279_v0  ;;  %vm2248_vm3 = vcmp.ge.f32.partialorder %v2087_v24, 0.0  ;;  %v2280_v54 = vmul.f32 0.01, %v2087_v24  ;;  %v1717_v20 = vadd.f32 %v1685_v6, %v1648_v3 }
 0x178   : > { %2579 = vst.msk [vmem:[%s2911_s12 + $0x3a8] sm:$0xff] %vm233_vm1, %v2311_v30  ;;  %v2088_v37 = vadd.f32 %v2056_v18, %v2019_v17  ;;  %v1649_v10 = vadd.f32 %v4059_v35, %v1617_v25  ;;  %v1686_v23 = vmul.f32 %v3916_v45, %v3842_v29  ;;  %v1618_v56 = vmul.f32 %v3909_v58, %v1582_v46 }
 0x179   : > { %v2312_v47 = vsel %vm2248_vm3, %v2087_v24, %v2280_v54  ;;  %v2020_v48 = vadd.f32 %v1988_v63, %v1717_v20  ;;  %v1989_v52 = vmul.f32 %v3926_v13, %v1579_v42  ;;  %v1687_v11 = vmul.f32 %v3916_v45, %v3855_v60 }
 0x17a   : > { %2580 = vst.msk [vmem:[%s2911_s12 + $0x3b0] sm:$0xff] %vm233_vm1, %v2312_v47  ;;  %vm2249_vm4 = vcmp.ge.f32.partialorder %v2088_v37, 0.0  ;;  %v2281_v39 = vmul.f32 0.01, %v2088_v37  ;;  %v1718_v59 = vadd.f32 %v1686_v23, %v1649_v10  ;;  %v1650_v27 = vadd.f32 %v4059_v35, %v1618_v56 }
 0x17b   : > { %v2089_v22 = vadd.f32 %v2057_v14, %v2020_v48  ;;  %v2058_v4 = vmul.f32 %v3932_v1, %v3822_v36  ;;  %v1619_v26 = vmul.f32 %v3909_v58, %v1583_v57  ;;  %v1990_v7 = vmul.f32 %v3926_v13, %v1580_v49 }
 0x17c   : > { %v2313_v32 = vsel %vm2249_vm4, %v2088_v37, %v2281_v39  ;;  %v2021_v51 = vadd.f32 %v1989_v52, %v1718_v59  ;;  %v1719_v42 = vadd.f32 %v1687_v11, %v1650_v27  ;;  %v1688_v44 = vmul.f32 %v3916_v45, %v3866_v34 }
 0x17d   : > { %2581 = vst.msk [vmem:[%s2911_s12 + $0x3b8] sm:$0xff] %vm233_vm1, %v2313_v32  ;;  %vm2250_vm5 = vcmp.ge.f32.partialorder %v2089_v22, 0.0  ;;  %v2282_v38 = vmul.f32 0.01, %v2089_v22  ;;  %v1651_v33 = vadd.f32 %v4059_v35, %v1619_v26  ;;  %v2059_v43 = vmul.f32 %v3932_v1, %v3829_v5 }
 0x17e   : > { %v2090_v50 = vadd.f32 %v2058_v4, %v2021_v51  ;;  %v2022_v36 = vadd.f32 %v1990_v7, %v1719_v42  ;;  %v1620_v28 = vmul.f32 %v3909_v58, %v1584_v2  ;;  %v1991_v49 = vmul.f32 %v3926_v13, %v1581_v12 }
 0x17f   : > { %v2314_v8 = vsel %vm2250_vm5, %v2089_v22, %v2282_v38  ;;  %v1720_v16 = vadd.f32 %v1688_v44, %v1651_v33  ;;  %v1689_v9 = vmul.f32 %v3916_v45, %v3873_v61  ;;  %v2060_v21 = vmul.f32 %v3932_v1, %v3842_v29 }
 0x180   : > { %2582 = vst.msk [vmem:[%s2911_s12 + $0x3c0] sm:$0xff] %vm233_vm1, %v2314_v8  ;;  %vm2251_vm6 = vcmp.ge.f32.partialorder %v2090_v50, 0.0  ;;  %v2283_v40 = vmul.f32 0.01, %v2090_v50  ;;  %v2091_v62 = vadd.f32 %v2059_v43, %v2022_v36  ;;  %v1652_v55 = vadd.f32 %v4059_v35, %v1620_v28 }
 0x181   : > { %v2023_v5 = vadd.f32 %v1991_v49, %v1720_v16  ;;  %v1992_v41 = vmul.f32 %v3926_v13, %v1582_v46  ;;  %v1621_v19 = vmul.f32 %v3909_v58, %v1585_v15  ;;  %v1690_v0 = vmul.f32 %v3916_v45, %v3886_v31 }
 0x182   : > { %v2315_v12 = vsel %vm2251_vm6, %v2090_v50, %v2283_v40  ;;  %vm2252_vm7 = vcmp.ge.f32.partialorder %v2091_v62, 0.0  ;;  %v2284_v53 = vmul.f32 0.01, %v2091_v62  ;;  %v1721_v61 = vadd.f32 %v1689_v9, %v1652_v55 }
 0x183   : > { %2583 = vst.msk [vmem:[%s2911_s12 + $0x3c8] sm:$0xff] %vm233_vm1, %v2315_v12  ;;  %v2092_v18 = vadd.f32 %v2060_v21, %v2023_v5  ;;  %v1653_v6 = vadd.f32 %v4059_v35, %v1621_v19  ;;  %v2061_v29 = vmul.f32 %v3932_v1, %v3855_v60  ;;  %v1993_v17 = vmul.f32 %v3926_v13, %v1583_v57 }
 0x184   : > { %v2316_v24 = vsel %vm2252_vm7, %v2091_v62, %v2284_v53  ;;  %v2024_v3 = vadd.f32 %v1992_v41, %v1721_v61  ;;  %v2062_v31 = vmul.f32 %v3932_v1, %v3866_v34 }
 0x185   : > { %2584 = vst.msk [vmem:[%s2911_s12 + $0x3d0] sm:$0xff] %vm233_vm1, %v2316_v24  ;;  %vm2253_vm8 = vcmp.ge.f32.partialorder %v2092_v18, 0.0  ;;  %v2285_v58 = vmul.f32 0.01, %v2092_v18  ;;  %v1722_v46 = vadd.f32 %v1690_v0, %v1653_v6 }
 0x186   : > { %v2093_v63 = vadd.f32 %v2061_v29, %v2024_v3 }
 0x187   : > { %v2317_v14 = vsel %vm2253_vm8, %v2092_v18, %v2285_v58  ;;  %v2025_v35 = vadd.f32 %v1993_v17, %v1722_v46 }
 0x188   : > { %2585 = vst.msk [vmem:[%s2911_s12 + $0x3d8] sm:$0xff] %vm233_vm1, %v2317_v14  ;;  %vm2254_vm9 = vcmp.ge.f32.partialorder %v2093_v63, 0.0  ;;  %v2286_v45 = vmul.f32 0.01, %v2093_v63 }
 0x189   : > { %v2094_v25 = vadd.f32 %v2062_v31, %v2025_v35 }
 0x18a   : > { %v2318_v60 = vsel %vm2254_vm9, %v2093_v63, %v2286_v45 }
 0x18b   : > { %2586 = vst.msk [vmem:[%s2911_s12 + $0x3e0] sm:$0xff] %vm233_vm1, %v2318_v60  ;;  %vm2255_vm10 = vcmp.ge.f32.partialorder %v2094_v25, 0.0  ;;  %v2287_v30 = vmul.f32 0.01, %v2094_v25 }
 0x18d   : > { %v2319_v54 = vsel %vm2255_vm10, %v2094_v25, %v2287_v30 }
 0x18e   : > { %2587 = vst.msk [vmem:[%s2911_s12 + $0x3e8] sm:$0xff] %vm233_vm1, %v2319_v54 }
 0x18f PF: > { %s13_s14 = sadd.s32 1, %s2657_s14   ;;  %s4223_s12 = smov %s2653_s13 }
 0x190   : > { %p10_p5 = scmp.ge.s32.totalorder %s13_s14, 4   ;;  %s4224_s13 = smov %s4226_s15 }
 0x192   :  { %12 = sbr.rel (!%p10_p5) target bundleno = 2 (0x2), region = 74 }

</bundles_post_ra>
